<compile_context>
chip_gen: v7x
topology: tpu7x:2x2x1
jax: 0.10.0
libtpu: 0.0.40
codegen_flags: <defaults>
</compile_context>

<pallas_src>
import jax
import jax.numpy as jnp
import numpy as np
from jax.experimental import pallas as pl
from jax.experimental.pallas import tpu as pltpu


# -------------------- fused Pallas kernel --------------------

def fused_lstm_kernel(x_ref, wih_ref, whh_ref, b_ref, wout_ref, bout_ref,
                      out_ref, hseq_sc):
    """Fused 3-layer LSTM (wavefront schedule) + Linear over the time axis.

    x_ref:    (T*B, D)      time-major input; rows [t*B:(t+1)*B] = timestep t
    wih_ref:  (L, D, 4D)    weight_ih_l{k}.T, gate order i,f,g,o; g columns pre-scaled by 2
    whh_ref:  (L, D, 4D)    weight_hh_l{k}.T, g columns pre-scaled by 2
    b_ref:    (L, 1, 4D)    b_ih + b_hh, g columns pre-scaled by 2
    wout_ref: (T_out, T)    final Linear weight
    bout_ref: (T_out, 1)    final Linear bias
    out_ref:  (B, T_out, D) output, matches PyTorch layout
    hseq_sc:  (T, B, D) f32 scratch staging the last layer's hidden sequence
    """
    B, T_out, D = out_ref.shape
    T = wout_ref.shape[1]
    L = wih_ref.shape[0]

    # ---- layer-0 x projection hoisted: one (T*B, D)@(D, 4D) matmul, bias folded in ----
    x2d = x_ref[...].astype(jnp.float32)                         # (T*B, D)
    xproj0 = (jnp.dot(x2d, wih_ref[0], preferred_element_type=jnp.float32)
              + jnp.broadcast_to(b_ref[0], (T * B, 4 * D)))      # (T*B, 4D)

    # Per-layer packed weights / biases hoisted once (loaded VMEM -> vregs).
    wih = [None] + [wih_ref[l] for l in range(1, L)]
    whh = [whh_ref[l] for l in range(L)]
    bias = [None] + [jnp.broadcast_to(b_ref[l], (B, 4 * D)) for l in range(1, L)]

    # Recurrent state for all layers (they are live simultaneously in the wavefront).
    h = [jnp.zeros((B, D), jnp.float32) for _ in range(L)]
    c = [jnp.zeros((B, D), jnp.float32) for _ in range(L)]

    def cell(gates, c_prev):
        # Single full-width sigmoid; tanh(g) = 2*sigmoid(2g)-1 (2x pre-folded into the
        # packed g-gate columns), so one 4D-wide EUP pass instead of sigmoid + tanh.
        sg = jax.nn.sigmoid(gates)
        i = sg[:, 0:D]
        f = sg[:, D:2 * D]
        g = 2.0 * sg[:, 2 * D:3 * D] - 1.0
        o = sg[:, 3 * D:4 * D]
        c_new = f * c_prev + i * g
        h_new = o * jnp.tanh(c_new)
        return h_new, c_new

    # ---- wavefront over (layer, time): step w runs layer l at t = w - l ----
    # All inputs of a cell at wavefront step w were produced at step w-1, so the serial
    # chain is T+L-1 = 18 steps instead of L*T = 48.  Layers are visited high -> low so
    # h[l-1] still holds the previous wavefront step's value when layer l reads it.
    for w in range(T + L - 1):
        for l in reversed(range(L)):
            t = w - l
            if t < 0 or t >= T:
                continue
            if l == 0:
                gates = xproj0[t * B:(t + 1) * B, :] + jnp.dot(
                    h[0], whh[0], preferred_element_type=jnp.float32)
            else:
                gates = (jnp.dot(h[l - 1], wih[l],
                                 preferred_element_type=jnp.float32)
                         + jnp.dot(h[l], whh[l],
                                   preferred_element_type=jnp.float32)
                         + bias[l])
            h[l], c[l] = cell(gates, c[l])
            if l == L - 1:
                hseq_sc[t] = h[l]            # one contiguous (B, D) store per step

    # ---- output Linear over the time axis: y[b] = W_out @ H_b + b_out ----
    w_out = wout_ref[...]                    # (T_out, T)
    b_out = bout_ref[...]                    # (T_out, 1)
    for bi in range(B):
        hb = hseq_sc[:, bi, :]               # (T, D), epilogue-only strided read
        yb = jnp.dot(w_out, hb, preferred_element_type=jnp.float32) + b_out
        out_ref[bi] = yb.astype(out_ref.dtype)


# -------------------- wrapper --------------------

def mylstm_forward(params, data):
    # data: (B, input_len, input_dim) batch_first, exactly like the PyTorch module.
    B, T, D = data.shape
    wih, whh, bias = params["wih"], params["whh"], params["bias"]
    w_out, b_out = params["out_w"], params["out_b"]
    L = wih.shape[0]
    T_out = w_out.shape[0]

    # Feed the kernel a time-major 2-D view so per-step inputs are contiguous sublane
    # slices (layout plumbing only; the kernel output stays (B, T_out, D)).
    x_tm = jnp.transpose(data, (1, 0, 2)).reshape(T * B, D)

    return pl.pallas_call(
        fused_lstm_kernel,
        out_shape=jax.ShapeDtypeStruct((B, T_out, D), data.dtype),
        grid_spec=pltpu.PrefetchScalarGridSpec(
            num_scalar_prefetch=0,
            grid=(1,),
            in_specs=[
                pl.BlockSpec((T * B, D), lambda i: (0, 0)),
                pl.BlockSpec((L, D, 4 * D), lambda i: (0, 0, 0)),
                pl.BlockSpec((L, D, 4 * D), lambda i: (0, 0, 0)),
                pl.BlockSpec((L, 1, 4 * D), lambda i: (0, 0, 0)),
                pl.BlockSpec((T_out, T), lambda i: (0, 0)),
                pl.BlockSpec((T_out, 1), lambda i: (0, 0)),
            ],
            out_specs=pl.BlockSpec((B, T_out, D), lambda i: (0, 0, 0)),
            scratch_shapes=[pltpu.VMEM((T, B, D), jnp.float32)],
        ),
        compiler_params=pltpu.CompilerParams(
            dimension_semantics=("arbitrary",)),
    )(x_tm, wih, whh, bias, w_out, b_out)


# -------------------- weight packing (PyTorch layout -> kernel layout) --------------------

def pack_params(raw_lstm, out_w, out_b):
    """Pack PyTorch-layout LSTM weights for the fused kernel.

    Per layer, weight_ih/weight_hh (4D, D) are transposed to (D, 4D) so all four gates come
    from one lane-dense matmul, biases are pre-summed, and the g-gate columns [2D:3D) are
    pre-scaled by 2 so the kernel recovers tanh(g) as 2*sigmoid(2g) - 1.
    """
    D = raw_lstm[0][0].shape[1]
    gscale = jnp.ones((1, 4 * D), jnp.float32).at[:, 2 * D:3 * D].set(2.0)
    wih_l, whh_l, b_l = [], [], []
    for (wih, whh, bih, bhh) in raw_lstm:
        wih_l.append(wih.T * gscale)                               # (D, 4D)
        whh_l.append(whh.T * gscale)                               # (D, 4D)
        b_l.append((bih + bhh).reshape(1, 4 * D) * gscale)         # (1, 4D)
    return dict(
        wih=jnp.stack(wih_l, axis=0),      # (L, D, 4D)
        whh=jnp.stack(whh_l, axis=0),      # (L, D, 4D)
        bias=jnp.stack(b_l, axis=0),       # (L, 1, 4D)
        out_w=out_w,                       # (T_out, T)
        out_b=out_b.reshape(-1, 1),        # (T_out, 1)
    )


# -------------------- pure-JAX reference for verification --------------------

def reference_forward(raw_lstm, out_w, out_b, data):
    x = data.astype(jnp.float32)
    B, T, D = data.shape
    for (wih, whh, bih, bhh) in raw_lstm:
        h = jnp.zeros((B, D), jnp.float32)
        c = jnp.zeros((B, D), jnp.float32)
        outs = []
        for t in range(T):
            gates = x[:, t, :] @ wih.T + h @ whh.T + bih + bhh
            i = jax.nn.sigmoid(gates[:, 0:D])
            f = jax.nn.sigmoid(gates[:, D:2 * D])
            g = jnp.tanh(gates[:, 2 * D:3 * D])
            o = jax.nn.sigmoid(gates[:, 3 * D:4 * D])
            c = f * c + i * g
            h = o * jnp.tanh(c)
            outs.append(h)
        x = jnp.stack(outs, axis=1)
    y = jnp.einsum("ot,btd->bod", out_w, x) + out_b[None, :, None]
    return y


if __name__ == "__main__":
    # shapes implied by the module: batch=2, input_dim=32, input_len=16, output_len=8,
    # num_layer=3 (LSTM hidden size == input_dim in this module)
    B, D, T, T_out, L = 2, 32, 16, 8, 3

    key = jax.random.PRNGKey(0)
    keys = jax.random.split(key, 4 * L + 3)
    kidx = 0
    scale = 1.0 / np.sqrt(D)

    raw_lstm = []
    for _ in range(L):
        wih = jax.random.uniform(keys[kidx], (4 * D, D), jnp.float32, -scale, scale); kidx += 1
        whh = jax.random.uniform(keys[kidx], (4 * D, D), jnp.float32, -scale, scale); kidx += 1
        bih = jax.random.uniform(keys[kidx], (4 * D,), jnp.float32, -scale, scale); kidx += 1
        bhh = jax.random.uniform(keys[kidx], (4 * D,), jnp.float32, -scale, scale); kidx += 1
        raw_lstm.append((wih, whh, bih, bhh))

    oscale = 1.0 / np.sqrt(T)
    out_w = jax.random.uniform(keys[kidx], (T_out, T), jnp.float32, -oscale, oscale); kidx += 1
    out_b = jax.random.uniform(keys[kidx], (T_out,), jnp.float32, -oscale, oscale); kidx += 1
    data = jax.random.normal(keys[kidx], (B, T, D), jnp.float32)

    params = pack_params(raw_lstm, out_w, out_b)

    y = mylstm_forward(params, data)
    y = jax.block_until_ready(y)

    y_ref = reference_forward(raw_lstm, out_w, out_b, data)
    np.testing.assert_allclose(np.asarray(y), np.asarray(y_ref), rtol=1e-4, atol=1e-4)
    assert y.shape == (B, T_out, D)
    print("KERNEL_OK")
</pallas_src>

<mosaic_0001>
module attributes {stable_mosaic.version = 11 : i64} {
  func.func @fused_lstm_kernel(%arg0: i32, %arg1: memref<32x32xf32, #tpu.memory_space<vmem>>, %arg2: memref<3x32x128xf32, #tpu.memory_space<vmem>>, %arg3: memref<3x32x128xf32, #tpu.memory_space<vmem>>, %arg4: memref<3x1x128xf32, #tpu.memory_space<vmem>>, %arg5: memref<8x16xf32, #tpu.memory_space<vmem>>, %arg6: memref<8x1xf32, #tpu.memory_space<vmem>>, %arg7: memref<2x8x32xf32, #tpu.memory_space<vmem>>, %arg8: memref<16x2x32xf32, #tpu.memory_space<vmem>>) attributes {dimension_semantics = [#tpu.dimension_semantics<arbitrary>], iteration_bounds = array<i64: 1>, scalar_prefetch = 0 : i64, scratch_operands = 1 : i64, tpu.core_type = #tpu.core_type<tc>, window_params = [{pipeline_mode = #tpu.pipeline_mode<synchronous>, transform_indices = @transform_0, window_bounds = array<i64: 32, 32>}, {pipeline_mode = #tpu.pipeline_mode<synchronous>, transform_indices = @transform_1, window_bounds = array<i64: 3, 32, 128>}, {pipeline_mode = #tpu.pipeline_mode<synchronous>, transform_indices = @transform_2, window_bounds = array<i64: 3, 32, 128>}, {pipeline_mode = #tpu.pipeline_mode<synchronous>, transform_indices = @transform_3, window_bounds = array<i64: 3, 1, 128>}, {pipeline_mode = #tpu.pipeline_mode<synchronous>, transform_indices = @transform_4, window_bounds = array<i64: 8, 16>}, {pipeline_mode = #tpu.pipeline_mode<synchronous>, transform_indices = @transform_5, window_bounds = array<i64: 8, 1>}, {pipeline_mode = #tpu.pipeline_mode<synchronous>, transform_indices = @transform_6, window_bounds = array<i64: 2, 8, 32>}]} {
    %c0 = arith.constant 0 : index
    %c0_0 = arith.constant 0 : index
    %0 = vector.load %arg1[%c0, %c0_0] : memref<32x32xf32, #tpu.memory_space<vmem>>, vector<32x32xf32>
    %c0_1 = arith.constant 0 : index
    %c0_2 = arith.constant 0 : index
    %c0_3 = arith.constant 0 : index
    %1 = vector.load %arg2[%c0_1, %c0_2, %c0_3] : memref<3x32x128xf32, #tpu.memory_space<vmem>>, vector<1x32x128xf32>
    %2 = vector.shape_cast %1 : vector<1x32x128xf32> to vector<32x128xf32>
    %cst = arith.constant dense<0.000000e+00> : vector<32x128xf32>
    %3 = tpu.matmul %0, %2, %cst {dimension_numbers = #tpu.dot_dimension_numbers<[1], [0], [0], [1], [0, 0, 1, 1], [], []>} : vector<32x32xf32>, vector<32x128xf32>, vector<32x128xf32> -> vector<32x128xf32>
    %c0_4 = arith.constant 0 : index
    %c0_5 = arith.constant 0 : index
    %c0_6 = arith.constant 0 : index
    %4 = vector.load %arg4[%c0_4, %c0_5, %c0_6] : memref<3x1x128xf32, #tpu.memory_space<vmem>>, vector<1x1x128xf32>
    %5 = vector.shape_cast %4 : vector<1x1x128xf32> to vector<1x128xf32>
    %6 = vector.shape_cast %5 : vector<1x128xf32> to vector<1x128xf32>
    %7 = vector.broadcast %6 : vector<1x128xf32> to vector<32x128xf32>
    %8 = arith.addf %3, %7 : vector<32x128xf32>
    %c1 = arith.constant 1 : index
    %c0_7 = arith.constant 0 : index
    %c0_8 = arith.constant 0 : index
    %9 = vector.load %arg2[%c1, %c0_7, %c0_8] : memref<3x32x128xf32, #tpu.memory_space<vmem>>, vector<1x32x128xf32>
    %10 = vector.shape_cast %9 : vector<1x32x128xf32> to vector<32x128xf32>
    %c2 = arith.constant 2 : index
    %c0_9 = arith.constant 0 : index
    %c0_10 = arith.constant 0 : index
    %11 = vector.load %arg2[%c2, %c0_9, %c0_10] : memref<3x32x128xf32, #tpu.memory_space<vmem>>, vector<1x32x128xf32>
    %12 = vector.shape_cast %11 : vector<1x32x128xf32> to vector<32x128xf32>
    %c0_11 = arith.constant 0 : index
    %c0_12 = arith.constant 0 : index
    %c0_13 = arith.constant 0 : index
    %13 = vector.load %arg3[%c0_11, %c0_12, %c0_13] : memref<3x32x128xf32, #tpu.memory_space<vmem>>, vector<1x32x128xf32>
    %14 = vector.shape_cast %13 : vector<1x32x128xf32> to vector<32x128xf32>
    %c1_14 = arith.constant 1 : index
    %c0_15 = arith.constant 0 : index
    %c0_16 = arith.constant 0 : index
    %15 = vector.load %arg3[%c1_14, %c0_15, %c0_16] : memref<3x32x128xf32, #tpu.memory_space<vmem>>, vector<1x32x128xf32>
    %16 = vector.shape_cast %15 : vector<1x32x128xf32> to vector<32x128xf32>
    %c2_17 = arith.constant 2 : index
    %c0_18 = arith.constant 0 : index
    %c0_19 = arith.constant 0 : index
    %17 = vector.load %arg3[%c2_17, %c0_18, %c0_19] : memref<3x32x128xf32, #tpu.memory_space<vmem>>, vector<1x32x128xf32>
    %18 = vector.shape_cast %17 : vector<1x32x128xf32> to vector<32x128xf32>
    %c1_20 = arith.constant 1 : index
    %c0_21 = arith.constant 0 : index
    %c0_22 = arith.constant 0 : index
    %19 = vector.load %arg4[%c1_20, %c0_21, %c0_22] : memref<3x1x128xf32, #tpu.memory_space<vmem>>, vector<1x1x128xf32>
    %20 = vector.shape_cast %19 : vector<1x1x128xf32> to vector<1x128xf32>
    %21 = vector.shape_cast %20 : vector<1x128xf32> to vector<1x128xf32>
    %22 = vector.broadcast %21 : vector<1x128xf32> to vector<2x128xf32>
    %c2_23 = arith.constant 2 : index
    %c0_24 = arith.constant 0 : index
    %c0_25 = arith.constant 0 : index
    %23 = vector.load %arg4[%c2_23, %c0_24, %c0_25] : memref<3x1x128xf32, #tpu.memory_space<vmem>>, vector<1x1x128xf32>
    %24 = vector.shape_cast %23 : vector<1x1x128xf32> to vector<1x128xf32>
    %25 = vector.shape_cast %24 : vector<1x128xf32> to vector<1x128xf32>
    %26 = vector.broadcast %25 : vector<1x128xf32> to vector<2x128xf32>
    %cst_26 = arith.constant 0.000000e+00 : f32
    %27 = vector.broadcast %cst_26 : f32 to vector<2x32xf32>
    %cst_27 = arith.constant 0.000000e+00 : f32
    %28 = vector.broadcast %cst_27 : f32 to vector<2x32xf32>
    %cst_28 = arith.constant 0.000000e+00 : f32
    %29 = vector.broadcast %cst_28 : f32 to vector<2x32xf32>
    %cst_29 = arith.constant 0.000000e+00 : f32
    %30 = vector.broadcast %cst_29 : f32 to vector<2x32xf32>
    %cst_30 = arith.constant 0.000000e+00 : f32
    %31 = vector.broadcast %cst_30 : f32 to vector<2x32xf32>
    %cst_31 = arith.constant 0.000000e+00 : f32
    %32 = vector.broadcast %cst_31 : f32 to vector<2x32xf32>
    %33 = vector.extract_strided_slice %8 {offsets = [0, 0], sizes = [2, 128], strides = [1, 1]} : vector<32x128xf32> to vector<2x128xf32>
    %cst_32 = arith.constant dense<0.000000e+00> : vector<2x128xf32>
    %34 = tpu.matmul %27, %14, %cst_32 {dimension_numbers = #tpu.dot_dimension_numbers<[1], [0], [0], [1], [0, 0, 1, 1], [], []>} : vector<2x32xf32>, vector<32x128xf32>, vector<2x128xf32> -> vector<2x128xf32>
    %35 = arith.addf %33, %34 : vector<2x128xf32>
    %36 = arith.negf %35 : vector<2x128xf32>
    %37 = math.exp %36 : vector<2x128xf32>
    %cst_33 = arith.constant 1.000000e+00 : f32
    %38 = vector.broadcast %cst_33 : f32 to vector<2x128xf32>
    %39 = arith.addf %38, %37 : vector<2x128xf32>
    %40 = arith.divf %38, %39 : vector<2x128xf32>
    %41 = vector.extract_strided_slice %40 {offsets = [0, 0], sizes = [2, 32], strides = [1, 1]} : vector<2x128xf32> to vector<2x32xf32>
    %42 = vector.extract_strided_slice %40 {offsets = [0, 32], sizes = [2, 32], strides = [1, 1]} : vector<2x128xf32> to vector<2x32xf32>
    %43 = vector.extract_strided_slice %40 {offsets = [0, 64], sizes = [2, 32], strides = [1, 1]} : vector<2x128xf32> to vector<2x32xf32>
    %cst_34 = arith.constant 2.000000e+00 : f32
    %44 = vector.broadcast %cst_34 : f32 to vector<2x32xf32>
    %45 = arith.mulf %44, %43 : vector<2x32xf32>
    %cst_35 = arith.constant 1.000000e+00 : f32
    %46 = vector.broadcast %cst_35 : f32 to vector<2x32xf32>
    %47 = arith.subf %45, %46 : vector<2x32xf32>
    %48 = vector.extract_strided_slice %40 {offsets = [0, 96], sizes = [2, 32], strides = [1, 1]} : vector<2x128xf32> to vector<2x32xf32>
    %49 = arith.mulf %42, %30 : vector<2x32xf32>
    %50 = arith.mulf %41, %47 : vector<2x32xf32>
    %51 = arith.addf %49, %50 : vector<2x32xf32>
    %52 = math.tanh %51 : vector<2x32xf32>
    %53 = arith.mulf %48, %52 : vector<2x32xf32>
    %cst_36 = arith.constant dense<0.000000e+00> : vector<2x128xf32>
    %54 = tpu.matmul %53, %10, %cst_36 {dimension_numbers = #tpu.dot_dimension_numbers<[1], [0], [0], [1], [0, 0, 1, 1], [], []>} : vector<2x32xf32>, vector<32x128xf32>, vector<2x128xf32> -> vector<2x128xf32>
    %cst_37 = arith.constant dense<0.000000e+00> : vector<2x128xf32>
    %55 = tpu.matmul %28, %16, %cst_37 {dimension_numbers = #tpu.dot_dimension_numbers<[1], [0], [0], [1], [0, 0, 1, 1], [], []>} : vector<2x32xf32>, vector<32x128xf32>, vector<2x128xf32> -> vector<2x128xf32>
    %56 = arith.addf %54, %55 : vector<2x128xf32>
    %57 = arith.addf %56, %22 : vector<2x128xf32>
    %58 = arith.negf %57 : vector<2x128xf32>
    %59 = math.exp %58 : vector<2x128xf32>
    %cst_38 = arith.constant 1.000000e+00 : f32
    %60 = vector.broadcast %cst_38 : f32 to vector<2x128xf32>
    %61 = arith.addf %60, %59 : vector<2x128xf32>
    %62 = arith.divf %60, %61 : vector<2x128xf32>
    %63 = vector.extract_strided_slice %62 {offsets = [0, 0], sizes = [2, 32], strides = [1, 1]} : vector<2x128xf32> to vector<2x32xf32>
    %64 = vector.extract_strided_slice %62 {offsets = [0, 32], sizes = [2, 32], strides = [1, 1]} : vector<2x128xf32> to vector<2x32xf32>
    %65 = vector.extract_strided_slice %62 {offsets = [0, 64], sizes = [2, 32], strides = [1, 1]} : vector<2x128xf32> to vector<2x32xf32>
    %cst_39 = arith.constant 2.000000e+00 : f32
    %66 = vector.broadcast %cst_39 : f32 to vector<2x32xf32>
    %67 = arith.mulf %66, %65 : vector<2x32xf32>
    %cst_40 = arith.constant 1.000000e+00 : f32
    %68 = vector.broadcast %cst_40 : f32 to vector<2x32xf32>
    %69 = arith.subf %67, %68 : vector<2x32xf32>
    %70 = vector.extract_strided_slice %62 {offsets = [0, 96], sizes = [2, 32], strides = [1, 1]} : vector<2x128xf32> to vector<2x32xf32>
    %71 = arith.mulf %64, %31 : vector<2x32xf32>
    %72 = arith.mulf %63, %69 : vector<2x32xf32>
    %73 = arith.addf %71, %72 : vector<2x32xf32>
    %74 = math.tanh %73 : vector<2x32xf32>
    %75 = arith.mulf %70, %74 : vector<2x32xf32>
    %76 = vector.extract_strided_slice %8 {offsets = [2, 0], sizes = [2, 128], strides = [1, 1]} : vector<32x128xf32> to vector<2x128xf32>
    %cst_41 = arith.constant dense<0.000000e+00> : vector<2x128xf32>
    %77 = tpu.matmul %53, %14, %cst_41 {dimension_numbers = #tpu.dot_dimension_numbers<[1], [0], [0], [1], [0, 0, 1, 1], [], []>} : vector<2x32xf32>, vector<32x128xf32>, vector<2x128xf32> -> vector<2x128xf32>
    %78 = arith.addf %76, %77 : vector<2x128xf32>
    %79 = arith.negf %78 : vector<2x128xf32>
    %80 = math.exp %79 : vector<2x128xf32>
    %cst_42 = arith.constant 1.000000e+00 : f32
    %81 = vector.broadcast %cst_42 : f32 to vector<2x128xf32>
    %82 = arith.addf %81, %80 : vector<2x128xf32>
    %83 = arith.divf %81, %82 : vector<2x128xf32>
    %84 = vector.extract_strided_slice %83 {offsets = [0, 0], sizes = [2, 32], strides = [1, 1]} : vector<2x128xf32> to vector<2x32xf32>
    %85 = vector.extract_strided_slice %83 {offsets = [0, 32], sizes = [2, 32], strides = [1, 1]} : vector<2x128xf32> to vector<2x32xf32>
    %86 = vector.extract_strided_slice %83 {offsets = [0, 64], sizes = [2, 32], strides = [1, 1]} : vector<2x128xf32> to vector<2x32xf32>
    %cst_43 = arith.constant 2.000000e+00 : f32
    %87 = vector.broadcast %cst_43 : f32 to vector<2x32xf32>
    %88 = arith.mulf %87, %86 : vector<2x32xf32>
    %cst_44 = arith.constant 1.000000e+00 : f32
    %89 = vector.broadcast %cst_44 : f32 to vector<2x32xf32>
    %90 = arith.subf %88, %89 : vector<2x32xf32>
    %91 = vector.extract_strided_slice %83 {offsets = [0, 96], sizes = [2, 32], strides = [1, 1]} : vector<2x128xf32> to vector<2x32xf32>
    %92 = arith.mulf %85, %51 : vector<2x32xf32>
    %93 = arith.mulf %84, %90 : vector<2x32xf32>
    %94 = arith.addf %92, %93 : vector<2x32xf32>
    %95 = math.tanh %94 : vector<2x32xf32>
    %96 = arith.mulf %91, %95 : vector<2x32xf32>
    %cst_45 = arith.constant dense<0.000000e+00> : vector<2x128xf32>
    %97 = tpu.matmul %75, %12, %cst_45 {dimension_numbers = #tpu.dot_dimension_numbers<[1], [0], [0], [1], [0, 0, 1, 1], [], []>} : vector<2x32xf32>, vector<32x128xf32>, vector<2x128xf32> -> vector<2x128xf32>
    %cst_46 = arith.constant dense<0.000000e+00> : vector<2x128xf32>
    %98 = tpu.matmul %29, %18, %cst_46 {dimension_numbers = #tpu.dot_dimension_numbers<[1], [0], [0], [1], [0, 0, 1, 1], [], []>} : vector<2x32xf32>, vector<32x128xf32>, vector<2x128xf32> -> vector<2x128xf32>
    %99 = arith.addf %97, %98 : vector<2x128xf32>
    %100 = arith.addf %99, %26 : vector<2x128xf32>
    %101 = arith.negf %100 : vector<2x128xf32>
    %102 = math.exp %101 : vector<2x128xf32>
    %cst_47 = arith.constant 1.000000e+00 : f32
    %103 = vector.broadcast %cst_47 : f32 to vector<2x128xf32>
    %104 = arith.addf %103, %102 : vector<2x128xf32>
    %105 = arith.divf %103, %104 : vector<2x128xf32>
    %106 = vector.extract_strided_slice %105 {offsets = [0, 0], sizes = [2, 32], strides = [1, 1]} : vector<2x128xf32> to vector<2x32xf32>
    %107 = vector.extract_strided_slice %105 {offsets = [0, 32], sizes = [2, 32], strides = [1, 1]} : vector<2x128xf32> to vector<2x32xf32>
    %108 = vector.extract_strided_slice %105 {offsets = [0, 64], sizes = [2, 32], strides = [1, 1]} : vector<2x128xf32> to vector<2x32xf32>
    %cst_48 = arith.constant 2.000000e+00 : f32
    %109 = vector.broadcast %cst_48 : f32 to vector<2x32xf32>
    %110 = arith.mulf %109, %108 : vector<2x32xf32>
    %cst_49 = arith.constant 1.000000e+00 : f32
    %111 = vector.broadcast %cst_49 : f32 to vector<2x32xf32>
    %112 = arith.subf %110, %111 : vector<2x32xf32>
    %113 = vector.extract_strided_slice %105 {offsets = [0, 96], sizes = [2, 32], strides = [1, 1]} : vector<2x128xf32> to vector<2x32xf32>
    %114 = arith.mulf %107, %32 : vector<2x32xf32>
    %115 = arith.mulf %106, %112 : vector<2x32xf32>
    %116 = arith.addf %114, %115 : vector<2x32xf32>
    %117 = math.tanh %116 : vector<2x32xf32>
    %118 = arith.mulf %113, %117 : vector<2x32xf32>
    %c0_50 = arith.constant 0 : index
    %c0_51 = arith.constant 0 : index
    %c0_52 = arith.constant 0 : index
    %119 = vector.load %arg8[%c0_50, %c0_51, %c0_52] : memref<16x2x32xf32, #tpu.memory_space<vmem>>, vector<1x2x32xf32>
    %120 = vector.shape_cast %119 : vector<1x2x32xf32> to vector<2x32xf32>
    %121 = vector.shape_cast %118 : vector<2x32xf32> to vector<1x2x32xf32>
    tpu.vector_store %arg8[%c0_50, %c0_51, %c0_52], %121 {strides = array<i32>} : memref<16x2x32xf32, #tpu.memory_space<vmem>>, vector<1x2x32xf32>,
    %cst_53 = arith.constant dense<0.000000e+00> : vector<2x128xf32>
    %122 = tpu.matmul %96, %10, %cst_53 {dimension_numbers = #tpu.dot_dimension_numbers<[1], [0], [0], [1], [0, 0, 1, 1], [], []>} : vector<2x32xf32>, vector<32x128xf32>, vector<2x128xf32> -> vector<2x128xf32>
    %cst_54 = arith.constant dense<0.000000e+00> : vector<2x128xf32>
    %123 = tpu.matmul %75, %16, %cst_54 {dimension_numbers = #tpu.dot_dimension_numbers<[1], [0], [0], [1], [0, 0, 1, 1], [], []>} : vector<2x32xf32>, vector<32x128xf32>, vector<2x128xf32> -> vector<2x128xf32>
    %124 = arith.addf %122, %123 : vector<2x128xf32>
    %125 = arith.addf %124, %22 : vector<2x128xf32>
    %126 = arith.negf %125 : vector<2x128xf32>
    %127 = math.exp %126 : vector<2x128xf32>
    %cst_55 = arith.constant 1.000000e+00 : f32
    %128 = vector.broadcast %cst_55 : f32 to vector<2x128xf32>
    %129 = arith.addf %128, %127 : vector<2x128xf32>
    %130 = arith.divf %128, %129 : vector<2x128xf32>
    %131 = vector.extract_strided_slice %130 {offsets = [0, 0], sizes = [2, 32], strides = [1, 1]} : vector<2x128xf32> to vector<2x32xf32>
    %132 = vector.extract_strided_slice %130 {offsets = [0, 32], sizes = [2, 32], strides = [1, 1]} : vector<2x128xf32> to vector<2x32xf32>
    %133 = vector.extract_strided_slice %130 {offsets = [0, 64], sizes = [2, 32], strides = [1, 1]} : vector<2x128xf32> to vector<2x32xf32>
    %cst_56 = arith.constant 2.000000e+00 : f32
    %134 = vector.broadcast %cst_56 : f32 to vector<2x32xf32>
    %135 = arith.mulf %134, %133 : vector<2x32xf32>
    %cst_57 = arith.constant 1.000000e+00 : f32
    %136 = vector.broadcast %cst_57 : f32 to vector<2x32xf32>
    %137 = arith.subf %135, %136 : vector<2x32xf32>
    %138 = vector.extract_strided_slice %130 {offsets = [0, 96], sizes = [2, 32], strides = [1, 1]} : vector<2x128xf32> to vector<2x32xf32>
    %139 = arith.mulf %132, %73 : vector<2x32xf32>
    %140 = arith.mulf %131, %137 : vector<2x32xf32>
    %141 = arith.addf %139, %140 : vector<2x32xf32>
    %142 = math.tanh %141 : vector<2x32xf32>
    %143 = arith.mulf %138, %142 : vector<2x32xf32>
    %144 = vector.extract_strided_slice %8 {offsets = [4, 0], sizes = [2, 128], strides = [1, 1]} : vector<32x128xf32> to vector<2x128xf32>
    %cst_58 = arith.constant dense<0.000000e+00> : vector<2x128xf32>
    %145 = tpu.matmul %96, %14, %cst_58 {dimension_numbers = #tpu.dot_dimension_numbers<[1], [0], [0], [1], [0, 0, 1, 1], [], []>} : vector<2x32xf32>, vector<32x128xf32>, vector<2x128xf32> -> vector<2x128xf32>
    %146 = arith.addf %144, %145 : vector<2x128xf32>
    %147 = arith.negf %146 : vector<2x128xf32>
    %148 = math.exp %147 : vector<2x128xf32>
    %cst_59 = arith.constant 1.000000e+00 : f32
    %149 = vector.broadcast %cst_59 : f32 to vector<2x128xf32>
    %150 = arith.addf %149, %148 : vector<2x128xf32>
    %151 = arith.divf %149, %150 : vector<2x128xf32>
    %152 = vector.extract_strided_slice %151 {offsets = [0, 0], sizes = [2, 32], strides = [1, 1]} : vector<2x128xf32> to vector<2x32xf32>
    %153 = vector.extract_strided_slice %151 {offsets = [0, 32], sizes = [2, 32], strides = [1, 1]} : vector<2x128xf32> to vector<2x32xf32>
    %154 = vector.extract_strided_slice %151 {offsets = [0, 64], sizes = [2, 32], strides = [1, 1]} : vector<2x128xf32> to vector<2x32xf32>
    %cst_60 = arith.constant 2.000000e+00 : f32
    %155 = vector.broadcast %cst_60 : f32 to vector<2x32xf32>
    %156 = arith.mulf %155, %154 : vector<2x32xf32>
    %cst_61 = arith.constant 1.000000e+00 : f32
    %157 = vector.broadcast %cst_61 : f32 to vector<2x32xf32>
    %158 = arith.subf %156, %157 : vector<2x32xf32>
    %159 = vector.extract_strided_slice %151 {offsets = [0, 96], sizes = [2, 32], strides = [1, 1]} : vector<2x128xf32> to vector<2x32xf32>
    %160 = arith.mulf %153, %94 : vector<2x32xf32>
    %161 = arith.mulf %152, %158 : vector<2x32xf32>
    %162 = arith.addf %160, %161 : vector<2x32xf32>
    %163 = math.tanh %162 : vector<2x32xf32>
    %164 = arith.mulf %159, %163 : vector<2x32xf32>
    %cst_62 = arith.constant dense<0.000000e+00> : vector<2x128xf32>
    %165 = tpu.matmul %143, %12, %cst_62 {dimension_numbers = #tpu.dot_dimension_numbers<[1], [0], [0], [1], [0, 0, 1, 1], [], []>} : vector<2x32xf32>, vector<32x128xf32>, vector<2x128xf32> -> vector<2x128xf32>
    %cst_63 = arith.constant dense<0.000000e+00> : vector<2x128xf32>
    %166 = tpu.matmul %118, %18, %cst_63 {dimension_numbers = #tpu.dot_dimension_numbers<[1], [0], [0], [1], [0, 0, 1, 1], [], []>} : vector<2x32xf32>, vector<32x128xf32>, vector<2x128xf32> -> vector<2x128xf32>
    %167 = arith.addf %165, %166 : vector<2x128xf32>
    %168 = arith.addf %167, %26 : vector<2x128xf32>
    %169 = arith.negf %168 : vector<2x128xf32>
    %170 = math.exp %169 : vector<2x128xf32>
    %cst_64 = arith.constant 1.000000e+00 : f32
    %171 = vector.broadcast %cst_64 : f32 to vector<2x128xf32>
    %172 = arith.addf %171, %170 : vector<2x128xf32>
    %173 = arith.divf %171, %172 : vector<2x128xf32>
    %174 = vector.extract_strided_slice %173 {offsets = [0, 0], sizes = [2, 32], strides = [1, 1]} : vector<2x128xf32> to vector<2x32xf32>
    %175 = vector.extract_strided_slice %173 {offsets = [0, 32], sizes = [2, 32], strides = [1, 1]} : vector<2x128xf32> to vector<2x32xf32>
    %176 = vector.extract_strided_slice %173 {offsets = [0, 64], sizes = [2, 32], strides = [1, 1]} : vector<2x128xf32> to vector<2x32xf32>
    %cst_65 = arith.constant 2.000000e+00 : f32
    %177 = vector.broadcast %cst_65 : f32 to vector<2x32xf32>
    %178 = arith.mulf %177, %176 : vector<2x32xf32>
    %cst_66 = arith.constant 1.000000e+00 : f32
    %179 = vector.broadcast %cst_66 : f32 to vector<2x32xf32>
    %180 = arith.subf %178, %179 : vector<2x32xf32>
    %181 = vector.extract_strided_slice %173 {offsets = [0, 96], sizes = [2, 32], strides = [1, 1]} : vector<2x128xf32> to vector<2x32xf32>
    %182 = arith.mulf %175, %116 : vector<2x32xf32>
    %183 = arith.mulf %174, %180 : vector<2x32xf32>
    %184 = arith.addf %182, %183 : vector<2x32xf32>
    %185 = math.tanh %184 : vector<2x32xf32>
    %186 = arith.mulf %181, %185 : vector<2x32xf32>
    %c1_67 = arith.constant 1 : index
    %c0_68 = arith.constant 0 : index
    %c0_69 = arith.constant 0 : index
    %187 = vector.load %arg8[%c1_67, %c0_68, %c0_69] : memref<16x2x32xf32, #tpu.memory_space<vmem>>, vector<1x2x32xf32>
    %188 = vector.shape_cast %187 : vector<1x2x32xf32> to vector<2x32xf32>
    %189 = vector.shape_cast %186 : vector<2x32xf32> to vector<1x2x32xf32>
    tpu.vector_store %arg8[%c1_67, %c0_68, %c0_69], %189 {strides = array<i32>} : memref<16x2x32xf32, #tpu.memory_space<vmem>>, vector<1x2x32xf32>,
    %cst_70 = arith.constant dense<0.000000e+00> : vector<2x128xf32>
    %190 = tpu.matmul %164, %10, %cst_70 {dimension_numbers = #tpu.dot_dimension_numbers<[1], [0], [0], [1], [0, 0, 1, 1], [], []>} : vector<2x32xf32>, vector<32x128xf32>, vector<2x128xf32> -> vector<2x128xf32>
    %cst_71 = arith.constant dense<0.000000e+00> : vector<2x128xf32>
    %191 = tpu.matmul %143, %16, %cst_71 {dimension_numbers = #tpu.dot_dimension_numbers<[1], [0], [0], [1], [0, 0, 1, 1], [], []>} : vector<2x32xf32>, vector<32x128xf32>, vector<2x128xf32> -> vector<2x128xf32>
    %192 = arith.addf %190, %191 : vector<2x128xf32>
    %193 = arith.addf %192, %22 : vector<2x128xf32>
    %194 = arith.negf %193 : vector<2x128xf32>
    %195 = math.exp %194 : vector<2x128xf32>
    %cst_72 = arith.constant 1.000000e+00 : f32
    %196 = vector.broadcast %cst_72 : f32 to vector<2x128xf32>
    %197 = arith.addf %196, %195 : vector<2x128xf32>
    %198 = arith.divf %196, %197 : vector<2x128xf32>
    %199 = vector.extract_strided_slice %198 {offsets = [0, 0], sizes = [2, 32], strides = [1, 1]} : vector<2x128xf32> to vector<2x32xf32>
    %200 = vector.extract_strided_slice %198 {offsets = [0, 32], sizes = [2, 32], strides = [1, 1]} : vector<2x128xf32> to vector<2x32xf32>
    %201 = vector.extract_strided_slice %198 {offsets = [0, 64], sizes = [2, 32], strides = [1, 1]} : vector<2x128xf32> to vector<2x32xf32>
    %cst_73 = arith.constant 2.000000e+00 : f32
    %202 = vector.broadcast %cst_73 : f32 to vector<2x32xf32>
    %203 = arith.mulf %202, %201 : vector<2x32xf32>
    %cst_74 = arith.constant 1.000000e+00 : f32
    %204 = vector.broadcast %cst_74 : f32 to vector<2x32xf32>
    %205 = arith.subf %203, %204 : vector<2x32xf32>
    %206 = vector.extract_strided_slice %198 {offsets = [0, 96], sizes = [2, 32], strides = [1, 1]} : vector<2x128xf32> to vector<2x32xf32>
    %207 = arith.mulf %200, %141 : vector<2x32xf32>
    %208 = arith.mulf %199, %205 : vector<2x32xf32>
    %209 = arith.addf %207, %208 : vector<2x32xf32>
    %210 = math.tanh %209 : vector<2x32xf32>
    %211 = arith.mulf %206, %210 : vector<2x32xf32>
    %212 = vector.extract_strided_slice %8 {offsets = [6, 0], sizes = [2, 128], strides = [1, 1]} : vector<32x128xf32> to vector<2x128xf32>
    %cst_75 = arith.constant dense<0.000000e+00> : vector<2x128xf32>
    %213 = tpu.matmul %164, %14, %cst_75 {dimension_numbers = #tpu.dot_dimension_numbers<[1], [0], [0], [1], [0, 0, 1, 1], [], []>} : vector<2x32xf32>, vector<32x128xf32>, vector<2x128xf32> -> vector<2x128xf32>
    %214 = arith.addf %212, %213 : vector<2x128xf32>
    %215 = arith.negf %214 : vector<2x128xf32>
    %216 = math.exp %215 : vector<2x128xf32>
    %cst_76 = arith.constant 1.000000e+00 : f32
    %217 = vector.broadcast %cst_76 : f32 to vector<2x128xf32>
    %218 = arith.addf %217, %216 : vector<2x128xf32>
    %219 = arith.divf %217, %218 : vector<2x128xf32>
    %220 = vector.extract_strided_slice %219 {offsets = [0, 0], sizes = [2, 32], strides = [1, 1]} : vector<2x128xf32> to vector<2x32xf32>
    %221 = vector.extract_strided_slice %219 {offsets = [0, 32], sizes = [2, 32], strides = [1, 1]} : vector<2x128xf32> to vector<2x32xf32>
    %222 = vector.extract_strided_slice %219 {offsets = [0, 64], sizes = [2, 32], strides = [1, 1]} : vector<2x128xf32> to vector<2x32xf32>
    %cst_77 = arith.constant 2.000000e+00 : f32
    %223 = vector.broadcast %cst_77 : f32 to vector<2x32xf32>
    %224 = arith.mulf %223, %222 : vector<2x32xf32>
    %cst_78 = arith.constant 1.000000e+00 : f32
    %225 = vector.broadcast %cst_78 : f32 to vector<2x32xf32>
    %226 = arith.subf %224, %225 : vector<2x32xf32>
    %227 = vector.extract_strided_slice %219 {offsets = [0, 96], sizes = [2, 32], strides = [1, 1]} : vector<2x128xf32> to vector<2x32xf32>
    %228 = arith.mulf %221, %162 : vector<2x32xf32>
    %229 = arith.mulf %220, %226 : vector<2x32xf32>
    %230 = arith.addf %228, %229 : vector<2x32xf32>
    %231 = math.tanh %230 : vector<2x32xf32>
    %232 = arith.mulf %227, %231 : vector<2x32xf32>
    %cst_79 = arith.constant dense<0.000000e+00> : vector<2x128xf32>
    %233 = tpu.matmul %211, %12, %cst_79 {dimension_numbers = #tpu.dot_dimension_numbers<[1], [0], [0], [1], [0, 0, 1, 1], [], []>} : vector<2x32xf32>, vector<32x128xf32>, vector<2x128xf32> -> vector<2x128xf32>
    %cst_80 = arith.constant dense<0.000000e+00> : vector<2x128xf32>
    %234 = tpu.matmul %186, %18, %cst_80 {dimension_numbers = #tpu.dot_dimension_numbers<[1], [0], [0], [1], [0, 0, 1, 1], [], []>} : vector<2x32xf32>, vector<32x128xf32>, vector<2x128xf32> -> vector<2x128xf32>
    %235 = arith.addf %233, %234 : vector<2x128xf32>
    %236 = arith.addf %235, %26 : vector<2x128xf32>
    %237 = arith.negf %236 : vector<2x128xf32>
    %238 = math.exp %237 : vector<2x128xf32>
    %cst_81 = arith.constant 1.000000e+00 : f32
    %239 = vector.broadcast %cst_81 : f32 to vector<2x128xf32>
    %240 = arith.addf %239, %238 : vector<2x128xf32>
    %241 = arith.divf %239, %240 : vector<2x128xf32>
    %242 = vector.extract_strided_slice %241 {offsets = [0, 0], sizes = [2, 32], strides = [1, 1]} : vector<2x128xf32> to vector<2x32xf32>
    %243 = vector.extract_strided_slice %241 {offsets = [0, 32], sizes = [2, 32], strides = [1, 1]} : vector<2x128xf32> to vector<2x32xf32>
    %244 = vector.extract_strided_slice %241 {offsets = [0, 64], sizes = [2, 32], strides = [1, 1]} : vector<2x128xf32> to vector<2x32xf32>
    %cst_82 = arith.constant 2.000000e+00 : f32
    %245 = vector.broadcast %cst_82 : f32 to vector<2x32xf32>
    %246 = arith.mulf %245, %244 : vector<2x32xf32>
    %cst_83 = arith.constant 1.000000e+00 : f32
    %247 = vector.broadcast %cst_83 : f32 to vector<2x32xf32>
    %248 = arith.subf %246, %247 : vector<2x32xf32>
    %249 = vector.extract_strided_slice %241 {offsets = [0, 96], sizes = [2, 32], strides = [1, 1]} : vector<2x128xf32> to vector<2x32xf32>
    %250 = arith.mulf %243, %184 : vector<2x32xf32>
    %251 = arith.mulf %242, %248 : vector<2x32xf32>
    %252 = arith.addf %250, %251 : vector<2x32xf32>
    %253 = math.tanh %252 : vector<2x32xf32>
    %254 = arith.mulf %249, %253 : vector<2x32xf32>
    %c2_84 = arith.constant 2 : index
    %c0_85 = arith.constant 0 : index
    %c0_86 = arith.constant 0 : index
    %255 = vector.load %arg8[%c2_84, %c0_85, %c0_86] : memref<16x2x32xf32, #tpu.memory_space<vmem>>, vector<1x2x32xf32>
    %256 = vector.shape_cast %255 : vector<1x2x32xf32> to vector<2x32xf32>
    %257 = vector.shape_cast %254 : vector<2x32xf32> to vector<1x2x32xf32>
    tpu.vector_store %arg8[%c2_84, %c0_85, %c0_86], %257 {strides = array<i32>} : memref<16x2x32xf32, #tpu.memory_space<vmem>>, vector<1x2x32xf32>,
    %cst_87 = arith.constant dense<0.000000e+00> : vector<2x128xf32>
    %258 = tpu.matmul %232, %10, %cst_87 {dimension_numbers = #tpu.dot_dimension_numbers<[1], [0], [0], [1], [0, 0, 1, 1], [], []>} : vector<2x32xf32>, vector<32x128xf32>, vector<2x128xf32> -> vector<2x128xf32>
    %cst_88 = arith.constant dense<0.000000e+00> : vector<2x128xf32>
    %259 = tpu.matmul %211, %16, %cst_88 {dimension_numbers = #tpu.dot_dimension_numbers<[1], [0], [0], [1], [0, 0, 1, 1], [], []>} : vector<2x32xf32>, vector<32x128xf32>, vector<2x128xf32> -> vector<2x128xf32>
    %260 = arith.addf %258, %259 : vector<2x128xf32>
    %261 = arith.addf %260, %22 : vector<2x128xf32>
    %262 = arith.negf %261 : vector<2x128xf32>
    %263 = math.exp %262 : vector<2x128xf32>
    %cst_89 = arith.constant 1.000000e+00 : f32
    %264 = vector.broadcast %cst_89 : f32 to vector<2x128xf32>
    %265 = arith.addf %264, %263 : vector<2x128xf32>
    %266 = arith.divf %264, %265 : vector<2x128xf32>
    %267 = vector.extract_strided_slice %266 {offsets = [0, 0], sizes = [2, 32], strides = [1, 1]} : vector<2x128xf32> to vector<2x32xf32>
    %268 = vector.extract_strided_slice %266 {offsets = [0, 32], sizes = [2, 32], strides = [1, 1]} : vector<2x128xf32> to vector<2x32xf32>
    %269 = vector.extract_strided_slice %266 {offsets = [0, 64], sizes = [2, 32], strides = [1, 1]} : vector<2x128xf32> to vector<2x32xf32>
    %cst_90 = arith.constant 2.000000e+00 : f32
    %270 = vector.broadcast %cst_90 : f32 to vector<2x32xf32>
    %271 = arith.mulf %270, %269 : vector<2x32xf32>
    %cst_91 = arith.constant 1.000000e+00 : f32
    %272 = vector.broadcast %cst_91 : f32 to vector<2x32xf32>
    %273 = arith.subf %271, %272 : vector<2x32xf32>
    %274 = vector.extract_strided_slice %266 {offsets = [0, 96], sizes = [2, 32], strides = [1, 1]} : vector<2x128xf32> to vector<2x32xf32>
    %275 = arith.mulf %268, %209 : vector<2x32xf32>
    %276 = arith.mulf %267, %273 : vector<2x32xf32>
    %277 = arith.addf %275, %276 : vector<2x32xf32>
    %278 = math.tanh %277 : vector<2x32xf32>
    %279 = arith.mulf %274, %278 : vector<2x32xf32>
    %280 = vector.extract_strided_slice %8 {offsets = [8, 0], sizes = [2, 128], strides = [1, 1]} : vector<32x128xf32> to vector<2x128xf32>
    %cst_92 = arith.constant dense<0.000000e+00> : vector<2x128xf32>
    %281 = tpu.matmul %232, %14, %cst_92 {dimension_numbers = #tpu.dot_dimension_numbers<[1], [0], [0], [1], [0, 0, 1, 1], [], []>} : vector<2x32xf32>, vector<32x128xf32>, vector<2x128xf32> -> vector<2x128xf32>
    %282 = arith.addf %280, %281 : vector<2x128xf32>
    %283 = arith.negf %282 : vector<2x128xf32>
    %284 = math.exp %283 : vector<2x128xf32>
    %cst_93 = arith.constant 1.000000e+00 : f32
    %285 = vector.broadcast %cst_93 : f32 to vector<2x128xf32>
    %286 = arith.addf %285, %284 : vector<2x128xf32>
    %287 = arith.divf %285, %286 : vector<2x128xf32>
    %288 = vector.extract_strided_slice %287 {offsets = [0, 0], sizes = [2, 32], strides = [1, 1]} : vector<2x128xf32> to vector<2x32xf32>
    %289 = vector.extract_strided_slice %287 {offsets = [0, 32], sizes = [2, 32], strides = [1, 1]} : vector<2x128xf32> to vector<2x32xf32>
    %290 = vector.extract_strided_slice %287 {offsets = [0, 64], sizes = [2, 32], strides = [1, 1]} : vector<2x128xf32> to vector<2x32xf32>
    %cst_94 = arith.constant 2.000000e+00 : f32
    %291 = vector.broadcast %cst_94 : f32 to vector<2x32xf32>
    %292 = arith.mulf %291, %290 : vector<2x32xf32>
    %cst_95 = arith.constant 1.000000e+00 : f32
    %293 = vector.broadcast %cst_95 : f32 to vector<2x32xf32>
    %294 = arith.subf %292, %293 : vector<2x32xf32>
    %295 = vector.extract_strided_slice %287 {offsets = [0, 96], sizes = [2, 32], strides = [1, 1]} : vector<2x128xf32> to vector<2x32xf32>
    %296 = arith.mulf %289, %230 : vector<2x32xf32>
    %297 = arith.mulf %288, %294 : vector<2x32xf32>
    %298 = arith.addf %296, %297 : vector<2x32xf32>
    %299 = math.tanh %298 : vector<2x32xf32>
    %300 = arith.mulf %295, %299 : vector<2x32xf32>
    %cst_96 = arith.constant dense<0.000000e+00> : vector<2x128xf32>
    %301 = tpu.matmul %279, %12, %cst_96 {dimension_numbers = #tpu.dot_dimension_numbers<[1], [0], [0], [1], [0, 0, 1, 1], [], []>} : vector<2x32xf32>, vector<32x128xf32>, vector<2x128xf32> -> vector<2x128xf32>
    %cst_97 = arith.constant dense<0.000000e+00> : vector<2x128xf32>
    %302 = tpu.matmul %254, %18, %cst_97 {dimension_numbers = #tpu.dot_dimension_numbers<[1], [0], [0], [1], [0, 0, 1, 1], [], []>} : vector<2x32xf32>, vector<32x128xf32>, vector<2x128xf32> -> vector<2x128xf32>
    %303 = arith.addf %301, %302 : vector<2x128xf32>
    %304 = arith.addf %303, %26 : vector<2x128xf32>
    %305 = arith.negf %304 : vector<2x128xf32>
    %306 = math.exp %305 : vector<2x128xf32>
    %cst_98 = arith.constant 1.000000e+00 : f32
    %307 = vector.broadcast %cst_98 : f32 to vector<2x128xf32>
    %308 = arith.addf %307, %306 : vector<2x128xf32>
    %309 = arith.divf %307, %308 : vector<2x128xf32>
    %310 = vector.extract_strided_slice %309 {offsets = [0, 0], sizes = [2, 32], strides = [1, 1]} : vector<2x128xf32> to vector<2x32xf32>
    %311 = vector.extract_strided_slice %309 {offsets = [0, 32], sizes = [2, 32], strides = [1, 1]} : vector<2x128xf32> to vector<2x32xf32>
    %312 = vector.extract_strided_slice %309 {offsets = [0, 64], sizes = [2, 32], strides = [1, 1]} : vector<2x128xf32> to vector<2x32xf32>
    %cst_99 = arith.constant 2.000000e+00 : f32
    %313 = vector.broadcast %cst_99 : f32 to vector<2x32xf32>
    %314 = arith.mulf %313, %312 : vector<2x32xf32>
    %cst_100 = arith.constant 1.000000e+00 : f32
    %315 = vector.broadcast %cst_100 : f32 to vector<2x32xf32>
    %316 = arith.subf %314, %315 : vector<2x32xf32>
    %317 = vector.extract_strided_slice %309 {offsets = [0, 96], sizes = [2, 32], strides = [1, 1]} : vector<2x128xf32> to vector<2x32xf32>
    %318 = arith.mulf %311, %252 : vector<2x32xf32>
    %319 = arith.mulf %310, %316 : vector<2x32xf32>
    %320 = arith.addf %318, %319 : vector<2x32xf32>
    %321 = math.tanh %320 : vector<2x32xf32>
    %322 = arith.mulf %317, %321 : vector<2x32xf32>
    %c3 = arith.constant 3 : index
    %c0_101 = arith.constant 0 : index
    %c0_102 = arith.constant 0 : index
    %323 = vector.load %arg8[%c3, %c0_101, %c0_102] : memref<16x2x32xf32, #tpu.memory_space<vmem>>, vector<1x2x32xf32>
    %324 = vector.shape_cast %323 : vector<1x2x32xf32> to vector<2x32xf32>
    %325 = vector.shape_cast %322 : vector<2x32xf32> to vector<1x2x32xf32>
    tpu.vector_store %arg8[%c3, %c0_101, %c0_102], %325 {strides = array<i32>} : memref<16x2x32xf32, #tpu.memory_space<vmem>>, vector<1x2x32xf32>,
    %cst_103 = arith.constant dense<0.000000e+00> : vector<2x128xf32>
    %326 = tpu.matmul %300, %10, %cst_103 {dimension_numbers = #tpu.dot_dimension_numbers<[1], [0], [0], [1], [0, 0, 1, 1], [], []>} : vector<2x32xf32>, vector<32x128xf32>, vector<2x128xf32> -> vector<2x128xf32>
    %cst_104 = arith.constant dense<0.000000e+00> : vector<2x128xf32>
    %327 = tpu.matmul %279, %16, %cst_104 {dimension_numbers = #tpu.dot_dimension_numbers<[1], [0], [0], [1], [0, 0, 1, 1], [], []>} : vector<2x32xf32>, vector<32x128xf32>, vector<2x128xf32> -> vector<2x128xf32>
    %328 = arith.addf %326, %327 : vector<2x128xf32>
    %329 = arith.addf %328, %22 : vector<2x128xf32>
    %330 = arith.negf %329 : vector<2x128xf32>
    %331 = math.exp %330 : vector<2x128xf32>
    %cst_105 = arith.constant 1.000000e+00 : f32
    %332 = vector.broadcast %cst_105 : f32 to vector<2x128xf32>
    %333 = arith.addf %332, %331 : vector<2x128xf32>
    %334 = arith.divf %332, %333 : vector<2x128xf32>
    %335 = vector.extract_strided_slice %334 {offsets = [0, 0], sizes = [2, 32], strides = [1, 1]} : vector<2x128xf32> to vector<2x32xf32>
    %336 = vector.extract_strided_slice %334 {offsets = [0, 32], sizes = [2, 32], strides = [1, 1]} : vector<2x128xf32> to vector<2x32xf32>
    %337 = vector.extract_strided_slice %334 {offsets = [0, 64], sizes = [2, 32], strides = [1, 1]} : vector<2x128xf32> to vector<2x32xf32>
    %cst_106 = arith.constant 2.000000e+00 : f32
    %338 = vector.broadcast %cst_106 : f32 to vector<2x32xf32>
    %339 = arith.mulf %338, %337 : vector<2x32xf32>
    %cst_107 = arith.constant 1.000000e+00 : f32
    %340 = vector.broadcast %cst_107 : f32 to vector<2x32xf32>
    %341 = arith.subf %339, %340 : vector<2x32xf32>
    %342 = vector.extract_strided_slice %334 {offsets = [0, 96], sizes = [2, 32], strides = [1, 1]} : vector<2x128xf32> to vector<2x32xf32>
    %343 = arith.mulf %336, %277 : vector<2x32xf32>
    %344 = arith.mulf %335, %341 : vector<2x32xf32>
    %345 = arith.addf %343, %344 : vector<2x32xf32>
    %346 = math.tanh %345 : vector<2x32xf32>
    %347 = arith.mulf %342, %346 : vector<2x32xf32>
    %348 = vector.extract_strided_slice %8 {offsets = [10, 0], sizes = [2, 128], strides = [1, 1]} : vector<32x128xf32> to vector<2x128xf32>
    %cst_108 = arith.constant dense<0.000000e+00> : vector<2x128xf32>
    %349 = tpu.matmul %300, %14, %cst_108 {dimension_numbers = #tpu.dot_dimension_numbers<[1], [0], [0], [1], [0, 0, 1, 1], [], []>} : vector<2x32xf32>, vector<32x128xf32>, vector<2x128xf32> -> vector<2x128xf32>
    %350 = arith.addf %348, %349 : vector<2x128xf32>
    %351 = arith.negf %350 : vector<2x128xf32>
    %352 = math.exp %351 : vector<2x128xf32>
    %cst_109 = arith.constant 1.000000e+00 : f32
    %353 = vector.broadcast %cst_109 : f32 to vector<2x128xf32>
    %354 = arith.addf %353, %352 : vector<2x128xf32>
    %355 = arith.divf %353, %354 : vector<2x128xf32>
    %356 = vector.extract_strided_slice %355 {offsets = [0, 0], sizes = [2, 32], strides = [1, 1]} : vector<2x128xf32> to vector<2x32xf32>
    %357 = vector.extract_strided_slice %355 {offsets = [0, 32], sizes = [2, 32], strides = [1, 1]} : vector<2x128xf32> to vector<2x32xf32>
    %358 = vector.extract_strided_slice %355 {offsets = [0, 64], sizes = [2, 32], strides = [1, 1]} : vector<2x128xf32> to vector<2x32xf32>
    %cst_110 = arith.constant 2.000000e+00 : f32
    %359 = vector.broadcast %cst_110 : f32 to vector<2x32xf32>
    %360 = arith.mulf %359, %358 : vector<2x32xf32>
    %cst_111 = arith.constant 1.000000e+00 : f32
    %361 = vector.broadcast %cst_111 : f32 to vector<2x32xf32>
    %362 = arith.subf %360, %361 : vector<2x32xf32>
    %363 = vector.extract_strided_slice %355 {offsets = [0, 96], sizes = [2, 32], strides = [1, 1]} : vector<2x128xf32> to vector<2x32xf32>
    %364 = arith.mulf %357, %298 : vector<2x32xf32>
    %365 = arith.mulf %356, %362 : vector<2x32xf32>
    %366 = arith.addf %364, %365 : vector<2x32xf32>
    %367 = math.tanh %366 : vector<2x32xf32>
    %368 = arith.mulf %363, %367 : vector<2x32xf32>
    %cst_112 = arith.constant dense<0.000000e+00> : vector<2x128xf32>
    %369 = tpu.matmul %347, %12, %cst_112 {dimension_numbers = #tpu.dot_dimension_numbers<[1], [0], [0], [1], [0, 0, 1, 1], [], []>} : vector<2x32xf32>, vector<32x128xf32>, vector<2x128xf32> -> vector<2x128xf32>
    %cst_113 = arith.constant dense<0.000000e+00> : vector<2x128xf32>
    %370 = tpu.matmul %322, %18, %cst_113 {dimension_numbers = #tpu.dot_dimension_numbers<[1], [0], [0], [1], [0, 0, 1, 1], [], []>} : vector<2x32xf32>, vector<32x128xf32>, vector<2x128xf32> -> vector<2x128xf32>
    %371 = arith.addf %369, %370 : vector<2x128xf32>
    %372 = arith.addf %371, %26 : vector<2x128xf32>
    %373 = arith.negf %372 : vector<2x128xf32>
    %374 = math.exp %373 : vector<2x128xf32>
    %cst_114 = arith.constant 1.000000e+00 : f32
    %375 = vector.broadcast %cst_114 : f32 to vector<2x128xf32>
    %376 = arith.addf %375, %374 : vector<2x128xf32>
    %377 = arith.divf %375, %376 : vector<2x128xf32>
    %378 = vector.extract_strided_slice %377 {offsets = [0, 0], sizes = [2, 32], strides = [1, 1]} : vector<2x128xf32> to vector<2x32xf32>
    %379 = vector.extract_strided_slice %377 {offsets = [0, 32], sizes = [2, 32], strides = [1, 1]} : vector<2x128xf32> to vector<2x32xf32>
    %380 = vector.extract_strided_slice %377 {offsets = [0, 64], sizes = [2, 32], strides = [1, 1]} : vector<2x128xf32> to vector<2x32xf32>
    %cst_115 = arith.constant 2.000000e+00 : f32
    %381 = vector.broadcast %cst_115 : f32 to vector<2x32xf32>
    %382 = arith.mulf %381, %380 : vector<2x32xf32>
    %cst_116 = arith.constant 1.000000e+00 : f32
    %383 = vector.broadcast %cst_116 : f32 to vector<2x32xf32>
    %384 = arith.subf %382, %383 : vector<2x32xf32>
    %385 = vector.extract_strided_slice %377 {offsets = [0, 96], sizes = [2, 32], strides = [1, 1]} : vector<2x128xf32> to vector<2x32xf32>
    %386 = arith.mulf %379, %320 : vector<2x32xf32>
    %387 = arith.mulf %378, %384 : vector<2x32xf32>
    %388 = arith.addf %386, %387 : vector<2x32xf32>
    %389 = math.tanh %388 : vector<2x32xf32>
    %390 = arith.mulf %385, %389 : vector<2x32xf32>
    %c4 = arith.constant 4 : index
    %c0_117 = arith.constant 0 : index
    %c0_118 = arith.constant 0 : index
    %391 = vector.load %arg8[%c4, %c0_117, %c0_118] : memref<16x2x32xf32, #tpu.memory_space<vmem>>, vector<1x2x32xf32>
    %392 = vector.shape_cast %391 : vector<1x2x32xf32> to vector<2x32xf32>
    %393 = vector.shape_cast %390 : vector<2x32xf32> to vector<1x2x32xf32>
    tpu.vector_store %arg8[%c4, %c0_117, %c0_118], %393 {strides = array<i32>} : memref<16x2x32xf32, #tpu.memory_space<vmem>>, vector<1x2x32xf32>,
    %cst_119 = arith.constant dense<0.000000e+00> : vector<2x128xf32>
    %394 = tpu.matmul %368, %10, %cst_119 {dimension_numbers = #tpu.dot_dimension_numbers<[1], [0], [0], [1], [0, 0, 1, 1], [], []>} : vector<2x32xf32>, vector<32x128xf32>, vector<2x128xf32> -> vector<2x128xf32>
    %cst_120 = arith.constant dense<0.000000e+00> : vector<2x128xf32>
    %395 = tpu.matmul %347, %16, %cst_120 {dimension_numbers = #tpu.dot_dimension_numbers<[1], [0], [0], [1], [0, 0, 1, 1], [], []>} : vector<2x32xf32>, vector<32x128xf32>, vector<2x128xf32> -> vector<2x128xf32>
    %396 = arith.addf %394, %395 : vector<2x128xf32>
    %397 = arith.addf %396, %22 : vector<2x128xf32>
    %398 = arith.negf %397 : vector<2x128xf32>
    %399 = math.exp %398 : vector<2x128xf32>
    %cst_121 = arith.constant 1.000000e+00 : f32
    %400 = vector.broadcast %cst_121 : f32 to vector<2x128xf32>
    %401 = arith.addf %400, %399 : vector<2x128xf32>
    %402 = arith.divf %400, %401 : vector<2x128xf32>
    %403 = vector.extract_strided_slice %402 {offsets = [0, 0], sizes = [2, 32], strides = [1, 1]} : vector<2x128xf32> to vector<2x32xf32>
    %404 = vector.extract_strided_slice %402 {offsets = [0, 32], sizes = [2, 32], strides = [1, 1]} : vector<2x128xf32> to vector<2x32xf32>
    %405 = vector.extract_strided_slice %402 {offsets = [0, 64], sizes = [2, 32], strides = [1, 1]} : vector<2x128xf32> to vector<2x32xf32>
    %cst_122 = arith.constant 2.000000e+00 : f32
    %406 = vector.broadcast %cst_122 : f32 to vector<2x32xf32>
    %407 = arith.mulf %406, %405 : vector<2x32xf32>
    %cst_123 = arith.constant 1.000000e+00 : f32
    %408 = vector.broadcast %cst_123 : f32 to vector<2x32xf32>
    %409 = arith.subf %407, %408 : vector<2x32xf32>
    %410 = vector.extract_strided_slice %402 {offsets = [0, 96], sizes = [2, 32], strides = [1, 1]} : vector<2x128xf32> to vector<2x32xf32>
    %411 = arith.mulf %404, %345 : vector<2x32xf32>
    %412 = arith.mulf %403, %409 : vector<2x32xf32>
    %413 = arith.addf %411, %412 : vector<2x32xf32>
    %414 = math.tanh %413 : vector<2x32xf32>
    %415 = arith.mulf %410, %414 : vector<2x32xf32>
    %416 = vector.extract_strided_slice %8 {offsets = [12, 0], sizes = [2, 128], strides = [1, 1]} : vector<32x128xf32> to vector<2x128xf32>
    %cst_124 = arith.constant dense<0.000000e+00> : vector<2x128xf32>
    %417 = tpu.matmul %368, %14, %cst_124 {dimension_numbers = #tpu.dot_dimension_numbers<[1], [0], [0], [1], [0, 0, 1, 1], [], []>} : vector<2x32xf32>, vector<32x128xf32>, vector<2x128xf32> -> vector<2x128xf32>
    %418 = arith.addf %416, %417 : vector<2x128xf32>
    %419 = arith.negf %418 : vector<2x128xf32>
    %420 = math.exp %419 : vector<2x128xf32>
    %cst_125 = arith.constant 1.000000e+00 : f32
    %421 = vector.broadcast %cst_125 : f32 to vector<2x128xf32>
    %422 = arith.addf %421, %420 : vector<2x128xf32>
    %423 = arith.divf %421, %422 : vector<2x128xf32>
    %424 = vector.extract_strided_slice %423 {offsets = [0, 0], sizes = [2, 32], strides = [1, 1]} : vector<2x128xf32> to vector<2x32xf32>
    %425 = vector.extract_strided_slice %423 {offsets = [0, 32], sizes = [2, 32], strides = [1, 1]} : vector<2x128xf32> to vector<2x32xf32>
    %426 = vector.extract_strided_slice %423 {offsets = [0, 64], sizes = [2, 32], strides = [1, 1]} : vector<2x128xf32> to vector<2x32xf32>
    %cst_126 = arith.constant 2.000000e+00 : f32
    %427 = vector.broadcast %cst_126 : f32 to vector<2x32xf32>
    %428 = arith.mulf %427, %426 : vector<2x32xf32>
    %cst_127 = arith.constant 1.000000e+00 : f32
    %429 = vector.broadcast %cst_127 : f32 to vector<2x32xf32>
    %430 = arith.subf %428, %429 : vector<2x32xf32>
    %431 = vector.extract_strided_slice %423 {offsets = [0, 96], sizes = [2, 32], strides = [1, 1]} : vector<2x128xf32> to vector<2x32xf32>
    %432 = arith.mulf %425, %366 : vector<2x32xf32>
    %433 = arith.mulf %424, %430 : vector<2x32xf32>
    %434 = arith.addf %432, %433 : vector<2x32xf32>
    %435 = math.tanh %434 : vector<2x32xf32>
    %436 = arith.mulf %431, %435 : vector<2x32xf32>
    %cst_128 = arith.constant dense<0.000000e+00> : vector<2x128xf32>
    %437 = tpu.matmul %415, %12, %cst_128 {dimension_numbers = #tpu.dot_dimension_numbers<[1], [0], [0], [1], [0, 0, 1, 1], [], []>} : vector<2x32xf32>, vector<32x128xf32>, vector<2x128xf32> -> vector<2x128xf32>
    %cst_129 = arith.constant dense<0.000000e+00> : vector<2x128xf32>
    %438 = tpu.matmul %390, %18, %cst_129 {dimension_numbers = #tpu.dot_dimension_numbers<[1], [0], [0], [1], [0, 0, 1, 1], [], []>} : vector<2x32xf32>, vector<32x128xf32>, vector<2x128xf32> -> vector<2x128xf32>
    %439 = arith.addf %437, %438 : vector<2x128xf32>
    %440 = arith.addf %439, %26 : vector<2x128xf32>
    %441 = arith.negf %440 : vector<2x128xf32>
    %442 = math.exp %441 : vector<2x128xf32>
    %cst_130 = arith.constant 1.000000e+00 : f32
    %443 = vector.broadcast %cst_130 : f32 to vector<2x128xf32>
    %444 = arith.addf %443, %442 : vector<2x128xf32>
    %445 = arith.divf %443, %444 : vector<2x128xf32>
    %446 = vector.extract_strided_slice %445 {offsets = [0, 0], sizes = [2, 32], strides = [1, 1]} : vector<2x128xf32> to vector<2x32xf32>
    %447 = vector.extract_strided_slice %445 {offsets = [0, 32], sizes = [2, 32], strides = [1, 1]} : vector<2x128xf32> to vector<2x32xf32>
    %448 = vector.extract_strided_slice %445 {offsets = [0, 64], sizes = [2, 32], strides = [1, 1]} : vector<2x128xf32> to vector<2x32xf32>
    %cst_131 = arith.constant 2.000000e+00 : f32
    %449 = vector.broadcast %cst_131 : f32 to vector<2x32xf32>
    %450 = arith.mulf %449, %448 : vector<2x32xf32>
    %cst_132 = arith.constant 1.000000e+00 : f32
    %451 = vector.broadcast %cst_132 : f32 to vector<2x32xf32>
    %452 = arith.subf %450, %451 : vector<2x32xf32>
    %453 = vector.extract_strided_slice %445 {offsets = [0, 96], sizes = [2, 32], strides = [1, 1]} : vector<2x128xf32> to vector<2x32xf32>
    %454 = arith.mulf %447, %388 : vector<2x32xf32>
    %455 = arith.mulf %446, %452 : vector<2x32xf32>
    %456 = arith.addf %454, %455 : vector<2x32xf32>
    %457 = math.tanh %456 : vector<2x32xf32>
    %458 = arith.mulf %453, %457 : vector<2x32xf32>
    %c5 = arith.constant 5 : index
    %c0_133 = arith.constant 0 : index
    %c0_134 = arith.constant 0 : index
    %459 = vector.load %arg8[%c5, %c0_133, %c0_134] : memref<16x2x32xf32, #tpu.memory_space<vmem>>, vector<1x2x32xf32>
    %460 = vector.shape_cast %459 : vector<1x2x32xf32> to vector<2x32xf32>
    %461 = vector.shape_cast %458 : vector<2x32xf32> to vector<1x2x32xf32>
    tpu.vector_store %arg8[%c5, %c0_133, %c0_134], %461 {strides = array<i32>} : memref<16x2x32xf32, #tpu.memory_space<vmem>>, vector<1x2x32xf32>,
    %cst_135 = arith.constant dense<0.000000e+00> : vector<2x128xf32>
    %462 = tpu.matmul %436, %10, %cst_135 {dimension_numbers = #tpu.dot_dimension_numbers<[1], [0], [0], [1], [0, 0, 1, 1], [], []>} : vector<2x32xf32>, vector<32x128xf32>, vector<2x128xf32> -> vector<2x128xf32>
    %cst_136 = arith.constant dense<0.000000e+00> : vector<2x128xf32>
    %463 = tpu.matmul %415, %16, %cst_136 {dimension_numbers = #tpu.dot_dimension_numbers<[1], [0], [0], [1], [0, 0, 1, 1], [], []>} : vector<2x32xf32>, vector<32x128xf32>, vector<2x128xf32> -> vector<2x128xf32>
    %464 = arith.addf %462, %463 : vector<2x128xf32>
    %465 = arith.addf %464, %22 : vector<2x128xf32>
    %466 = arith.negf %465 : vector<2x128xf32>
    %467 = math.exp %466 : vector<2x128xf32>
    %cst_137 = arith.constant 1.000000e+00 : f32
    %468 = vector.broadcast %cst_137 : f32 to vector<2x128xf32>
    %469 = arith.addf %468, %467 : vector<2x128xf32>
    %470 = arith.divf %468, %469 : vector<2x128xf32>
    %471 = vector.extract_strided_slice %470 {offsets = [0, 0], sizes = [2, 32], strides = [1, 1]} : vector<2x128xf32> to vector<2x32xf32>
    %472 = vector.extract_strided_slice %470 {offsets = [0, 32], sizes = [2, 32], strides = [1, 1]} : vector<2x128xf32> to vector<2x32xf32>
    %473 = vector.extract_strided_slice %470 {offsets = [0, 64], sizes = [2, 32], strides = [1, 1]} : vector<2x128xf32> to vector<2x32xf32>
    %cst_138 = arith.constant 2.000000e+00 : f32
    %474 = vector.broadcast %cst_138 : f32 to vector<2x32xf32>
    %475 = arith.mulf %474, %473 : vector<2x32xf32>
    %cst_139 = arith.constant 1.000000e+00 : f32
    %476 = vector.broadcast %cst_139 : f32 to vector<2x32xf32>
    %477 = arith.subf %475, %476 : vector<2x32xf32>
    %478 = vector.extract_strided_slice %470 {offsets = [0, 96], sizes = [2, 32], strides = [1, 1]} : vector<2x128xf32> to vector<2x32xf32>
    %479 = arith.mulf %472, %413 : vector<2x32xf32>
    %480 = arith.mulf %471, %477 : vector<2x32xf32>
    %481 = arith.addf %479, %480 : vector<2x32xf32>
    %482 = math.tanh %481 : vector<2x32xf32>
    %483 = arith.mulf %478, %482 : vector<2x32xf32>
    %484 = vector.extract_strided_slice %8 {offsets = [14, 0], sizes = [2, 128], strides = [1, 1]} : vector<32x128xf32> to vector<2x128xf32>
    %cst_140 = arith.constant dense<0.000000e+00> : vector<2x128xf32>
    %485 = tpu.matmul %436, %14, %cst_140 {dimension_numbers = #tpu.dot_dimension_numbers<[1], [0], [0], [1], [0, 0, 1, 1], [], []>} : vector<2x32xf32>, vector<32x128xf32>, vector<2x128xf32> -> vector<2x128xf32>
    %486 = arith.addf %484, %485 : vector<2x128xf32>
    %487 = arith.negf %486 : vector<2x128xf32>
    %488 = math.exp %487 : vector<2x128xf32>
    %cst_141 = arith.constant 1.000000e+00 : f32
    %489 = vector.broadcast %cst_141 : f32 to vector<2x128xf32>
    %490 = arith.addf %489, %488 : vector<2x128xf32>
    %491 = arith.divf %489, %490 : vector<2x128xf32>
    %492 = vector.extract_strided_slice %491 {offsets = [0, 0], sizes = [2, 32], strides = [1, 1]} : vector<2x128xf32> to vector<2x32xf32>
    %493 = vector.extract_strided_slice %491 {offsets = [0, 32], sizes = [2, 32], strides = [1, 1]} : vector<2x128xf32> to vector<2x32xf32>
    %494 = vector.extract_strided_slice %491 {offsets = [0, 64], sizes = [2, 32], strides = [1, 1]} : vector<2x128xf32> to vector<2x32xf32>
    %cst_142 = arith.constant 2.000000e+00 : f32
    %495 = vector.broadcast %cst_142 : f32 to vector<2x32xf32>
    %496 = arith.mulf %495, %494 : vector<2x32xf32>
    %cst_143 = arith.constant 1.000000e+00 : f32
    %497 = vector.broadcast %cst_143 : f32 to vector<2x32xf32>
    %498 = arith.subf %496, %497 : vector<2x32xf32>
    %499 = vector.extract_strided_slice %491 {offsets = [0, 96], sizes = [2, 32], strides = [1, 1]} : vector<2x128xf32> to vector<2x32xf32>
    %500 = arith.mulf %493, %434 : vector<2x32xf32>
    %501 = arith.mulf %492, %498 : vector<2x32xf32>
    %502 = arith.addf %500, %501 : vector<2x32xf32>
    %503 = math.tanh %502 : vector<2x32xf32>
    %504 = arith.mulf %499, %503 : vector<2x32xf32>
    %cst_144 = arith.constant dense<0.000000e+00> : vector<2x128xf32>
    %505 = tpu.matmul %483, %12, %cst_144 {dimension_numbers = #tpu.dot_dimension_numbers<[1], [0], [0], [1], [0, 0, 1, 1], [], []>} : vector<2x32xf32>, vector<32x128xf32>, vector<2x128xf32> -> vector<2x128xf32>
    %cst_145 = arith.constant dense<0.000000e+00> : vector<2x128xf32>
    %506 = tpu.matmul %458, %18, %cst_145 {dimension_numbers = #tpu.dot_dimension_numbers<[1], [0], [0], [1], [0, 0, 1, 1], [], []>} : vector<2x32xf32>, vector<32x128xf32>, vector<2x128xf32> -> vector<2x128xf32>
    %507 = arith.addf %505, %506 : vector<2x128xf32>
    %508 = arith.addf %507, %26 : vector<2x128xf32>
    %509 = arith.negf %508 : vector<2x128xf32>
    %510 = math.exp %509 : vector<2x128xf32>
    %cst_146 = arith.constant 1.000000e+00 : f32
    %511 = vector.broadcast %cst_146 : f32 to vector<2x128xf32>
    %512 = arith.addf %511, %510 : vector<2x128xf32>
    %513 = arith.divf %511, %512 : vector<2x128xf32>
    %514 = vector.extract_strided_slice %513 {offsets = [0, 0], sizes = [2, 32], strides = [1, 1]} : vector<2x128xf32> to vector<2x32xf32>
    %515 = vector.extract_strided_slice %513 {offsets = [0, 32], sizes = [2, 32], strides = [1, 1]} : vector<2x128xf32> to vector<2x32xf32>
    %516 = vector.extract_strided_slice %513 {offsets = [0, 64], sizes = [2, 32], strides = [1, 1]} : vector<2x128xf32> to vector<2x32xf32>
    %cst_147 = arith.constant 2.000000e+00 : f32
    %517 = vector.broadcast %cst_147 : f32 to vector<2x32xf32>
    %518 = arith.mulf %517, %516 : vector<2x32xf32>
    %cst_148 = arith.constant 1.000000e+00 : f32
    %519 = vector.broadcast %cst_148 : f32 to vector<2x32xf32>
    %520 = arith.subf %518, %519 : vector<2x32xf32>
    %521 = vector.extract_strided_slice %513 {offsets = [0, 96], sizes = [2, 32], strides = [1, 1]} : vector<2x128xf32> to vector<2x32xf32>
    %522 = arith.mulf %515, %456 : vector<2x32xf32>
    %523 = arith.mulf %514, %520 : vector<2x32xf32>
    %524 = arith.addf %522, %523 : vector<2x32xf32>
    %525 = math.tanh %524 : vector<2x32xf32>
    %526 = arith.mulf %521, %525 : vector<2x32xf32>
    %c6 = arith.constant 6 : index
    %c0_149 = arith.constant 0 : index
    %c0_150 = arith.constant 0 : index
    %527 = vector.load %arg8[%c6, %c0_149, %c0_150] : memref<16x2x32xf32, #tpu.memory_space<vmem>>, vector<1x2x32xf32>
    %528 = vector.shape_cast %527 : vector<1x2x32xf32> to vector<2x32xf32>
    %529 = vector.shape_cast %526 : vector<2x32xf32> to vector<1x2x32xf32>
    tpu.vector_store %arg8[%c6, %c0_149, %c0_150], %529 {strides = array<i32>} : memref<16x2x32xf32, #tpu.memory_space<vmem>>, vector<1x2x32xf32>,
    %cst_151 = arith.constant dense<0.000000e+00> : vector<2x128xf32>
    %530 = tpu.matmul %504, %10, %cst_151 {dimension_numbers = #tpu.dot_dimension_numbers<[1], [0], [0], [1], [0, 0, 1, 1], [], []>} : vector<2x32xf32>, vector<32x128xf32>, vector<2x128xf32> -> vector<2x128xf32>
    %cst_152 = arith.constant dense<0.000000e+00> : vector<2x128xf32>
    %531 = tpu.matmul %483, %16, %cst_152 {dimension_numbers = #tpu.dot_dimension_numbers<[1], [0], [0], [1], [0, 0, 1, 1], [], []>} : vector<2x32xf32>, vector<32x128xf32>, vector<2x128xf32> -> vector<2x128xf32>
    %532 = arith.addf %530, %531 : vector<2x128xf32>
    %533 = arith.addf %532, %22 : vector<2x128xf32>
    %534 = arith.negf %533 : vector<2x128xf32>
    %535 = math.exp %534 : vector<2x128xf32>
    %cst_153 = arith.constant 1.000000e+00 : f32
    %536 = vector.broadcast %cst_153 : f32 to vector<2x128xf32>
    %537 = arith.addf %536, %535 : vector<2x128xf32>
    %538 = arith.divf %536, %537 : vector<2x128xf32>
    %539 = vector.extract_strided_slice %538 {offsets = [0, 0], sizes = [2, 32], strides = [1, 1]} : vector<2x128xf32> to vector<2x32xf32>
    %540 = vector.extract_strided_slice %538 {offsets = [0, 32], sizes = [2, 32], strides = [1, 1]} : vector<2x128xf32> to vector<2x32xf32>
    %541 = vector.extract_strided_slice %538 {offsets = [0, 64], sizes = [2, 32], strides = [1, 1]} : vector<2x128xf32> to vector<2x32xf32>
    %cst_154 = arith.constant 2.000000e+00 : f32
    %542 = vector.broadcast %cst_154 : f32 to vector<2x32xf32>
    %543 = arith.mulf %542, %541 : vector<2x32xf32>
    %cst_155 = arith.constant 1.000000e+00 : f32
    %544 = vector.broadcast %cst_155 : f32 to vector<2x32xf32>
    %545 = arith.subf %543, %544 : vector<2x32xf32>
    %546 = vector.extract_strided_slice %538 {offsets = [0, 96], sizes = [2, 32], strides = [1, 1]} : vector<2x128xf32> to vector<2x32xf32>
    %547 = arith.mulf %540, %481 : vector<2x32xf32>
    %548 = arith.mulf %539, %545 : vector<2x32xf32>
    %549 = arith.addf %547, %548 : vector<2x32xf32>
    %550 = math.tanh %549 : vector<2x32xf32>
    %551 = arith.mulf %546, %550 : vector<2x32xf32>
    %552 = vector.extract_strided_slice %8 {offsets = [16, 0], sizes = [2, 128], strides = [1, 1]} : vector<32x128xf32> to vector<2x128xf32>
    %cst_156 = arith.constant dense<0.000000e+00> : vector<2x128xf32>
    %553 = tpu.matmul %504, %14, %cst_156 {dimension_numbers = #tpu.dot_dimension_numbers<[1], [0], [0], [1], [0, 0, 1, 1], [], []>} : vector<2x32xf32>, vector<32x128xf32>, vector<2x128xf32> -> vector<2x128xf32>
    %554 = arith.addf %552, %553 : vector<2x128xf32>
    %555 = arith.negf %554 : vector<2x128xf32>
    %556 = math.exp %555 : vector<2x128xf32>
    %cst_157 = arith.constant 1.000000e+00 : f32
    %557 = vector.broadcast %cst_157 : f32 to vector<2x128xf32>
    %558 = arith.addf %557, %556 : vector<2x128xf32>
    %559 = arith.divf %557, %558 : vector<2x128xf32>
    %560 = vector.extract_strided_slice %559 {offsets = [0, 0], sizes = [2, 32], strides = [1, 1]} : vector<2x128xf32> to vector<2x32xf32>
    %561 = vector.extract_strided_slice %559 {offsets = [0, 32], sizes = [2, 32], strides = [1, 1]} : vector<2x128xf32> to vector<2x32xf32>
    %562 = vector.extract_strided_slice %559 {offsets = [0, 64], sizes = [2, 32], strides = [1, 1]} : vector<2x128xf32> to vector<2x32xf32>
    %cst_158 = arith.constant 2.000000e+00 : f32
    %563 = vector.broadcast %cst_158 : f32 to vector<2x32xf32>
    %564 = arith.mulf %563, %562 : vector<2x32xf32>
    %cst_159 = arith.constant 1.000000e+00 : f32
    %565 = vector.broadcast %cst_159 : f32 to vector<2x32xf32>
    %566 = arith.subf %564, %565 : vector<2x32xf32>
    %567 = vector.extract_strided_slice %559 {offsets = [0, 96], sizes = [2, 32], strides = [1, 1]} : vector<2x128xf32> to vector<2x32xf32>
    %568 = arith.mulf %561, %502 : vector<2x32xf32>
    %569 = arith.mulf %560, %566 : vector<2x32xf32>
    %570 = arith.addf %568, %569 : vector<2x32xf32>
    %571 = math.tanh %570 : vector<2x32xf32>
    %572 = arith.mulf %567, %571 : vector<2x32xf32>
    %cst_160 = arith.constant dense<0.000000e+00> : vector<2x128xf32>
    %573 = tpu.matmul %551, %12, %cst_160 {dimension_numbers = #tpu.dot_dimension_numbers<[1], [0], [0], [1], [0, 0, 1, 1], [], []>} : vector<2x32xf32>, vector<32x128xf32>, vector<2x128xf32> -> vector<2x128xf32>
    %cst_161 = arith.constant dense<0.000000e+00> : vector<2x128xf32>
    %574 = tpu.matmul %526, %18, %cst_161 {dimension_numbers = #tpu.dot_dimension_numbers<[1], [0], [0], [1], [0, 0, 1, 1], [], []>} : vector<2x32xf32>, vector<32x128xf32>, vector<2x128xf32> -> vector<2x128xf32>
    %575 = arith.addf %573, %574 : vector<2x128xf32>
    %576 = arith.addf %575, %26 : vector<2x128xf32>
    %577 = arith.negf %576 : vector<2x128xf32>
    %578 = math.exp %577 : vector<2x128xf32>
    %cst_162 = arith.constant 1.000000e+00 : f32
    %579 = vector.broadcast %cst_162 : f32 to vector<2x128xf32>
    %580 = arith.addf %579, %578 : vector<2x128xf32>
    %581 = arith.divf %579, %580 : vector<2x128xf32>
    %582 = vector.extract_strided_slice %581 {offsets = [0, 0], sizes = [2, 32], strides = [1, 1]} : vector<2x128xf32> to vector<2x32xf32>
    %583 = vector.extract_strided_slice %581 {offsets = [0, 32], sizes = [2, 32], strides = [1, 1]} : vector<2x128xf32> to vector<2x32xf32>
    %584 = vector.extract_strided_slice %581 {offsets = [0, 64], sizes = [2, 32], strides = [1, 1]} : vector<2x128xf32> to vector<2x32xf32>
    %cst_163 = arith.constant 2.000000e+00 : f32
    %585 = vector.broadcast %cst_163 : f32 to vector<2x32xf32>
    %586 = arith.mulf %585, %584 : vector<2x32xf32>
    %cst_164 = arith.constant 1.000000e+00 : f32
    %587 = vector.broadcast %cst_164 : f32 to vector<2x32xf32>
    %588 = arith.subf %586, %587 : vector<2x32xf32>
    %589 = vector.extract_strided_slice %581 {offsets = [0, 96], sizes = [2, 32], strides = [1, 1]} : vector<2x128xf32> to vector<2x32xf32>
    %590 = arith.mulf %583, %524 : vector<2x32xf32>
    %591 = arith.mulf %582, %588 : vector<2x32xf32>
    %592 = arith.addf %590, %591 : vector<2x32xf32>
    %593 = math.tanh %592 : vector<2x32xf32>
    %594 = arith.mulf %589, %593 : vector<2x32xf32>
    %c7 = arith.constant 7 : index
    %c0_165 = arith.constant 0 : index
    %c0_166 = arith.constant 0 : index
    %595 = vector.load %arg8[%c7, %c0_165, %c0_166] : memref<16x2x32xf32, #tpu.memory_space<vmem>>, vector<1x2x32xf32>
    %596 = vector.shape_cast %595 : vector<1x2x32xf32> to vector<2x32xf32>
    %597 = vector.shape_cast %594 : vector<2x32xf32> to vector<1x2x32xf32>
    tpu.vector_store %arg8[%c7, %c0_165, %c0_166], %597 {strides = array<i32>} : memref<16x2x32xf32, #tpu.memory_space<vmem>>, vector<1x2x32xf32>,
    %cst_167 = arith.constant dense<0.000000e+00> : vector<2x128xf32>
    %598 = tpu.matmul %572, %10, %cst_167 {dimension_numbers = #tpu.dot_dimension_numbers<[1], [0], [0], [1], [0, 0, 1, 1], [], []>} : vector<2x32xf32>, vector<32x128xf32>, vector<2x128xf32> -> vector<2x128xf32>
    %cst_168 = arith.constant dense<0.000000e+00> : vector<2x128xf32>
    %599 = tpu.matmul %551, %16, %cst_168 {dimension_numbers = #tpu.dot_dimension_numbers<[1], [0], [0], [1], [0, 0, 1, 1], [], []>} : vector<2x32xf32>, vector<32x128xf32>, vector<2x128xf32> -> vector<2x128xf32>
    %600 = arith.addf %598, %599 : vector<2x128xf32>
    %601 = arith.addf %600, %22 : vector<2x128xf32>
    %602 = arith.negf %601 : vector<2x128xf32>
    %603 = math.exp %602 : vector<2x128xf32>
    %cst_169 = arith.constant 1.000000e+00 : f32
    %604 = vector.broadcast %cst_169 : f32 to vector<2x128xf32>
    %605 = arith.addf %604, %603 : vector<2x128xf32>
    %606 = arith.divf %604, %605 : vector<2x128xf32>
    %607 = vector.extract_strided_slice %606 {offsets = [0, 0], sizes = [2, 32], strides = [1, 1]} : vector<2x128xf32> to vector<2x32xf32>
    %608 = vector.extract_strided_slice %606 {offsets = [0, 32], sizes = [2, 32], strides = [1, 1]} : vector<2x128xf32> to vector<2x32xf32>
    %609 = vector.extract_strided_slice %606 {offsets = [0, 64], sizes = [2, 32], strides = [1, 1]} : vector<2x128xf32> to vector<2x32xf32>
    %cst_170 = arith.constant 2.000000e+00 : f32
    %610 = vector.broadcast %cst_170 : f32 to vector<2x32xf32>
    %611 = arith.mulf %610, %609 : vector<2x32xf32>
    %cst_171 = arith.constant 1.000000e+00 : f32
    %612 = vector.broadcast %cst_171 : f32 to vector<2x32xf32>
    %613 = arith.subf %611, %612 : vector<2x32xf32>
    %614 = vector.extract_strided_slice %606 {offsets = [0, 96], sizes = [2, 32], strides = [1, 1]} : vector<2x128xf32> to vector<2x32xf32>
    %615 = arith.mulf %608, %549 : vector<2x32xf32>
    %616 = arith.mulf %607, %613 : vector<2x32xf32>
    %617 = arith.addf %615, %616 : vector<2x32xf32>
    %618 = math.tanh %617 : vector<2x32xf32>
    %619 = arith.mulf %614, %618 : vector<2x32xf32>
    %620 = vector.extract_strided_slice %8 {offsets = [18, 0], sizes = [2, 128], strides = [1, 1]} : vector<32x128xf32> to vector<2x128xf32>
    %cst_172 = arith.constant dense<0.000000e+00> : vector<2x128xf32>
    %621 = tpu.matmul %572, %14, %cst_172 {dimension_numbers = #tpu.dot_dimension_numbers<[1], [0], [0], [1], [0, 0, 1, 1], [], []>} : vector<2x32xf32>, vector<32x128xf32>, vector<2x128xf32> -> vector<2x128xf32>
    %622 = arith.addf %620, %621 : vector<2x128xf32>
    %623 = arith.negf %622 : vector<2x128xf32>
    %624 = math.exp %623 : vector<2x128xf32>
    %cst_173 = arith.constant 1.000000e+00 : f32
    %625 = vector.broadcast %cst_173 : f32 to vector<2x128xf32>
    %626 = arith.addf %625, %624 : vector<2x128xf32>
    %627 = arith.divf %625, %626 : vector<2x128xf32>
    %628 = vector.extract_strided_slice %627 {offsets = [0, 0], sizes = [2, 32], strides = [1, 1]} : vector<2x128xf32> to vector<2x32xf32>
    %629 = vector.extract_strided_slice %627 {offsets = [0, 32], sizes = [2, 32], strides = [1, 1]} : vector<2x128xf32> to vector<2x32xf32>
    %630 = vector.extract_strided_slice %627 {offsets = [0, 64], sizes = [2, 32], strides = [1, 1]} : vector<2x128xf32> to vector<2x32xf32>
    %cst_174 = arith.constant 2.000000e+00 : f32
    %631 = vector.broadcast %cst_174 : f32 to vector<2x32xf32>
    %632 = arith.mulf %631, %630 : vector<2x32xf32>
    %cst_175 = arith.constant 1.000000e+00 : f32
    %633 = vector.broadcast %cst_175 : f32 to vector<2x32xf32>
    %634 = arith.subf %632, %633 : vector<2x32xf32>
    %635 = vector.extract_strided_slice %627 {offsets = [0, 96], sizes = [2, 32], strides = [1, 1]} : vector<2x128xf32> to vector<2x32xf32>
    %636 = arith.mulf %629, %570 : vector<2x32xf32>
    %637 = arith.mulf %628, %634 : vector<2x32xf32>
    %638 = arith.addf %636, %637 : vector<2x32xf32>
    %639 = math.tanh %638 : vector<2x32xf32>
    %640 = arith.mulf %635, %639 : vector<2x32xf32>
    %cst_176 = arith.constant dense<0.000000e+00> : vector<2x128xf32>
    %641 = tpu.matmul %619, %12, %cst_176 {dimension_numbers = #tpu.dot_dimension_numbers<[1], [0], [0], [1], [0, 0, 1, 1], [], []>} : vector<2x32xf32>, vector<32x128xf32>, vector<2x128xf32> -> vector<2x128xf32>
    %cst_177 = arith.constant dense<0.000000e+00> : vector<2x128xf32>
    %642 = tpu.matmul %594, %18, %cst_177 {dimension_numbers = #tpu.dot_dimension_numbers<[1], [0], [0], [1], [0, 0, 1, 1], [], []>} : vector<2x32xf32>, vector<32x128xf32>, vector<2x128xf32> -> vector<2x128xf32>
    %643 = arith.addf %641, %642 : vector<2x128xf32>
    %644 = arith.addf %643, %26 : vector<2x128xf32>
    %645 = arith.negf %644 : vector<2x128xf32>
    %646 = math.exp %645 : vector<2x128xf32>
    %cst_178 = arith.constant 1.000000e+00 : f32
    %647 = vector.broadcast %cst_178 : f32 to vector<2x128xf32>
    %648 = arith.addf %647, %646 : vector<2x128xf32>
    %649 = arith.divf %647, %648 : vector<2x128xf32>
    %650 = vector.extract_strided_slice %649 {offsets = [0, 0], sizes = [2, 32], strides = [1, 1]} : vector<2x128xf32> to vector<2x32xf32>
    %651 = vector.extract_strided_slice %649 {offsets = [0, 32], sizes = [2, 32], strides = [1, 1]} : vector<2x128xf32> to vector<2x32xf32>
    %652 = vector.extract_strided_slice %649 {offsets = [0, 64], sizes = [2, 32], strides = [1, 1]} : vector<2x128xf32> to vector<2x32xf32>
    %cst_179 = arith.constant 2.000000e+00 : f32
    %653 = vector.broadcast %cst_179 : f32 to vector<2x32xf32>
    %654 = arith.mulf %653, %652 : vector<2x32xf32>
    %cst_180 = arith.constant 1.000000e+00 : f32
    %655 = vector.broadcast %cst_180 : f32 to vector<2x32xf32>
    %656 = arith.subf %654, %655 : vector<2x32xf32>
    %657 = vector.extract_strided_slice %649 {offsets = [0, 96], sizes = [2, 32], strides = [1, 1]} : vector<2x128xf32> to vector<2x32xf32>
    %658 = arith.mulf %651, %592 : vector<2x32xf32>
    %659 = arith.mulf %650, %656 : vector<2x32xf32>
    %660 = arith.addf %658, %659 : vector<2x32xf32>
    %661 = math.tanh %660 : vector<2x32xf32>
    %662 = arith.mulf %657, %661 : vector<2x32xf32>
    %c8 = arith.constant 8 : index
    %c0_181 = arith.constant 0 : index
    %c0_182 = arith.constant 0 : index
    %663 = vector.load %arg8[%c8, %c0_181, %c0_182] : memref<16x2x32xf32, #tpu.memory_space<vmem>>, vector<1x2x32xf32>
    %664 = vector.shape_cast %663 : vector<1x2x32xf32> to vector<2x32xf32>
    %665 = vector.shape_cast %662 : vector<2x32xf32> to vector<1x2x32xf32>
    tpu.vector_store %arg8[%c8, %c0_181, %c0_182], %665 {strides = array<i32>} : memref<16x2x32xf32, #tpu.memory_space<vmem>>, vector<1x2x32xf32>,
    %cst_183 = arith.constant dense<0.000000e+00> : vector<2x128xf32>
    %666 = tpu.matmul %640, %10, %cst_183 {dimension_numbers = #tpu.dot_dimension_numbers<[1], [0], [0], [1], [0, 0, 1, 1], [], []>} : vector<2x32xf32>, vector<32x128xf32>, vector<2x128xf32> -> vector<2x128xf32>
    %cst_184 = arith.constant dense<0.000000e+00> : vector<2x128xf32>
    %667 = tpu.matmul %619, %16, %cst_184 {dimension_numbers = #tpu.dot_dimension_numbers<[1], [0], [0], [1], [0, 0, 1, 1], [], []>} : vector<2x32xf32>, vector<32x128xf32>, vector<2x128xf32> -> vector<2x128xf32>
    %668 = arith.addf %666, %667 : vector<2x128xf32>
    %669 = arith.addf %668, %22 : vector<2x128xf32>
    %670 = arith.negf %669 : vector<2x128xf32>
    %671 = math.exp %670 : vector<2x128xf32>
    %cst_185 = arith.constant 1.000000e+00 : f32
    %672 = vector.broadcast %cst_185 : f32 to vector<2x128xf32>
    %673 = arith.addf %672, %671 : vector<2x128xf32>
    %674 = arith.divf %672, %673 : vector<2x128xf32>
    %675 = vector.extract_strided_slice %674 {offsets = [0, 0], sizes = [2, 32], strides = [1, 1]} : vector<2x128xf32> to vector<2x32xf32>
    %676 = vector.extract_strided_slice %674 {offsets = [0, 32], sizes = [2, 32], strides = [1, 1]} : vector<2x128xf32> to vector<2x32xf32>
    %677 = vector.extract_strided_slice %674 {offsets = [0, 64], sizes = [2, 32], strides = [1, 1]} : vector<2x128xf32> to vector<2x32xf32>
    %cst_186 = arith.constant 2.000000e+00 : f32
    %678 = vector.broadcast %cst_186 : f32 to vector<2x32xf32>
    %679 = arith.mulf %678, %677 : vector<2x32xf32>
    %cst_187 = arith.constant 1.000000e+00 : f32
    %680 = vector.broadcast %cst_187 : f32 to vector<2x32xf32>
    %681 = arith.subf %679, %680 : vector<2x32xf32>
    %682 = vector.extract_strided_slice %674 {offsets = [0, 96], sizes = [2, 32], strides = [1, 1]} : vector<2x128xf32> to vector<2x32xf32>
    %683 = arith.mulf %676, %617 : vector<2x32xf32>
    %684 = arith.mulf %675, %681 : vector<2x32xf32>
    %685 = arith.addf %683, %684 : vector<2x32xf32>
    %686 = math.tanh %685 : vector<2x32xf32>
    %687 = arith.mulf %682, %686 : vector<2x32xf32>
    %688 = vector.extract_strided_slice %8 {offsets = [20, 0], sizes = [2, 128], strides = [1, 1]} : vector<32x128xf32> to vector<2x128xf32>
    %cst_188 = arith.constant dense<0.000000e+00> : vector<2x128xf32>
    %689 = tpu.matmul %640, %14, %cst_188 {dimension_numbers = #tpu.dot_dimension_numbers<[1], [0], [0], [1], [0, 0, 1, 1], [], []>} : vector<2x32xf32>, vector<32x128xf32>, vector<2x128xf32> -> vector<2x128xf32>
    %690 = arith.addf %688, %689 : vector<2x128xf32>
    %691 = arith.negf %690 : vector<2x128xf32>
    %692 = math.exp %691 : vector<2x128xf32>
    %cst_189 = arith.constant 1.000000e+00 : f32
    %693 = vector.broadcast %cst_189 : f32 to vector<2x128xf32>
    %694 = arith.addf %693, %692 : vector<2x128xf32>
    %695 = arith.divf %693, %694 : vector<2x128xf32>
    %696 = vector.extract_strided_slice %695 {offsets = [0, 0], sizes = [2, 32], strides = [1, 1]} : vector<2x128xf32> to vector<2x32xf32>
    %697 = vector.extract_strided_slice %695 {offsets = [0, 32], sizes = [2, 32], strides = [1, 1]} : vector<2x128xf32> to vector<2x32xf32>
    %698 = vector.extract_strided_slice %695 {offsets = [0, 64], sizes = [2, 32], strides = [1, 1]} : vector<2x128xf32> to vector<2x32xf32>
    %cst_190 = arith.constant 2.000000e+00 : f32
    %699 = vector.broadcast %cst_190 : f32 to vector<2x32xf32>
    %700 = arith.mulf %699, %698 : vector<2x32xf32>
    %cst_191 = arith.constant 1.000000e+00 : f32
    %701 = vector.broadcast %cst_191 : f32 to vector<2x32xf32>
    %702 = arith.subf %700, %701 : vector<2x32xf32>
    %703 = vector.extract_strided_slice %695 {offsets = [0, 96], sizes = [2, 32], strides = [1, 1]} : vector<2x128xf32> to vector<2x32xf32>
    %704 = arith.mulf %697, %638 : vector<2x32xf32>
    %705 = arith.mulf %696, %702 : vector<2x32xf32>
    %706 = arith.addf %704, %705 : vector<2x32xf32>
    %707 = math.tanh %706 : vector<2x32xf32>
    %708 = arith.mulf %703, %707 : vector<2x32xf32>
    %cst_192 = arith.constant dense<0.000000e+00> : vector<2x128xf32>
    %709 = tpu.matmul %687, %12, %cst_192 {dimension_numbers = #tpu.dot_dimension_numbers<[1], [0], [0], [1], [0, 0, 1, 1], [], []>} : vector<2x32xf32>, vector<32x128xf32>, vector<2x128xf32> -> vector<2x128xf32>
    %cst_193 = arith.constant dense<0.000000e+00> : vector<2x128xf32>
    %710 = tpu.matmul %662, %18, %cst_193 {dimension_numbers = #tpu.dot_dimension_numbers<[1], [0], [0], [1], [0, 0, 1, 1], [], []>} : vector<2x32xf32>, vector<32x128xf32>, vector<2x128xf32> -> vector<2x128xf32>
    %711 = arith.addf %709, %710 : vector<2x128xf32>
    %712 = arith.addf %711, %26 : vector<2x128xf32>
    %713 = arith.negf %712 : vector<2x128xf32>
    %714 = math.exp %713 : vector<2x128xf32>
    %cst_194 = arith.constant 1.000000e+00 : f32
    %715 = vector.broadcast %cst_194 : f32 to vector<2x128xf32>
    %716 = arith.addf %715, %714 : vector<2x128xf32>
    %717 = arith.divf %715, %716 : vector<2x128xf32>
    %718 = vector.extract_strided_slice %717 {offsets = [0, 0], sizes = [2, 32], strides = [1, 1]} : vector<2x128xf32> to vector<2x32xf32>
    %719 = vector.extract_strided_slice %717 {offsets = [0, 32], sizes = [2, 32], strides = [1, 1]} : vector<2x128xf32> to vector<2x32xf32>
    %720 = vector.extract_strided_slice %717 {offsets = [0, 64], sizes = [2, 32], strides = [1, 1]} : vector<2x128xf32> to vector<2x32xf32>
    %cst_195 = arith.constant 2.000000e+00 : f32
    %721 = vector.broadcast %cst_195 : f32 to vector<2x32xf32>
    %722 = arith.mulf %721, %720 : vector<2x32xf32>
    %cst_196 = arith.constant 1.000000e+00 : f32
    %723 = vector.broadcast %cst_196 : f32 to vector<2x32xf32>
    %724 = arith.subf %722, %723 : vector<2x32xf32>
    %725 = vector.extract_strided_slice %717 {offsets = [0, 96], sizes = [2, 32], strides = [1, 1]} : vector<2x128xf32> to vector<2x32xf32>
    %726 = arith.mulf %719, %660 : vector<2x32xf32>
    %727 = arith.mulf %718, %724 : vector<2x32xf32>
    %728 = arith.addf %726, %727 : vector<2x32xf32>
    %729 = math.tanh %728 : vector<2x32xf32>
    %730 = arith.mulf %725, %729 : vector<2x32xf32>
    %c9 = arith.constant 9 : index
    %c0_197 = arith.constant 0 : index
    %c0_198 = arith.constant 0 : index
    %731 = vector.load %arg8[%c9, %c0_197, %c0_198] : memref<16x2x32xf32, #tpu.memory_space<vmem>>, vector<1x2x32xf32>
    %732 = vector.shape_cast %731 : vector<1x2x32xf32> to vector<2x32xf32>
    %733 = vector.shape_cast %730 : vector<2x32xf32> to vector<1x2x32xf32>
    tpu.vector_store %arg8[%c9, %c0_197, %c0_198], %733 {strides = array<i32>} : memref<16x2x32xf32, #tpu.memory_space<vmem>>, vector<1x2x32xf32>,
    %cst_199 = arith.constant dense<0.000000e+00> : vector<2x128xf32>
    %734 = tpu.matmul %708, %10, %cst_199 {dimension_numbers = #tpu.dot_dimension_numbers<[1], [0], [0], [1], [0, 0, 1, 1], [], []>} : vector<2x32xf32>, vector<32x128xf32>, vector<2x128xf32> -> vector<2x128xf32>
    %cst_200 = arith.constant dense<0.000000e+00> : vector<2x128xf32>
    %735 = tpu.matmul %687, %16, %cst_200 {dimension_numbers = #tpu.dot_dimension_numbers<[1], [0], [0], [1], [0, 0, 1, 1], [], []>} : vector<2x32xf32>, vector<32x128xf32>, vector<2x128xf32> -> vector<2x128xf32>
    %736 = arith.addf %734, %735 : vector<2x128xf32>
    %737 = arith.addf %736, %22 : vector<2x128xf32>
    %738 = arith.negf %737 : vector<2x128xf32>
    %739 = math.exp %738 : vector<2x128xf32>
    %cst_201 = arith.constant 1.000000e+00 : f32
    %740 = vector.broadcast %cst_201 : f32 to vector<2x128xf32>
    %741 = arith.addf %740, %739 : vector<2x128xf32>
    %742 = arith.divf %740, %741 : vector<2x128xf32>
    %743 = vector.extract_strided_slice %742 {offsets = [0, 0], sizes = [2, 32], strides = [1, 1]} : vector<2x128xf32> to vector<2x32xf32>
    %744 = vector.extract_strided_slice %742 {offsets = [0, 32], sizes = [2, 32], strides = [1, 1]} : vector<2x128xf32> to vector<2x32xf32>
    %745 = vector.extract_strided_slice %742 {offsets = [0, 64], sizes = [2, 32], strides = [1, 1]} : vector<2x128xf32> to vector<2x32xf32>
    %cst_202 = arith.constant 2.000000e+00 : f32
    %746 = vector.broadcast %cst_202 : f32 to vector<2x32xf32>
    %747 = arith.mulf %746, %745 : vector<2x32xf32>
    %cst_203 = arith.constant 1.000000e+00 : f32
    %748 = vector.broadcast %cst_203 : f32 to vector<2x32xf32>
    %749 = arith.subf %747, %748 : vector<2x32xf32>
    %750 = vector.extract_strided_slice %742 {offsets = [0, 96], sizes = [2, 32], strides = [1, 1]} : vector<2x128xf32> to vector<2x32xf32>
    %751 = arith.mulf %744, %685 : vector<2x32xf32>
    %752 = arith.mulf %743, %749 : vector<2x32xf32>
    %753 = arith.addf %751, %752 : vector<2x32xf32>
    %754 = math.tanh %753 : vector<2x32xf32>
    %755 = arith.mulf %750, %754 : vector<2x32xf32>
    %756 = vector.extract_strided_slice %8 {offsets = [22, 0], sizes = [2, 128], strides = [1, 1]} : vector<32x128xf32> to vector<2x128xf32>
    %cst_204 = arith.constant dense<0.000000e+00> : vector<2x128xf32>
    %757 = tpu.matmul %708, %14, %cst_204 {dimension_numbers = #tpu.dot_dimension_numbers<[1], [0], [0], [1], [0, 0, 1, 1], [], []>} : vector<2x32xf32>, vector<32x128xf32>, vector<2x128xf32> -> vector<2x128xf32>
    %758 = arith.addf %756, %757 : vector<2x128xf32>
    %759 = arith.negf %758 : vector<2x128xf32>
    %760 = math.exp %759 : vector<2x128xf32>
    %cst_205 = arith.constant 1.000000e+00 : f32
    %761 = vector.broadcast %cst_205 : f32 to vector<2x128xf32>
    %762 = arith.addf %761, %760 : vector<2x128xf32>
    %763 = arith.divf %761, %762 : vector<2x128xf32>
    %764 = vector.extract_strided_slice %763 {offsets = [0, 0], sizes = [2, 32], strides = [1, 1]} : vector<2x128xf32> to vector<2x32xf32>
    %765 = vector.extract_strided_slice %763 {offsets = [0, 32], sizes = [2, 32], strides = [1, 1]} : vector<2x128xf32> to vector<2x32xf32>
    %766 = vector.extract_strided_slice %763 {offsets = [0, 64], sizes = [2, 32], strides = [1, 1]} : vector<2x128xf32> to vector<2x32xf32>
    %cst_206 = arith.constant 2.000000e+00 : f32
    %767 = vector.broadcast %cst_206 : f32 to vector<2x32xf32>
    %768 = arith.mulf %767, %766 : vector<2x32xf32>
    %cst_207 = arith.constant 1.000000e+00 : f32
    %769 = vector.broadcast %cst_207 : f32 to vector<2x32xf32>
    %770 = arith.subf %768, %769 : vector<2x32xf32>
    %771 = vector.extract_strided_slice %763 {offsets = [0, 96], sizes = [2, 32], strides = [1, 1]} : vector<2x128xf32> to vector<2x32xf32>
    %772 = arith.mulf %765, %706 : vector<2x32xf32>
    %773 = arith.mulf %764, %770 : vector<2x32xf32>
    %774 = arith.addf %772, %773 : vector<2x32xf32>
    %775 = math.tanh %774 : vector<2x32xf32>
    %776 = arith.mulf %771, %775 : vector<2x32xf32>
    %cst_208 = arith.constant dense<0.000000e+00> : vector<2x128xf32>
    %777 = tpu.matmul %755, %12, %cst_208 {dimension_numbers = #tpu.dot_dimension_numbers<[1], [0], [0], [1], [0, 0, 1, 1], [], []>} : vector<2x32xf32>, vector<32x128xf32>, vector<2x128xf32> -> vector<2x128xf32>
    %cst_209 = arith.constant dense<0.000000e+00> : vector<2x128xf32>
    %778 = tpu.matmul %730, %18, %cst_209 {dimension_numbers = #tpu.dot_dimension_numbers<[1], [0], [0], [1], [0, 0, 1, 1], [], []>} : vector<2x32xf32>, vector<32x128xf32>, vector<2x128xf32> -> vector<2x128xf32>
    %779 = arith.addf %777, %778 : vector<2x128xf32>
    %780 = arith.addf %779, %26 : vector<2x128xf32>
    %781 = arith.negf %780 : vector<2x128xf32>
    %782 = math.exp %781 : vector<2x128xf32>
    %cst_210 = arith.constant 1.000000e+00 : f32
    %783 = vector.broadcast %cst_210 : f32 to vector<2x128xf32>
    %784 = arith.addf %783, %782 : vector<2x128xf32>
    %785 = arith.divf %783, %784 : vector<2x128xf32>
    %786 = vector.extract_strided_slice %785 {offsets = [0, 0], sizes = [2, 32], strides = [1, 1]} : vector<2x128xf32> to vector<2x32xf32>
    %787 = vector.extract_strided_slice %785 {offsets = [0, 32], sizes = [2, 32], strides = [1, 1]} : vector<2x128xf32> to vector<2x32xf32>
    %788 = vector.extract_strided_slice %785 {offsets = [0, 64], sizes = [2, 32], strides = [1, 1]} : vector<2x128xf32> to vector<2x32xf32>
    %cst_211 = arith.constant 2.000000e+00 : f32
    %789 = vector.broadcast %cst_211 : f32 to vector<2x32xf32>
    %790 = arith.mulf %789, %788 : vector<2x32xf32>
    %cst_212 = arith.constant 1.000000e+00 : f32
    %791 = vector.broadcast %cst_212 : f32 to vector<2x32xf32>
    %792 = arith.subf %790, %791 : vector<2x32xf32>
    %793 = vector.extract_strided_slice %785 {offsets = [0, 96], sizes = [2, 32], strides = [1, 1]} : vector<2x128xf32> to vector<2x32xf32>
    %794 = arith.mulf %787, %728 : vector<2x32xf32>
    %795 = arith.mulf %786, %792 : vector<2x32xf32>
    %796 = arith.addf %794, %795 : vector<2x32xf32>
    %797 = math.tanh %796 : vector<2x32xf32>
    %798 = arith.mulf %793, %797 : vector<2x32xf32>
    %c10 = arith.constant 10 : index
    %c0_213 = arith.constant 0 : index
    %c0_214 = arith.constant 0 : index
    %799 = vector.load %arg8[%c10, %c0_213, %c0_214] : memref<16x2x32xf32, #tpu.memory_space<vmem>>, vector<1x2x32xf32>
    %800 = vector.shape_cast %799 : vector<1x2x32xf32> to vector<2x32xf32>
    %801 = vector.shape_cast %798 : vector<2x32xf32> to vector<1x2x32xf32>
    tpu.vector_store %arg8[%c10, %c0_213, %c0_214], %801 {strides = array<i32>} : memref<16x2x32xf32, #tpu.memory_space<vmem>>, vector<1x2x32xf32>,
    %cst_215 = arith.constant dense<0.000000e+00> : vector<2x128xf32>
    %802 = tpu.matmul %776, %10, %cst_215 {dimension_numbers = #tpu.dot_dimension_numbers<[1], [0], [0], [1], [0, 0, 1, 1], [], []>} : vector<2x32xf32>, vector<32x128xf32>, vector<2x128xf32> -> vector<2x128xf32>
    %cst_216 = arith.constant dense<0.000000e+00> : vector<2x128xf32>
    %803 = tpu.matmul %755, %16, %cst_216 {dimension_numbers = #tpu.dot_dimension_numbers<[1], [0], [0], [1], [0, 0, 1, 1], [], []>} : vector<2x32xf32>, vector<32x128xf32>, vector<2x128xf32> -> vector<2x128xf32>
    %804 = arith.addf %802, %803 : vector<2x128xf32>
    %805 = arith.addf %804, %22 : vector<2x128xf32>
    %806 = arith.negf %805 : vector<2x128xf32>
    %807 = math.exp %806 : vector<2x128xf32>
    %cst_217 = arith.constant 1.000000e+00 : f32
    %808 = vector.broadcast %cst_217 : f32 to vector<2x128xf32>
    %809 = arith.addf %808, %807 : vector<2x128xf32>
    %810 = arith.divf %808, %809 : vector<2x128xf32>
    %811 = vector.extract_strided_slice %810 {offsets = [0, 0], sizes = [2, 32], strides = [1, 1]} : vector<2x128xf32> to vector<2x32xf32>
    %812 = vector.extract_strided_slice %810 {offsets = [0, 32], sizes = [2, 32], strides = [1, 1]} : vector<2x128xf32> to vector<2x32xf32>
    %813 = vector.extract_strided_slice %810 {offsets = [0, 64], sizes = [2, 32], strides = [1, 1]} : vector<2x128xf32> to vector<2x32xf32>
    %cst_218 = arith.constant 2.000000e+00 : f32
    %814 = vector.broadcast %cst_218 : f32 to vector<2x32xf32>
    %815 = arith.mulf %814, %813 : vector<2x32xf32>
    %cst_219 = arith.constant 1.000000e+00 : f32
    %816 = vector.broadcast %cst_219 : f32 to vector<2x32xf32>
    %817 = arith.subf %815, %816 : vector<2x32xf32>
    %818 = vector.extract_strided_slice %810 {offsets = [0, 96], sizes = [2, 32], strides = [1, 1]} : vector<2x128xf32> to vector<2x32xf32>
    %819 = arith.mulf %812, %753 : vector<2x32xf32>
    %820 = arith.mulf %811, %817 : vector<2x32xf32>
    %821 = arith.addf %819, %820 : vector<2x32xf32>
    %822 = math.tanh %821 : vector<2x32xf32>
    %823 = arith.mulf %818, %822 : vector<2x32xf32>
    %824 = vector.extract_strided_slice %8 {offsets = [24, 0], sizes = [2, 128], strides = [1, 1]} : vector<32x128xf32> to vector<2x128xf32>
    %cst_220 = arith.constant dense<0.000000e+00> : vector<2x128xf32>
    %825 = tpu.matmul %776, %14, %cst_220 {dimension_numbers = #tpu.dot_dimension_numbers<[1], [0], [0], [1], [0, 0, 1, 1], [], []>} : vector<2x32xf32>, vector<32x128xf32>, vector<2x128xf32> -> vector<2x128xf32>
    %826 = arith.addf %824, %825 : vector<2x128xf32>
    %827 = arith.negf %826 : vector<2x128xf32>
    %828 = math.exp %827 : vector<2x128xf32>
    %cst_221 = arith.constant 1.000000e+00 : f32
    %829 = vector.broadcast %cst_221 : f32 to vector<2x128xf32>
    %830 = arith.addf %829, %828 : vector<2x128xf32>
    %831 = arith.divf %829, %830 : vector<2x128xf32>
    %832 = vector.extract_strided_slice %831 {offsets = [0, 0], sizes = [2, 32], strides = [1, 1]} : vector<2x128xf32> to vector<2x32xf32>
    %833 = vector.extract_strided_slice %831 {offsets = [0, 32], sizes = [2, 32], strides = [1, 1]} : vector<2x128xf32> to vector<2x32xf32>
    %834 = vector.extract_strided_slice %831 {offsets = [0, 64], sizes = [2, 32], strides = [1, 1]} : vector<2x128xf32> to vector<2x32xf32>
    %cst_222 = arith.constant 2.000000e+00 : f32
    %835 = vector.broadcast %cst_222 : f32 to vector<2x32xf32>
    %836 = arith.mulf %835, %834 : vector<2x32xf32>
    %cst_223 = arith.constant 1.000000e+00 : f32
    %837 = vector.broadcast %cst_223 : f32 to vector<2x32xf32>
    %838 = arith.subf %836, %837 : vector<2x32xf32>
    %839 = vector.extract_strided_slice %831 {offsets = [0, 96], sizes = [2, 32], strides = [1, 1]} : vector<2x128xf32> to vector<2x32xf32>
    %840 = arith.mulf %833, %774 : vector<2x32xf32>
    %841 = arith.mulf %832, %838 : vector<2x32xf32>
    %842 = arith.addf %840, %841 : vector<2x32xf32>
    %843 = math.tanh %842 : vector<2x32xf32>
    %844 = arith.mulf %839, %843 : vector<2x32xf32>
    %cst_224 = arith.constant dense<0.000000e+00> : vector<2x128xf32>
    %845 = tpu.matmul %823, %12, %cst_224 {dimension_numbers = #tpu.dot_dimension_numbers<[1], [0], [0], [1], [0, 0, 1, 1], [], []>} : vector<2x32xf32>, vector<32x128xf32>, vector<2x128xf32> -> vector<2x128xf32>
    %cst_225 = arith.constant dense<0.000000e+00> : vector<2x128xf32>
    %846 = tpu.matmul %798, %18, %cst_225 {dimension_numbers = #tpu.dot_dimension_numbers<[1], [0], [0], [1], [0, 0, 1, 1], [], []>} : vector<2x32xf32>, vector<32x128xf32>, vector<2x128xf32> -> vector<2x128xf32>
    %847 = arith.addf %845, %846 : vector<2x128xf32>
    %848 = arith.addf %847, %26 : vector<2x128xf32>
    %849 = arith.negf %848 : vector<2x128xf32>
    %850 = math.exp %849 : vector<2x128xf32>
    %cst_226 = arith.constant 1.000000e+00 : f32
    %851 = vector.broadcast %cst_226 : f32 to vector<2x128xf32>
    %852 = arith.addf %851, %850 : vector<2x128xf32>
    %853 = arith.divf %851, %852 : vector<2x128xf32>
    %854 = vector.extract_strided_slice %853 {offsets = [0, 0], sizes = [2, 32], strides = [1, 1]} : vector<2x128xf32> to vector<2x32xf32>
    %855 = vector.extract_strided_slice %853 {offsets = [0, 32], sizes = [2, 32], strides = [1, 1]} : vector<2x128xf32> to vector<2x32xf32>
    %856 = vector.extract_strided_slice %853 {offsets = [0, 64], sizes = [2, 32], strides = [1, 1]} : vector<2x128xf32> to vector<2x32xf32>
    %cst_227 = arith.constant 2.000000e+00 : f32
    %857 = vector.broadcast %cst_227 : f32 to vector<2x32xf32>
    %858 = arith.mulf %857, %856 : vector<2x32xf32>
    %cst_228 = arith.constant 1.000000e+00 : f32
    %859 = vector.broadcast %cst_228 : f32 to vector<2x32xf32>
    %860 = arith.subf %858, %859 : vector<2x32xf32>
    %861 = vector.extract_strided_slice %853 {offsets = [0, 96], sizes = [2, 32], strides = [1, 1]} : vector<2x128xf32> to vector<2x32xf32>
    %862 = arith.mulf %855, %796 : vector<2x32xf32>
    %863 = arith.mulf %854, %860 : vector<2x32xf32>
    %864 = arith.addf %862, %863 : vector<2x32xf32>
    %865 = math.tanh %864 : vector<2x32xf32>
    %866 = arith.mulf %861, %865 : vector<2x32xf32>
    %c11 = arith.constant 11 : index
    %c0_229 = arith.constant 0 : index
    %c0_230 = arith.constant 0 : index
    %867 = vector.load %arg8[%c11, %c0_229, %c0_230] : memref<16x2x32xf32, #tpu.memory_space<vmem>>, vector<1x2x32xf32>
    %868 = vector.shape_cast %867 : vector<1x2x32xf32> to vector<2x32xf32>
    %869 = vector.shape_cast %866 : vector<2x32xf32> to vector<1x2x32xf32>
    tpu.vector_store %arg8[%c11, %c0_229, %c0_230], %869 {strides = array<i32>} : memref<16x2x32xf32, #tpu.memory_space<vmem>>, vector<1x2x32xf32>,
    %cst_231 = arith.constant dense<0.000000e+00> : vector<2x128xf32>
    %870 = tpu.matmul %844, %10, %cst_231 {dimension_numbers = #tpu.dot_dimension_numbers<[1], [0], [0], [1], [0, 0, 1, 1], [], []>} : vector<2x32xf32>, vector<32x128xf32>, vector<2x128xf32> -> vector<2x128xf32>
    %cst_232 = arith.constant dense<0.000000e+00> : vector<2x128xf32>
    %871 = tpu.matmul %823, %16, %cst_232 {dimension_numbers = #tpu.dot_dimension_numbers<[1], [0], [0], [1], [0, 0, 1, 1], [], []>} : vector<2x32xf32>, vector<32x128xf32>, vector<2x128xf32> -> vector<2x128xf32>
    %872 = arith.addf %870, %871 : vector<2x128xf32>
    %873 = arith.addf %872, %22 : vector<2x128xf32>
    %874 = arith.negf %873 : vector<2x128xf32>
    %875 = math.exp %874 : vector<2x128xf32>
    %cst_233 = arith.constant 1.000000e+00 : f32
    %876 = vector.broadcast %cst_233 : f32 to vector<2x128xf32>
    %877 = arith.addf %876, %875 : vector<2x128xf32>
    %878 = arith.divf %876, %877 : vector<2x128xf32>
    %879 = vector.extract_strided_slice %878 {offsets = [0, 0], sizes = [2, 32], strides = [1, 1]} : vector<2x128xf32> to vector<2x32xf32>
    %880 = vector.extract_strided_slice %878 {offsets = [0, 32], sizes = [2, 32], strides = [1, 1]} : vector<2x128xf32> to vector<2x32xf32>
    %881 = vector.extract_strided_slice %878 {offsets = [0, 64], sizes = [2, 32], strides = [1, 1]} : vector<2x128xf32> to vector<2x32xf32>
    %cst_234 = arith.constant 2.000000e+00 : f32
    %882 = vector.broadcast %cst_234 : f32 to vector<2x32xf32>
    %883 = arith.mulf %882, %881 : vector<2x32xf32>
    %cst_235 = arith.constant 1.000000e+00 : f32
    %884 = vector.broadcast %cst_235 : f32 to vector<2x32xf32>
    %885 = arith.subf %883, %884 : vector<2x32xf32>
    %886 = vector.extract_strided_slice %878 {offsets = [0, 96], sizes = [2, 32], strides = [1, 1]} : vector<2x128xf32> to vector<2x32xf32>
    %887 = arith.mulf %880, %821 : vector<2x32xf32>
    %888 = arith.mulf %879, %885 : vector<2x32xf32>
    %889 = arith.addf %887, %888 : vector<2x32xf32>
    %890 = math.tanh %889 : vector<2x32xf32>
    %891 = arith.mulf %886, %890 : vector<2x32xf32>
    %892 = vector.extract_strided_slice %8 {offsets = [26, 0], sizes = [2, 128], strides = [1, 1]} : vector<32x128xf32> to vector<2x128xf32>
    %cst_236 = arith.constant dense<0.000000e+00> : vector<2x128xf32>
    %893 = tpu.matmul %844, %14, %cst_236 {dimension_numbers = #tpu.dot_dimension_numbers<[1], [0], [0], [1], [0, 0, 1, 1], [], []>} : vector<2x32xf32>, vector<32x128xf32>, vector<2x128xf32> -> vector<2x128xf32>
    %894 = arith.addf %892, %893 : vector<2x128xf32>
    %895 = arith.negf %894 : vector<2x128xf32>
    %896 = math.exp %895 : vector<2x128xf32>
    %cst_237 = arith.constant 1.000000e+00 : f32
    %897 = vector.broadcast %cst_237 : f32 to vector<2x128xf32>
    %898 = arith.addf %897, %896 : vector<2x128xf32>
    %899 = arith.divf %897, %898 : vector<2x128xf32>
    %900 = vector.extract_strided_slice %899 {offsets = [0, 0], sizes = [2, 32], strides = [1, 1]} : vector<2x128xf32> to vector<2x32xf32>
    %901 = vector.extract_strided_slice %899 {offsets = [0, 32], sizes = [2, 32], strides = [1, 1]} : vector<2x128xf32> to vector<2x32xf32>
    %902 = vector.extract_strided_slice %899 {offsets = [0, 64], sizes = [2, 32], strides = [1, 1]} : vector<2x128xf32> to vector<2x32xf32>
    %cst_238 = arith.constant 2.000000e+00 : f32
    %903 = vector.broadcast %cst_238 : f32 to vector<2x32xf32>
    %904 = arith.mulf %903, %902 : vector<2x32xf32>
    %cst_239 = arith.constant 1.000000e+00 : f32
    %905 = vector.broadcast %cst_239 : f32 to vector<2x32xf32>
    %906 = arith.subf %904, %905 : vector<2x32xf32>
    %907 = vector.extract_strided_slice %899 {offsets = [0, 96], sizes = [2, 32], strides = [1, 1]} : vector<2x128xf32> to vector<2x32xf32>
    %908 = arith.mulf %901, %842 : vector<2x32xf32>
    %909 = arith.mulf %900, %906 : vector<2x32xf32>
    %910 = arith.addf %908, %909 : vector<2x32xf32>
    %911 = math.tanh %910 : vector<2x32xf32>
    %912 = arith.mulf %907, %911 : vector<2x32xf32>
    %cst_240 = arith.constant dense<0.000000e+00> : vector<2x128xf32>
    %913 = tpu.matmul %891, %12, %cst_240 {dimension_numbers = #tpu.dot_dimension_numbers<[1], [0], [0], [1], [0, 0, 1, 1], [], []>} : vector<2x32xf32>, vector<32x128xf32>, vector<2x128xf32> -> vector<2x128xf32>
    %cst_241 = arith.constant dense<0.000000e+00> : vector<2x128xf32>
    %914 = tpu.matmul %866, %18, %cst_241 {dimension_numbers = #tpu.dot_dimension_numbers<[1], [0], [0], [1], [0, 0, 1, 1], [], []>} : vector<2x32xf32>, vector<32x128xf32>, vector<2x128xf32> -> vector<2x128xf32>
    %915 = arith.addf %913, %914 : vector<2x128xf32>
    %916 = arith.addf %915, %26 : vector<2x128xf32>
    %917 = arith.negf %916 : vector<2x128xf32>
    %918 = math.exp %917 : vector<2x128xf32>
    %cst_242 = arith.constant 1.000000e+00 : f32
    %919 = vector.broadcast %cst_242 : f32 to vector<2x128xf32>
    %920 = arith.addf %919, %918 : vector<2x128xf32>
    %921 = arith.divf %919, %920 : vector<2x128xf32>
    %922 = vector.extract_strided_slice %921 {offsets = [0, 0], sizes = [2, 32], strides = [1, 1]} : vector<2x128xf32> to vector<2x32xf32>
    %923 = vector.extract_strided_slice %921 {offsets = [0, 32], sizes = [2, 32], strides = [1, 1]} : vector<2x128xf32> to vector<2x32xf32>
    %924 = vector.extract_strided_slice %921 {offsets = [0, 64], sizes = [2, 32], strides = [1, 1]} : vector<2x128xf32> to vector<2x32xf32>
    %cst_243 = arith.constant 2.000000e+00 : f32
    %925 = vector.broadcast %cst_243 : f32 to vector<2x32xf32>
    %926 = arith.mulf %925, %924 : vector<2x32xf32>
    %cst_244 = arith.constant 1.000000e+00 : f32
    %927 = vector.broadcast %cst_244 : f32 to vector<2x32xf32>
    %928 = arith.subf %926, %927 : vector<2x32xf32>
    %929 = vector.extract_strided_slice %921 {offsets = [0, 96], sizes = [2, 32], strides = [1, 1]} : vector<2x128xf32> to vector<2x32xf32>
    %930 = arith.mulf %923, %864 : vector<2x32xf32>
    %931 = arith.mulf %922, %928 : vector<2x32xf32>
    %932 = arith.addf %930, %931 : vector<2x32xf32>
    %933 = math.tanh %932 : vector<2x32xf32>
    %934 = arith.mulf %929, %933 : vector<2x32xf32>
    %c12 = arith.constant 12 : index
    %c0_245 = arith.constant 0 : index
    %c0_246 = arith.constant 0 : index
    %935 = vector.load %arg8[%c12, %c0_245, %c0_246] : memref<16x2x32xf32, #tpu.memory_space<vmem>>, vector<1x2x32xf32>
    %936 = vector.shape_cast %935 : vector<1x2x32xf32> to vector<2x32xf32>
    %937 = vector.shape_cast %934 : vector<2x32xf32> to vector<1x2x32xf32>
    tpu.vector_store %arg8[%c12, %c0_245, %c0_246], %937 {strides = array<i32>} : memref<16x2x32xf32, #tpu.memory_space<vmem>>, vector<1x2x32xf32>,
    %cst_247 = arith.constant dense<0.000000e+00> : vector<2x128xf32>
    %938 = tpu.matmul %912, %10, %cst_247 {dimension_numbers = #tpu.dot_dimension_numbers<[1], [0], [0], [1], [0, 0, 1, 1], [], []>} : vector<2x32xf32>, vector<32x128xf32>, vector<2x128xf32> -> vector<2x128xf32>
    %cst_248 = arith.constant dense<0.000000e+00> : vector<2x128xf32>
    %939 = tpu.matmul %891, %16, %cst_248 {dimension_numbers = #tpu.dot_dimension_numbers<[1], [0], [0], [1], [0, 0, 1, 1], [], []>} : vector<2x32xf32>, vector<32x128xf32>, vector<2x128xf32> -> vector<2x128xf32>
    %940 = arith.addf %938, %939 : vector<2x128xf32>
    %941 = arith.addf %940, %22 : vector<2x128xf32>
    %942 = arith.negf %941 : vector<2x128xf32>
    %943 = math.exp %942 : vector<2x128xf32>
    %cst_249 = arith.constant 1.000000e+00 : f32
    %944 = vector.broadcast %cst_249 : f32 to vector<2x128xf32>
    %945 = arith.addf %944, %943 : vector<2x128xf32>
    %946 = arith.divf %944, %945 : vector<2x128xf32>
    %947 = vector.extract_strided_slice %946 {offsets = [0, 0], sizes = [2, 32], strides = [1, 1]} : vector<2x128xf32> to vector<2x32xf32>
    %948 = vector.extract_strided_slice %946 {offsets = [0, 32], sizes = [2, 32], strides = [1, 1]} : vector<2x128xf32> to vector<2x32xf32>
    %949 = vector.extract_strided_slice %946 {offsets = [0, 64], sizes = [2, 32], strides = [1, 1]} : vector<2x128xf32> to vector<2x32xf32>
    %cst_250 = arith.constant 2.000000e+00 : f32
    %950 = vector.broadcast %cst_250 : f32 to vector<2x32xf32>
    %951 = arith.mulf %950, %949 : vector<2x32xf32>
    %cst_251 = arith.constant 1.000000e+00 : f32
    %952 = vector.broadcast %cst_251 : f32 to vector<2x32xf32>
    %953 = arith.subf %951, %952 : vector<2x32xf32>
    %954 = vector.extract_strided_slice %946 {offsets = [0, 96], sizes = [2, 32], strides = [1, 1]} : vector<2x128xf32> to vector<2x32xf32>
    %955 = arith.mulf %948, %889 : vector<2x32xf32>
    %956 = arith.mulf %947, %953 : vector<2x32xf32>
    %957 = arith.addf %955, %956 : vector<2x32xf32>
    %958 = math.tanh %957 : vector<2x32xf32>
    %959 = arith.mulf %954, %958 : vector<2x32xf32>
    %960 = vector.extract_strided_slice %8 {offsets = [28, 0], sizes = [2, 128], strides = [1, 1]} : vector<32x128xf32> to vector<2x128xf32>
    %cst_252 = arith.constant dense<0.000000e+00> : vector<2x128xf32>
    %961 = tpu.matmul %912, %14, %cst_252 {dimension_numbers = #tpu.dot_dimension_numbers<[1], [0], [0], [1], [0, 0, 1, 1], [], []>} : vector<2x32xf32>, vector<32x128xf32>, vector<2x128xf32> -> vector<2x128xf32>
    %962 = arith.addf %960, %961 : vector<2x128xf32>
    %963 = arith.negf %962 : vector<2x128xf32>
    %964 = math.exp %963 : vector<2x128xf32>
    %cst_253 = arith.constant 1.000000e+00 : f32
    %965 = vector.broadcast %cst_253 : f32 to vector<2x128xf32>
    %966 = arith.addf %965, %964 : vector<2x128xf32>
    %967 = arith.divf %965, %966 : vector<2x128xf32>
    %968 = vector.extract_strided_slice %967 {offsets = [0, 0], sizes = [2, 32], strides = [1, 1]} : vector<2x128xf32> to vector<2x32xf32>
    %969 = vector.extract_strided_slice %967 {offsets = [0, 32], sizes = [2, 32], strides = [1, 1]} : vector<2x128xf32> to vector<2x32xf32>
    %970 = vector.extract_strided_slice %967 {offsets = [0, 64], sizes = [2, 32], strides = [1, 1]} : vector<2x128xf32> to vector<2x32xf32>
    %cst_254 = arith.constant 2.000000e+00 : f32
    %971 = vector.broadcast %cst_254 : f32 to vector<2x32xf32>
    %972 = arith.mulf %971, %970 : vector<2x32xf32>
    %cst_255 = arith.constant 1.000000e+00 : f32
    %973 = vector.broadcast %cst_255 : f32 to vector<2x32xf32>
    %974 = arith.subf %972, %973 : vector<2x32xf32>
    %975 = vector.extract_strided_slice %967 {offsets = [0, 96], sizes = [2, 32], strides = [1, 1]} : vector<2x128xf32> to vector<2x32xf32>
    %976 = arith.mulf %969, %910 : vector<2x32xf32>
    %977 = arith.mulf %968, %974 : vector<2x32xf32>
    %978 = arith.addf %976, %977 : vector<2x32xf32>
    %979 = math.tanh %978 : vector<2x32xf32>
    %980 = arith.mulf %975, %979 : vector<2x32xf32>
    %cst_256 = arith.constant dense<0.000000e+00> : vector<2x128xf32>
    %981 = tpu.matmul %959, %12, %cst_256 {dimension_numbers = #tpu.dot_dimension_numbers<[1], [0], [0], [1], [0, 0, 1, 1], [], []>} : vector<2x32xf32>, vector<32x128xf32>, vector<2x128xf32> -> vector<2x128xf32>
    %cst_257 = arith.constant dense<0.000000e+00> : vector<2x128xf32>
    %982 = tpu.matmul %934, %18, %cst_257 {dimension_numbers = #tpu.dot_dimension_numbers<[1], [0], [0], [1], [0, 0, 1, 1], [], []>} : vector<2x32xf32>, vector<32x128xf32>, vector<2x128xf32> -> vector<2x128xf32>
    %983 = arith.addf %981, %982 : vector<2x128xf32>
    %984 = arith.addf %983, %26 : vector<2x128xf32>
    %985 = arith.negf %984 : vector<2x128xf32>
    %986 = math.exp %985 : vector<2x128xf32>
    %cst_258 = arith.constant 1.000000e+00 : f32
    %987 = vector.broadcast %cst_258 : f32 to vector<2x128xf32>
    %988 = arith.addf %987, %986 : vector<2x128xf32>
    %989 = arith.divf %987, %988 : vector<2x128xf32>
    %990 = vector.extract_strided_slice %989 {offsets = [0, 0], sizes = [2, 32], strides = [1, 1]} : vector<2x128xf32> to vector<2x32xf32>
    %991 = vector.extract_strided_slice %989 {offsets = [0, 32], sizes = [2, 32], strides = [1, 1]} : vector<2x128xf32> to vector<2x32xf32>
    %992 = vector.extract_strided_slice %989 {offsets = [0, 64], sizes = [2, 32], strides = [1, 1]} : vector<2x128xf32> to vector<2x32xf32>
    %cst_259 = arith.constant 2.000000e+00 : f32
    %993 = vector.broadcast %cst_259 : f32 to vector<2x32xf32>
    %994 = arith.mulf %993, %992 : vector<2x32xf32>
    %cst_260 = arith.constant 1.000000e+00 : f32
    %995 = vector.broadcast %cst_260 : f32 to vector<2x32xf32>
    %996 = arith.subf %994, %995 : vector<2x32xf32>
    %997 = vector.extract_strided_slice %989 {offsets = [0, 96], sizes = [2, 32], strides = [1, 1]} : vector<2x128xf32> to vector<2x32xf32>
    %998 = arith.mulf %991, %932 : vector<2x32xf32>
    %999 = arith.mulf %990, %996 : vector<2x32xf32>
    %1000 = arith.addf %998, %999 : vector<2x32xf32>
    %1001 = math.tanh %1000 : vector<2x32xf32>
    %1002 = arith.mulf %997, %1001 : vector<2x32xf32>
    %c13 = arith.constant 13 : index
    %c0_261 = arith.constant 0 : index
    %c0_262 = arith.constant 0 : index
    %1003 = vector.load %arg8[%c13, %c0_261, %c0_262] : memref<16x2x32xf32, #tpu.memory_space<vmem>>, vector<1x2x32xf32>
    %1004 = vector.shape_cast %1003 : vector<1x2x32xf32> to vector<2x32xf32>
    %1005 = vector.shape_cast %1002 : vector<2x32xf32> to vector<1x2x32xf32>
    tpu.vector_store %arg8[%c13, %c0_261, %c0_262], %1005 {strides = array<i32>} : memref<16x2x32xf32, #tpu.memory_space<vmem>>, vector<1x2x32xf32>,
    %cst_263 = arith.constant dense<0.000000e+00> : vector<2x128xf32>
    %1006 = tpu.matmul %980, %10, %cst_263 {dimension_numbers = #tpu.dot_dimension_numbers<[1], [0], [0], [1], [0, 0, 1, 1], [], []>} : vector<2x32xf32>, vector<32x128xf32>, vector<2x128xf32> -> vector<2x128xf32>
    %cst_264 = arith.constant dense<0.000000e+00> : vector<2x128xf32>
    %1007 = tpu.matmul %959, %16, %cst_264 {dimension_numbers = #tpu.dot_dimension_numbers<[1], [0], [0], [1], [0, 0, 1, 1], [], []>} : vector<2x32xf32>, vector<32x128xf32>, vector<2x128xf32> -> vector<2x128xf32>
    %1008 = arith.addf %1006, %1007 : vector<2x128xf32>
    %1009 = arith.addf %1008, %22 : vector<2x128xf32>
    %1010 = arith.negf %1009 : vector<2x128xf32>
    %1011 = math.exp %1010 : vector<2x128xf32>
    %cst_265 = arith.constant 1.000000e+00 : f32
    %1012 = vector.broadcast %cst_265 : f32 to vector<2x128xf32>
    %1013 = arith.addf %1012, %1011 : vector<2x128xf32>
    %1014 = arith.divf %1012, %1013 : vector<2x128xf32>
    %1015 = vector.extract_strided_slice %1014 {offsets = [0, 0], sizes = [2, 32], strides = [1, 1]} : vector<2x128xf32> to vector<2x32xf32>
    %1016 = vector.extract_strided_slice %1014 {offsets = [0, 32], sizes = [2, 32], strides = [1, 1]} : vector<2x128xf32> to vector<2x32xf32>
    %1017 = vector.extract_strided_slice %1014 {offsets = [0, 64], sizes = [2, 32], strides = [1, 1]} : vector<2x128xf32> to vector<2x32xf32>
    %cst_266 = arith.constant 2.000000e+00 : f32
    %1018 = vector.broadcast %cst_266 : f32 to vector<2x32xf32>
    %1019 = arith.mulf %1018, %1017 : vector<2x32xf32>
    %cst_267 = arith.constant 1.000000e+00 : f32
    %1020 = vector.broadcast %cst_267 : f32 to vector<2x32xf32>
    %1021 = arith.subf %1019, %1020 : vector<2x32xf32>
    %1022 = vector.extract_strided_slice %1014 {offsets = [0, 96], sizes = [2, 32], strides = [1, 1]} : vector<2x128xf32> to vector<2x32xf32>
    %1023 = arith.mulf %1016, %957 : vector<2x32xf32>
    %1024 = arith.mulf %1015, %1021 : vector<2x32xf32>
    %1025 = arith.addf %1023, %1024 : vector<2x32xf32>
    %1026 = math.tanh %1025 : vector<2x32xf32>
    %1027 = arith.mulf %1022, %1026 : vector<2x32xf32>
    %1028 = vector.extract_strided_slice %8 {offsets = [30, 0], sizes = [2, 128], strides = [1, 1]} : vector<32x128xf32> to vector<2x128xf32>
    %cst_268 = arith.constant dense<0.000000e+00> : vector<2x128xf32>
    %1029 = tpu.matmul %980, %14, %cst_268 {dimension_numbers = #tpu.dot_dimension_numbers<[1], [0], [0], [1], [0, 0, 1, 1], [], []>} : vector<2x32xf32>, vector<32x128xf32>, vector<2x128xf32> -> vector<2x128xf32>
    %1030 = arith.addf %1028, %1029 : vector<2x128xf32>
    %1031 = arith.negf %1030 : vector<2x128xf32>
    %1032 = math.exp %1031 : vector<2x128xf32>
    %cst_269 = arith.constant 1.000000e+00 : f32
    %1033 = vector.broadcast %cst_269 : f32 to vector<2x128xf32>
    %1034 = arith.addf %1033, %1032 : vector<2x128xf32>
    %1035 = arith.divf %1033, %1034 : vector<2x128xf32>
    %1036 = vector.extract_strided_slice %1035 {offsets = [0, 0], sizes = [2, 32], strides = [1, 1]} : vector<2x128xf32> to vector<2x32xf32>
    %1037 = vector.extract_strided_slice %1035 {offsets = [0, 32], sizes = [2, 32], strides = [1, 1]} : vector<2x128xf32> to vector<2x32xf32>
    %1038 = vector.extract_strided_slice %1035 {offsets = [0, 64], sizes = [2, 32], strides = [1, 1]} : vector<2x128xf32> to vector<2x32xf32>
    %cst_270 = arith.constant 2.000000e+00 : f32
    %1039 = vector.broadcast %cst_270 : f32 to vector<2x32xf32>
    %1040 = arith.mulf %1039, %1038 : vector<2x32xf32>
    %cst_271 = arith.constant 1.000000e+00 : f32
    %1041 = vector.broadcast %cst_271 : f32 to vector<2x32xf32>
    %1042 = arith.subf %1040, %1041 : vector<2x32xf32>
    %1043 = vector.extract_strided_slice %1035 {offsets = [0, 96], sizes = [2, 32], strides = [1, 1]} : vector<2x128xf32> to vector<2x32xf32>
    %1044 = arith.mulf %1037, %978 : vector<2x32xf32>
    %1045 = arith.mulf %1036, %1042 : vector<2x32xf32>
    %1046 = arith.addf %1044, %1045 : vector<2x32xf32>
    %1047 = math.tanh %1046 : vector<2x32xf32>
    %1048 = arith.mulf %1043, %1047 : vector<2x32xf32>
    %cst_272 = arith.constant dense<0.000000e+00> : vector<2x128xf32>
    %1049 = tpu.matmul %1027, %12, %cst_272 {dimension_numbers = #tpu.dot_dimension_numbers<[1], [0], [0], [1], [0, 0, 1, 1], [], []>} : vector<2x32xf32>, vector<32x128xf32>, vector<2x128xf32> -> vector<2x128xf32>
    %cst_273 = arith.constant dense<0.000000e+00> : vector<2x128xf32>
    %1050 = tpu.matmul %1002, %18, %cst_273 {dimension_numbers = #tpu.dot_dimension_numbers<[1], [0], [0], [1], [0, 0, 1, 1], [], []>} : vector<2x32xf32>, vector<32x128xf32>, vector<2x128xf32> -> vector<2x128xf32>
    %1051 = arith.addf %1049, %1050 : vector<2x128xf32>
    %1052 = arith.addf %1051, %26 : vector<2x128xf32>
    %1053 = arith.negf %1052 : vector<2x128xf32>
    %1054 = math.exp %1053 : vector<2x128xf32>
    %cst_274 = arith.constant 1.000000e+00 : f32
    %1055 = vector.broadcast %cst_274 : f32 to vector<2x128xf32>
    %1056 = arith.addf %1055, %1054 : vector<2x128xf32>
    %1057 = arith.divf %1055, %1056 : vector<2x128xf32>
    %1058 = vector.extract_strided_slice %1057 {offsets = [0, 0], sizes = [2, 32], strides = [1, 1]} : vector<2x128xf32> to vector<2x32xf32>
    %1059 = vector.extract_strided_slice %1057 {offsets = [0, 32], sizes = [2, 32], strides = [1, 1]} : vector<2x128xf32> to vector<2x32xf32>
    %1060 = vector.extract_strided_slice %1057 {offsets = [0, 64], sizes = [2, 32], strides = [1, 1]} : vector<2x128xf32> to vector<2x32xf32>
    %cst_275 = arith.constant 2.000000e+00 : f32
    %1061 = vector.broadcast %cst_275 : f32 to vector<2x32xf32>
    %1062 = arith.mulf %1061, %1060 : vector<2x32xf32>
    %cst_276 = arith.constant 1.000000e+00 : f32
    %1063 = vector.broadcast %cst_276 : f32 to vector<2x32xf32>
    %1064 = arith.subf %1062, %1063 : vector<2x32xf32>
    %1065 = vector.extract_strided_slice %1057 {offsets = [0, 96], sizes = [2, 32], strides = [1, 1]} : vector<2x128xf32> to vector<2x32xf32>
    %1066 = arith.mulf %1059, %1000 : vector<2x32xf32>
    %1067 = arith.mulf %1058, %1064 : vector<2x32xf32>
    %1068 = arith.addf %1066, %1067 : vector<2x32xf32>
    %1069 = math.tanh %1068 : vector<2x32xf32>
    %1070 = arith.mulf %1065, %1069 : vector<2x32xf32>
    %c14 = arith.constant 14 : index
    %c0_277 = arith.constant 0 : index
    %c0_278 = arith.constant 0 : index
    %1071 = vector.load %arg8[%c14, %c0_277, %c0_278] : memref<16x2x32xf32, #tpu.memory_space<vmem>>, vector<1x2x32xf32>
    %1072 = vector.shape_cast %1071 : vector<1x2x32xf32> to vector<2x32xf32>
    %1073 = vector.shape_cast %1070 : vector<2x32xf32> to vector<1x2x32xf32>
    tpu.vector_store %arg8[%c14, %c0_277, %c0_278], %1073 {strides = array<i32>} : memref<16x2x32xf32, #tpu.memory_space<vmem>>, vector<1x2x32xf32>,
    %cst_279 = arith.constant dense<0.000000e+00> : vector<2x128xf32>
    %1074 = tpu.matmul %1048, %10, %cst_279 {dimension_numbers = #tpu.dot_dimension_numbers<[1], [0], [0], [1], [0, 0, 1, 1], [], []>} : vector<2x32xf32>, vector<32x128xf32>, vector<2x128xf32> -> vector<2x128xf32>
    %cst_280 = arith.constant dense<0.000000e+00> : vector<2x128xf32>
    %1075 = tpu.matmul %1027, %16, %cst_280 {dimension_numbers = #tpu.dot_dimension_numbers<[1], [0], [0], [1], [0, 0, 1, 1], [], []>} : vector<2x32xf32>, vector<32x128xf32>, vector<2x128xf32> -> vector<2x128xf32>
    %1076 = arith.addf %1074, %1075 : vector<2x128xf32>
    %1077 = arith.addf %1076, %22 : vector<2x128xf32>
    %1078 = arith.negf %1077 : vector<2x128xf32>
    %1079 = math.exp %1078 : vector<2x128xf32>
    %cst_281 = arith.constant 1.000000e+00 : f32
    %1080 = vector.broadcast %cst_281 : f32 to vector<2x128xf32>
    %1081 = arith.addf %1080, %1079 : vector<2x128xf32>
    %1082 = arith.divf %1080, %1081 : vector<2x128xf32>
    %1083 = vector.extract_strided_slice %1082 {offsets = [0, 0], sizes = [2, 32], strides = [1, 1]} : vector<2x128xf32> to vector<2x32xf32>
    %1084 = vector.extract_strided_slice %1082 {offsets = [0, 32], sizes = [2, 32], strides = [1, 1]} : vector<2x128xf32> to vector<2x32xf32>
    %1085 = vector.extract_strided_slice %1082 {offsets = [0, 64], sizes = [2, 32], strides = [1, 1]} : vector<2x128xf32> to vector<2x32xf32>
    %cst_282 = arith.constant 2.000000e+00 : f32
    %1086 = vector.broadcast %cst_282 : f32 to vector<2x32xf32>
    %1087 = arith.mulf %1086, %1085 : vector<2x32xf32>
    %cst_283 = arith.constant 1.000000e+00 : f32
    %1088 = vector.broadcast %cst_283 : f32 to vector<2x32xf32>
    %1089 = arith.subf %1087, %1088 : vector<2x32xf32>
    %1090 = vector.extract_strided_slice %1082 {offsets = [0, 96], sizes = [2, 32], strides = [1, 1]} : vector<2x128xf32> to vector<2x32xf32>
    %1091 = arith.mulf %1084, %1025 : vector<2x32xf32>
    %1092 = arith.mulf %1083, %1089 : vector<2x32xf32>
    %1093 = arith.addf %1091, %1092 : vector<2x32xf32>
    %1094 = math.tanh %1093 : vector<2x32xf32>
    %1095 = arith.mulf %1090, %1094 : vector<2x32xf32>
    %cst_284 = arith.constant dense<0.000000e+00> : vector<2x128xf32>
    %1096 = tpu.matmul %1095, %12, %cst_284 {dimension_numbers = #tpu.dot_dimension_numbers<[1], [0], [0], [1], [0, 0, 1, 1], [], []>} : vector<2x32xf32>, vector<32x128xf32>, vector<2x128xf32> -> vector<2x128xf32>
    %cst_285 = arith.constant dense<0.000000e+00> : vector<2x128xf32>
    %1097 = tpu.matmul %1070, %18, %cst_285 {dimension_numbers = #tpu.dot_dimension_numbers<[1], [0], [0], [1], [0, 0, 1, 1], [], []>} : vector<2x32xf32>, vector<32x128xf32>, vector<2x128xf32> -> vector<2x128xf32>
    %1098 = arith.addf %1096, %1097 : vector<2x128xf32>
    %1099 = arith.addf %1098, %26 : vector<2x128xf32>
    %1100 = arith.negf %1099 : vector<2x128xf32>
    %1101 = math.exp %1100 : vector<2x128xf32>
    %cst_286 = arith.constant 1.000000e+00 : f32
    %1102 = vector.broadcast %cst_286 : f32 to vector<2x128xf32>
    %1103 = arith.addf %1102, %1101 : vector<2x128xf32>
    %1104 = arith.divf %1102, %1103 : vector<2x128xf32>
    %1105 = vector.extract_strided_slice %1104 {offsets = [0, 0], sizes = [2, 32], strides = [1, 1]} : vector<2x128xf32> to vector<2x32xf32>
    %1106 = vector.extract_strided_slice %1104 {offsets = [0, 32], sizes = [2, 32], strides = [1, 1]} : vector<2x128xf32> to vector<2x32xf32>
    %1107 = vector.extract_strided_slice %1104 {offsets = [0, 64], sizes = [2, 32], strides = [1, 1]} : vector<2x128xf32> to vector<2x32xf32>
    %cst_287 = arith.constant 2.000000e+00 : f32
    %1108 = vector.broadcast %cst_287 : f32 to vector<2x32xf32>
    %1109 = arith.mulf %1108, %1107 : vector<2x32xf32>
    %cst_288 = arith.constant 1.000000e+00 : f32
    %1110 = vector.broadcast %cst_288 : f32 to vector<2x32xf32>
    %1111 = arith.subf %1109, %1110 : vector<2x32xf32>
    %1112 = vector.extract_strided_slice %1104 {offsets = [0, 96], sizes = [2, 32], strides = [1, 1]} : vector<2x128xf32> to vector<2x32xf32>
    %1113 = arith.mulf %1106, %1068 : vector<2x32xf32>
    %1114 = arith.mulf %1105, %1111 : vector<2x32xf32>
    %1115 = arith.addf %1113, %1114 : vector<2x32xf32>
    %1116 = math.tanh %1115 : vector<2x32xf32>
    %1117 = arith.mulf %1112, %1116 : vector<2x32xf32>
    %c15 = arith.constant 15 : index
    %c0_289 = arith.constant 0 : index
    %c0_290 = arith.constant 0 : index
    %1118 = vector.load %arg8[%c15, %c0_289, %c0_290] : memref<16x2x32xf32, #tpu.memory_space<vmem>>, vector<1x2x32xf32>
    %1119 = vector.shape_cast %1118 : vector<1x2x32xf32> to vector<2x32xf32>
    %1120 = vector.shape_cast %1117 : vector<2x32xf32> to vector<1x2x32xf32>
    tpu.vector_store %arg8[%c15, %c0_289, %c0_290], %1120 {strides = array<i32>} : memref<16x2x32xf32, #tpu.memory_space<vmem>>, vector<1x2x32xf32>,
    %c0_291 = arith.constant 0 : index
    %c0_292 = arith.constant 0 : index
    %1121 = vector.load %arg5[%c0_291, %c0_292] : memref<8x16xf32, #tpu.memory_space<vmem>>, vector<8x16xf32>
    %c0_293 = arith.constant 0 : index
    %c0_294 = arith.constant 0 : index
    %1122 = vector.load %arg6[%c0_293, %c0_294] : memref<8x1xf32, #tpu.memory_space<vmem>>, vector<8x1xf32>
    %c0_295 = arith.constant 0 : index
    %c0_296 = arith.constant 0 : index
    %c0_297 = arith.constant 0 : index
    %1123 = vector.load %arg8[%c0_295, %c0_296, %c0_297] : memref<16x2x32xf32, #tpu.memory_space<vmem>>, vector<16x1x32xf32>
    %1124 = vector.shape_cast %1123 : vector<16x1x32xf32> to vector<16x32xf32>
    %cst_298 = arith.constant dense<0.000000e+00> : vector<8x32xf32>
    %1125 = tpu.matmul %1121, %1124, %cst_298 {dimension_numbers = #tpu.dot_dimension_numbers<[1], [0], [0], [1], [0, 0, 1, 1], [], []>} : vector<8x16xf32>, vector<16x32xf32>, vector<8x32xf32> -> vector<8x32xf32>
    %1126 = vector.broadcast %1122 : vector<8x1xf32> to vector<8x32xf32>
    %1127 = arith.addf %1125, %1126 : vector<8x32xf32>
    %c0_299 = arith.constant 0 : index
    %c0_300 = arith.constant 0 : index
    %c0_301 = arith.constant 0 : index
    %1128 = vector.load %arg7[%c0_299, %c0_300, %c0_301] : memref<2x8x32xf32, #tpu.memory_space<vmem>>, vector<1x8x32xf32>
    %1129 = vector.shape_cast %1128 : vector<1x8x32xf32> to vector<8x32xf32>
    %1130 = vector.shape_cast %1127 : vector<8x32xf32> to vector<1x8x32xf32>
    tpu.vector_store %arg7[%c0_299, %c0_300, %c0_301], %1130 {strides = array<i32>} : memref<2x8x32xf32, #tpu.memory_space<vmem>>, vector<1x8x32xf32>,
    %c0_302 = arith.constant 0 : index
    %c1_303 = arith.constant 1 : index
    %c0_304 = arith.constant 0 : index
    %1131 = vector.load %arg8[%c0_302, %c1_303, %c0_304] : memref<16x2x32xf32, #tpu.memory_space<vmem>>, vector<16x1x32xf32>
    %1132 = vector.shape_cast %1131 : vector<16x1x32xf32> to vector<16x32xf32>
    %cst_305 = arith.constant dense<0.000000e+00> : vector<8x32xf32>
    %1133 = tpu.matmul %1121, %1132, %cst_305 {dimension_numbers = #tpu.dot_dimension_numbers<[1], [0], [0], [1], [0, 0, 1, 1], [], []>} : vector<8x16xf32>, vector<16x32xf32>, vector<8x32xf32> -> vector<8x32xf32>
    %1134 = vector.broadcast %1122 : vector<8x1xf32> to vector<8x32xf32>
    %1135 = arith.addf %1133, %1134 : vector<8x32xf32>
    %c1_306 = arith.constant 1 : index
    %c0_307 = arith.constant 0 : index
    %c0_308 = arith.constant 0 : index
    %1136 = vector.load %arg7[%c1_306, %c0_307, %c0_308] : memref<2x8x32xf32, #tpu.memory_space<vmem>>, vector<1x8x32xf32>
    %1137 = vector.shape_cast %1136 : vector<1x8x32xf32> to vector<8x32xf32>
    %1138 = vector.shape_cast %1135 : vector<8x32xf32> to vector<1x8x32xf32>
    tpu.vector_store %arg7[%c1_306, %c0_307, %c0_308], %1138 {strides = array<i32>} : memref<2x8x32xf32, #tpu.memory_space<vmem>>, vector<1x8x32xf32>,
    return
  }
  func.func @transform_0(%arg0: i32) -> (i32, i32) {
    %c0_i32 = arith.constant 0 : i32
    %c0_i32_0 = arith.constant 0 : i32
    %c0_i32_1 = arith.constant 0 : i32
    return %c0_i32, %c0_i32_0 : i32, i32
  }
  func.func @transform_1(%arg0: i32) -> (i32, i32, i32) {
    %c0_i32 = arith.constant 0 : i32
    %c0_i32_0 = arith.constant 0 : i32
    %c0_i32_1 = arith.constant 0 : i32
    %c0_i32_2 = arith.constant 0 : i32
    return %c0_i32, %c0_i32_0, %c0_i32_1 : i32, i32, i32
  }
  func.func @transform_2(%arg0: i32) -> (i32, i32, i32) {
    %c0_i32 = arith.constant 0 : i32
    %c0_i32_0 = arith.constant 0 : i32
    %c0_i32_1 = arith.constant 0 : i32
    %c0_i32_2 = arith.constant 0 : i32
    return %c0_i32, %c0_i32_0, %c0_i32_1 : i32, i32, i32
  }
  func.func @transform_3(%arg0: i32) -> (i32, i32, i32) {
    %c0_i32 = arith.constant 0 : i32
    %c0_i32_0 = arith.constant 0 : i32
    %c0_i32_1 = arith.constant 0 : i32
    %c0_i32_2 = arith.constant 0 : i32
    return %c0_i32, %c0_i32_0, %c0_i32_1 : i32, i32, i32
  }
  func.func @transform_4(%arg0: i32) -> (i32, i32) {
    %c0_i32 = arith.constant 0 : i32
    %c0_i32_0 = arith.constant 0 : i32
    %c0_i32_1 = arith.constant 0 : i32
    return %c0_i32, %c0_i32_0 : i32, i32
  }
  func.func @transform_5(%arg0: i32) -> (i32, i32) {
    %c0_i32 = arith.constant 0 : i32
    %c0_i32_0 = arith.constant 0 : i32
    %c0_i32_1 = arith.constant 0 : i32
    return %c0_i32, %c0_i32_0 : i32, i32
  }
  func.func @transform_6(%arg0: i32) -> (i32, i32, i32) {
    %c0_i32 = arith.constant 0 : i32
    %c0_i32_0 = arith.constant 0 : i32
    %c0_i32_1 = arith.constant 0 : i32
    %c0_i32_2 = arith.constant 0 : i32
    return %c0_i32, %c0_i32_0, %c0_i32_1 : i32, i32, i32
  }
}

</mosaic_0001>

<bundles_post_ra>
// kernel: tpu_custom_call.1
= control target key start
LH: loop header
LB: loop body
LE: loop exit
PB: predicated region body
PF: predicated region fallthrough
CT: control target
= control target key end

     0   :  { %11 = vsyncpa [#allocation4], 0  ;;  %s11395_s0 = inlined_call_operand.hbm [shape: f32[32,32], index: 0, kind: input, shape index: {}]   ;;  %s11396_s1 = inlined_call_operand.hbm [shape: f32[3,32,128], index: 1, kind: input, shape index: {}]   ;;  %s11397_s2 = inlined_call_operand.hbm [shape: f32[3,32,128], index: 2, kind: input, shape index: {}]   ;;  %s11398_s3 = inlined_call_operand.vmem [shape: f32[3,1,128], index: 3, kind: input, shape index: {}]   ;;  %s11399_s4 = inlined_call_operand.vmem [shape: f32[8,16], index: 4, kind: input, shape index: {}]   ;;  %s11400_s5 = inlined_call_operand.vmem [shape: f32[8,1], index: 5, kind: input, shape index: {}]   ;;  %s11401_s6 = inlined_call_operand.hbm [shape: f32[2,8,32], index: 6, kind: output, shape index: {}]  }
   0x1   :  { %12 = vsyncpa [#allocation7], 0 }
   0x2   :  { %13 = vsyncpa [#allocation5], 0  ;;  %s10152_s21 = smov [#allocation6]   ;;  %s10153_s23 = smov [#allocation3]  }
   0x3   :  { %s31_s22 = sshll.u32 %s10152_s21, 4  ;;  %s19_s24 = sshll.u32 %s10153_s23, 4  ;;  %s32_s22 = int_to_ptr.vmem [resolvable:$true] %s31_s22  ;;  %s10199_s24 = int_to_ptr.vmem [resolvable:$true] %s19_s24 }
   0x4   :  { %s10058_s27 = scalar_lea.hbm %s11396_s1, 1536 }
   0x5   :  { %p10059_p0 = scmp.ne.s32.totalorder %s11396_s1, %s10058_s27  ;;  %p10062_p1 = scmp.lt.u32.totalorder %s10058_s27, %s11396_s1 }
   0x7   :  { %p10064_p2 = pnand %p10062_p1, %p10059_p0 }
   0x9   :  { %10067 = shalt.err (!%p10064_p2)
}
   0xa   :  { %s10068_s8 = scalar_lea.vmem %s32_s22, 1536  ;;  %p10073_p4 = scmp.lt.s32.totalorder %s32_s22, %s32_s22 }
   0xb   :  { %p10069_p3 = scmp.ne.s32.totalorder %s32_s22, %s10068_s8  ;;  %p10074_p5 = scmp.lt.s32.totalorder %s10068_s8, %s10068_s8 }
   0xd   :  { %p10075_p6 = por %p10074_p5, %p10073_p4 }
   0xf   :  { %p10076_p7 = pnand %p10075_p6, %p10069_p3 }
  0x11   :  { %10079 = shalt.err (!%p10076_p7)
}
  0x12   :  { %s10154_s9 = smov 128   ;;  %s10155_s10 = smov 8  }
  0x13   :  { %37 = dma.hbm_to_vmem [thread:$0]  %s11396_s1, 1536, %s32_s22, [#allocation7], %s10154_s9, %s10154_s9, %s10155_s10  }
  0x14   :  { %s10080_s15 = scalar_lea.hbm %s11395_s0, 512 }
  0x15   :  { %p10081_p8 = scmp.ne.s32.totalorder %s11395_s0, %s10080_s15  ;;  %p10084_p9 = scmp.lt.u32.totalorder %s10080_s15, %s11395_s0 }
  0x17   :  { %p10086_p10 = pnand %p10084_p9, %p10081_p8 }
  0x19   :  { %10089 = shalt.err (!%p10086_p10)
}
  0x1a   :  { %s10090_s20 = scalar_lea.vmem %s10199_s24, 512  ;;  %p10095_p12 = scmp.lt.s32.totalorder %s10199_s24, %s10199_s24 }
  0x1b   :  { %p10091_p11 = scmp.ne.s32.totalorder %s10199_s24, %s10090_s20  ;;  %p10096_p13 = scmp.lt.s32.totalorder %s10090_s20, %s10090_s20 }
  0x1d   :  { %p10097_p0 = por %p10096_p13, %p10095_p12 }
  0x1f   :  { %p10098_p1 = pnand %p10097_p0, %p10091_p11 }
  0x21   :  { %10101 = shalt.err (!%p10098_p1)
}
  0x22   :  { %25 = dma.hbm_to_vmem [thread:$0]  %s11395_s0, 512, %s10199_s24, [#allocation4], %s10154_s9, %s10154_s9, %s10155_s10  }
  0x23   :  { %s10156_s22 = smov [#allocation8]   ;;  %s10102_s27 = scalar_lea.hbm %s11397_s2, 1536 }
  0x24   :  { %s43_s23 = sshll.u32 %s10156_s22, 4  ;;  %p10103_p2 = scmp.ne.s32.totalorder %s11397_s2, %s10102_s27  ;;  %s44_s23 = int_to_ptr.vmem [resolvable:$true] %s43_s23 }
  0x25   :  { %p10106_p3 = scmp.lt.u32.totalorder %s10102_s27, %s11397_s2 }
  0x27   :  { %p10108_p4 = pnand %p10106_p3, %p10103_p2 }
  0x29   :  { %10111 = shalt.err (!%p10108_p4)
}
  0x2a   :  { %s10112_s8 = scalar_lea.vmem %s44_s23, 1536  ;;  %p10117_p6 = scmp.lt.s32.totalorder %s44_s23, %s44_s23 }
  0x2b   :  { %p10113_p5 = scmp.ne.s32.totalorder %s44_s23, %s10112_s8  ;;  %p10118_p7 = scmp.lt.s32.totalorder %s10112_s8, %s10112_s8 }
  0x2d   :  { %p10119_p8 = por %p10118_p7, %p10117_p6 }
  0x2f   :  { %p10120_p9 = pnand %p10119_p8, %p10113_p5 }
  0x31   :  { %10123 = shalt.err (!%p10120_p9)
}
  0x32   :  { %49 = dma.hbm_to_vmem [thread:$0]  %s11397_s2, 1536, %s44_s23, [#allocation7], %s10154_s9, %s10154_s9, %s10155_s10  }
  0x33   :  { %10146 = dma.done.wait [#allocation4], 512  }
  0x34   :  { %10147 = vsyncadd [#allocation4], 4294966784 }
  0x35   :  { %10148 = dma.done.wait [#allocation7], 3072  }
  0x36   :  { %10149 = vsyncadd [#allocation7], 4294964224  ;;  %v10157_v0 = vmov 0.0|0.0   ;;  %vm10158_vm0 = vmmov 0   ;;  %v10159_v1 = vmov 0.0   ;;  %v69_v2 = vld [vmem:[#allocation6] sm:$0xff] }
  0x37   :  { %9265 = vmatprep.subr.bf16.mxu1 %v10157_v0  ;;  %8371 = vmatprep.mubr.msk.f32.mxu1 %vm10158_vm0, %v10159_v1  ;;  %v70_v3 = vld [vmem:[#allocation6 + $0x8] sm:$0xff]  ;;  %v188_v4 = vld [vmem:[#allocation8] sm:$0xff]  ;;  %vm80_vm1 = vcmask 261120   ;;  %v71_v7 = vld [vmem:[#allocation6 + $0x10] sm:$0xff]  ;;  %s10160_s12 = smov 64   ;;  %s10161_s13 = smov 32  }
  0x38   :  { %v9257_v5 = vpack.c.bf16 %v70_v3, %v69_v2  ;;  %v189_v6 = vld [vmem:[#allocation8 + $0x8] sm:$0xff]  ;;  %v72_v8 = vld [vmem:[#allocation6 + $0x18] sm:$0xff]  ;;  %v65_v11 = vld [vmem:[#allocation3] sm:$0xff]  ;;  %vm765_vm2 = vcmask 254976   ;;  %vm7488_vm3 = vcmask 1041409   ;;  %vm7491_vm4 = vcmask 1042434  }
  0x39   :  { %v10254_v9 = vpack.c.bf16 %v189_v6, %v188_v4  ;;  %v9261_v10 = vpack.c.bf16 %v72_v8, %v71_v7  ;;  %v190_v12 = vld [vmem:[#allocation8 + $0x10] sm:$0xff]  ;;  %v191_v13 = vld [vmem:[#allocation8 + $0x18] sm:$0xff]  ;;  %8357 = vmatprep.mubr.msk.f32.mxu0 %vm80_vm1, %v65_v11  ;;  %v66_v15 = vld [vmem:[#allocation3 + $0x8] sm:$0xff]  ;;  %vm7494_vm5 = vcmask 1043459   ;;  %vm7497_vm6 = vcmask 1044484   ;;  %s10163_s8 = smov [#allocation9]  }
  0x3a   :  { %9258 = vmatprep.subr.bf16.mxu0 %v9257_v5  ;;  %v10258_v14 = vpack.c.bf16 %v191_v13, %v190_v12  ;;  %v10271_v16 = vld [vmem:[%s11398_s3] ss:$0 sm:$0xff]  ;;  %v194_v35 = vld [vmem:[#allocation8 + $0x28] sm:$0xff]  ;;  %v67_v36 = vld [vmem:[#allocation3 + $0x10] sm:$0xff]  ;;  %vm7500_vm7 = vcmask 1045509   ;;  %vm7503_vm8 = vcmask 1046534  }
  0x3b   :  { %9260 = vmatpush3.bf16.msra.mxu0 %v9257_v5  ;;  %9267 = vmatpush3.bf16.msra.mxu1 %v10254_v9  ;;  %v193_v34 = vld [vmem:[#allocation8 + $0x20] sm:$0xff]  ;;  %v68_v38 = vld [vmem:[#allocation3 + $0x18] sm:$0xff]  ;;  %v195_v39 = vld [vmem:[#allocation8 + $0x30] sm:$0xff]  ;;  %vm7506_vm9 = vcmask 1047559   ;;  %vm7524_vm10 = vcmask 130048  }
  0x3c   :  { %9262 = vmatprep.subr.bf16.mxu0 %v9261_v10  ;;  %9268 = vmatprep.subr.bf16.mxu1 %v10157_v0  ;;  %v10284_v37 = vpack.c.bf16 %v194_v35, %v193_v34  ;;  %v196_v40 = vld [vmem:[#allocation8 + $0x38] sm:$0xff]  ;;  %v179_v41 = vld [vmem:[#allocation6 + $0x20] sm:$0xff]  ;;  %v180_v42 = vld [vmem:[#allocation6 + $0x28] sm:$0xff] }
  0x3d   :  { %v181_v43 = vld [vmem:[#allocation6 + $0x30] sm:$0xff]  ;;  %v10289_v44 = vpack.c.bf16 %v196_v40, %v195_v39  ;;  %v10293_v45 = vpack.c.bf16 %v180_v42, %v179_v41  ;;  %v182_v46 = vld [vmem:[#allocation6 + $0x38] sm:$0xff]  ;;  %v10326_v56 = vld [vmem:[%s11398_s3 + $0x1] ss:$0 sm:$0xff] }
  0x3e   :  { %v10297_v47 = vpack.c.bf16 %v182_v46, %v181_v43  ;;  %v200_v34 = vld [vmem:[#allocation8 + $0x50] sm:$0xff]  ;;  %v187_v41 = vld [vmem:[#allocation6 + $0x58] sm:$0xff] }
  0x3f   :  { %9264 = vmatpush3.bf16.msra.mxu0 %v9261_v10  ;;  %9270 = vmatpush3.bf16.msra.mxu1 %v10258_v14  ;;  %v186_v40 = vld [vmem:[#allocation6 + $0x50] sm:$0xff] }
  0x40   :  { %9271 = vmatprep.subr.bf16.mxu0 %v10157_v0  ;;  %9277 = vmatprep.subr.bf16.mxu1 %v10157_v0  ;;  %v10351_v43 = vpack.c.bf16 %v187_v41, %v186_v40 }
  0x42   :  { %8358 = vmatmul.mubr.msk.f32.vlgmr.msra.gmra.mrb[0].mxu0 %vm80_vm1, %v66_v15  ;;  %8372 = vmatmul.mubr.f32.vlgmr.msra.gmra.mrb[0].mxu1 %v10159_v1 }
  0x43   :  { %8393 = vmatprep.mubr.msk.f32.mxu1 %vm10158_vm0, %v10159_v1  ;;  %8360 = vmatprep.mubr.msk.f32.mxu0 %vm80_vm1, %v67_v36  ;;  %v201_v36 = vld [vmem:[#allocation8 + $0x58] sm:$0xff] }
  0x44   :  { %9273 = vmatpush3.bf16.msra.mxu0 %v10284_v37  ;;  %9279 = vmatpush3.bf16.msra.mxu1 %v10293_v45  ;;  %v10346_v42 = vpack.c.bf16 %v201_v36, %v200_v34 }
  0x45   :  { %9274 = vmatprep.subr.bf16.mxu0 %v10157_v0  ;;  %9280 = vmatprep.subr.bf16.mxu1 %v10157_v0 }
  0x46   :  { %8361 = vmatmul.mubr.msk.f32.gmra.mrb[2].mxu0 %vm80_vm1, %v68_v38  ;;  %v184_v38 = vld [vmem:[#allocation6 + $0x40] sm:$0xff] }
  0x47   :  { %8382 = vmatprep.mubr.msk.f32.mxu0 %vm10158_vm0, %v10159_v1 }
  0x48   :  { %9276 = vmatpush3.bf16.msra.mxu0 %v10289_v44  ;;  %9282 = vmatpush3.bf16.msra.mxu1 %v10297_v47 }
  0x49   :  { %9283 = vmatprep.subr.bf16.mxu0 %v10157_v0  ;;  %9289 = vmatprep.subr.bf16.mxu1 %v10157_v0 }
  0x4b   :  { %8383 = vmatmul.mubr.f32.vlgmr.msra.gmra.mrb[4].mxu0 %v10159_v1 }
  0x4c   :  { %9285 = vmatpush3.bf16.msra.mxu0 %v10254_v9  ;;  %8404 = vmatprep.mubr.msk.f32.mxu0 %vm10158_vm0, %v10159_v1 }
  0x4d   :  { %9286 = vmatprep.subr.bf16.mxu0 %v10157_v0 }
  0x50   :  { %9288 = vmatpush3.bf16.msra.mxu0 %v10258_v14 }
  0x51   :  { %9295 = vmatprep.subr.bf16.mxu0 %v10157_v0 }
 0x115   :  { %v10273_v17 = vpop.f32.mrb[0].mxu0  ;;  %v287_v18 = vpop.f32.mrb[0].mxu1 }
 0x116   :  { %v159_v19 = vpop.f32.mrb[1].mxu0  ;;  %v8373_v20 = vpop.f32.mrb[1].mxu1 }
 0x117   :  { %v10276_v21 = vadd.f32 %v10271_v16, %v159_v19 }
 0x119   :  { %v291_v22 = vadd.f32 %v287_v18, %v10276_v21  ;;  %v10313_v51 = vpop.f32.mrb[2].mxu0 }
 0x11a   :  { %v10315_v52 = vpop.f32.mrb[3].mxu0 }
 0x11b   :  { %v7760_v23 = vmul.f32 -1.442695, %v291_v22 }
 0x11d   :  { %9764 = vpow2.f32 %v7760_v23 }
 0x11e   :  { %v383_v53 = vpop.f32.mrb[4].mxu0 }
 0x11f   :  { %v8384_v54 = vpop.f32.mrb[5].mxu0 }
 0x127   :  { %v9765_v24 = vpop.eup %9764 }
 0x128   :  { %v295_v25 = vadd.f32 1.0, %v9765_v24 }
 0x12a   :  { %9766 = vrcp.f32 %v295_v25 }
 0x134   :  { %v9767_v26 = vpop.eup %9766 }
 0x135   :  { %v298_v27 = vmul.f32 2.0, %v9767_v26  ;;  %v300_v31 = vmul.f32 0.0, %v9767_v26 }
 0x137   :  { %v7761_v28 = vadd.f32 -1.0, %v298_v27 }
 0x139   :  { %302 = vrot.lane.b32.xlu0 %v7761_v28, %s10160_s12 }
 0x1ab   :  { %v303_v29 = vpop.permute.xlu0 %302 }
 0x1ac   :  { %v305_v30 = vmul.f32 %v9767_v26, %v303_v29 }
 0x1ae   :  { %307 = vrot.lane.b32.xlu0 %v305_v30, %s10161_s13 }
 0x220   :  { %v308_v32 = vpop.permute.xlu0 %307 }
 0x221   :  { %v10281_v33 = vadd.f32 %v308_v32, %v300_v31  ;;  %v198_v31 = vld [vmem:[#allocation8 + $0x40] sm:$0xff]  ;;  %v199_v32 = vld [vmem:[#allocation8 + $0x48] sm:$0xff] }
 0x222   :  { %v10341_v35 = vpack.c.bf16 %v199_v32, %v198_v31 }
 0x223   :  { %9768 = vtanh.f32 %v10281_v33  ;;  %v571_v24 = vrot.slane %v10281_v33, 6  ;;  %v185_v33 = vld [vmem:[#allocation6 + $0x48] sm:$0xff] }
 0x224   :  { %v10343_v39 = vpack.c.bf16 %v185_v33, %v184_v38 }
 0x22d   :  { %v9769_v48 = vpop.eup %9768 }
 0x22e   :  { %313 = vrot.lane.b32.xlu1 %v9769_v48, %s10160_s12 }
 0x2a0   :  { %v314_v49 = vpop.permute.xlu1 %313 }
 0x2a1   :  { %v316_v50 = vmul.f32 %v9767_v26, %v314_v49 }
 0x2a3   :  { %388 = vrot.lane.b32.xlu1 %v316_v50, %s10161_s13 }
 0x315   :  { %v389_v55 = vpop.permute.xlu1 %388 }
 0x316   :  { %8394 = vmatmul.mubr.msk.f32.vlgmr.msra.gmra.mrb[2].mxu1 %vm80_vm1, %v389_v55  ;;  %8405 = vmatmul.mubr.msk.f32.vlgmr.msra.gmra.mrb[6].mxu0 %vm80_vm1, %v389_v55 }
 0x317   :  { %8415 = vmatprep.mubr.msk.f32.mxu1 %vm10158_vm0, %v10159_v1  ;;  %8426 = vmatprep.mubr.msk.f32.mxu0 %vm10158_vm0, %v10159_v1 }
 0x318   :  { %9291 = vmatpush3.bf16.msra.mxu1 %v10341_v35  ;;  %9297 = vmatpush3.bf16.msra.mxu0 %v10343_v39 }
 0x319   :  { %9292 = vmatprep.subr.bf16.mxu1 %v10157_v0  ;;  %9298 = vmatprep.subr.bf16.mxu0 %v10157_v0 }
 0x31c   :  { %9294 = vmatpush3.bf16.msra.mxu1 %v10346_v42  ;;  %9300 = vmatpush3.bf16.msra.mxu0 %v10351_v43 }
 0x31d   :  { %9301 = vmatprep.subr.bf16.mxu1 %v10157_v0  ;;  %9307 = vmatprep.subr.bf16.mxu0 %v10157_v0 }
 0x31f   :  { %8416 = vmatmul.mubr.f32.vlgmr.msra.gmra.mrb[4].mxu1 %v10159_v1 }
 0x320   :  { %9303 = vmatpush3.bf16.msra.mxu1 %v10284_v37  ;;  %8437 = vmatprep.mubr.msk.f32.mxu1 %vm10158_vm0, %v10159_v1 }
 0x321   :  { %9304 = vmatprep.subr.bf16.mxu1 %v10157_v0 }
 0x324   :  { %9306 = vmatpush3.bf16.msra.mxu1 %v10289_v44 }
 0x325   :  { %9313 = vmatprep.subr.bf16.mxu1 %v10157_v0 }
 0x3e9   :  { %v458_v57 = vpop.f32.mrb[2].mxu1  ;;  %v554_v58 = vpop.f32.mrb[6].mxu0 }
 0x3ea   :  { %v459_v59 = vadd.f32 %v458_v57, %v383_v53  ;;  %v559_v60 = vrot.slane %v554_v58, 6  ;;  %v8395_v61 = vpop.f32.mrb[3].mxu1  ;;  %v8406_v62 = vpop.f32.mrb[7].mxu0 }
 0x3eb   :  { %v10399_v61 = vld [vmem:[%s11398_s3 + $0x2] ss:$0 sm:$0xff] }
 0x3ec   :  { %v462_v63 = vadd.f32 %v10326_v56, %v459_v59  ;;  %v561_v2 = vadd.f32 %v559_v60, %v10276_v21 }
 0x3ee   :  { %v7763_v3 = vmul.f32 -1.442695, %v462_v63  ;;  %v7766_v4 = vmul.f32 -1.442695, %v561_v2 }
 0x3f0   :  { %9770 = vpow2.f32 %v7763_v3 }
 0x3f1   :  { %9772 = vpow2.f32 %v7766_v4 }
 0x3f2   :  { %v656_v57 = vpop.f32.mrb[4].mxu1 }
 0x3f3   :  { %v8417_v58 = vpop.f32.mrb[5].mxu1 }
 0x3fa   :  { %v9771_v5 = vpop.eup %9770 }
 0x3fb   :  { %v9773_v6 = vpop.eup %9772  ;;  %v466_v7 = vadd.f32 1.0, %v9771_v5 }
 0x3fc   :  { %v565_v8 = vadd.f32 1.0, %v9773_v6 }
 0x3fd   :  { %9774 = vrcp.f32 %v466_v7 }
 0x3fe   :  { %9776 = vrcp.f32 %v565_v8 }
 0x407   :  { %v9775_v10 = vpop.eup %9774 }
 0x408   :  { %v9777_v11 = vpop.eup %9776  ;;  %v469_v12 = vmul.f32 2.0, %v9775_v10  ;;  %v471_v25 = vmul.f32 0.0, %v9775_v10 }
 0x409   :  { %v568_v13 = vmul.f32 2.0, %v9777_v11  ;;  %v573_v26 = vmul.f32 %v9777_v11, %v571_v24 }
 0x40a   :  { %v7764_v15 = vadd.f32 -1.0, %v469_v12 }
 0x40b   :  { %v7767_v18 = vadd.f32 -1.0, %v568_v13 }
 0x40c   :  { %473 = vrot.lane.b32.xlu0 %v7764_v15, %s10160_s12 }
 0x40d   :  { %575 = vrot.lane.b32.xlu1 %v7767_v18, %s10160_s12 }
 0x47e   :  { %v474_v19 = vpop.permute.xlu0 %473 }
 0x47f   :  { %v576_v20 = vpop.permute.xlu1 %575  ;;  %v476_v22 = vmul.f32 %v9775_v10, %v474_v19 }
 0x480   :  { %v578_v23 = vmul.f32 %v9777_v11, %v576_v20 }
 0x481   :  { %478 = vrot.lane.b32.xlu0 %v476_v22, %s10161_s13 }
 0x482   :  { %580 = vrot.lane.b32.xlu1 %v578_v23, %s10161_s13 }
 0x4f3   :  { %v479_v27 = vpop.permute.xlu0 %478 }
 0x4f4   :  { %v581_v28 = vpop.permute.xlu1 %580  ;;  %v10335_v29 = vadd.f32 %v479_v27, %v471_v25 }
 0x4f5   :  { %v10337_v30 = vadd.f32 %v581_v28, %v573_v26 }
 0x4f6   :  { %9778 = vtanh.f32 %v10335_v29 }
 0x4f7   :  { %9780 = vtanh.f32 %v10337_v30 }
 0x500   :  { %v9779_v46 = vpop.eup %9778 }
 0x501   :  { %v9781_v48 = vpop.eup %9780  ;;  %484 = vrot.lane.b32.xlu0 %v9779_v46, %s10160_s12 }
 0x502   :  { %586 = vrot.lane.b32.xlu1 %v9781_v48, %s10160_s12 }
 0x573   :  { %v485_v49 = vpop.permute.xlu0 %484 }
 0x574   :  { %v587_v50 = vpop.permute.xlu1 %586  ;;  %v487_v53 = vmul.f32 %v9775_v10, %v485_v49 }
 0x575   :  { %v589_v54 = vmul.f32 %v9777_v11, %v587_v50 }
 0x576   :  { %661 = vrot.lane.b32.xlu0 %v487_v53, %s10161_s13 }
 0x577   :  { %v838_v55 = vrot.slane %v589_v54, 2 }
 0x579   :  { %839 = vrot.lane.b32.xlu1 %v838_v55, %s10161_s13 }
 0x5e8   :  { %v662_v59 = vpop.permute.xlu0 %661 }
 0x5e9   :  { %8427 = vmatmul.mubr.msk.f32.vlgmr.msra.gmra.mrb[8].mxu0 %vm80_vm1, %v662_v59  ;;  %8438 = vmatmul.mubr.msk.f32.vlgmr.msra.gmra.mrb[6].mxu1 %vm80_vm1, %v662_v59  ;;  %v1022_v59 = vrot.slane %v10337_v30, 6 }
 0x5ea   :  { %9309 = vmatpush3.bf16.msra.mxu0 %v10293_v45  ;;  %9315 = vmatpush3.bf16.msra.mxu1 %v10254_v9 }
 0x5eb   :  { %9310 = vmatprep.subr.bf16.mxu0 %v10157_v0  ;;  %9316 = vmatprep.subr.bf16.mxu1 %v10157_v0  ;;  %v840_v60 = vpop.permute.xlu1 %839 }
 0x5ec   :  { %8448 = vmatprep.mubr.msk.f32.mxu0 %vm10158_vm0, %v10159_v1  ;;  %8459 = vmatprep.mubr.msk.f32.mxu1 %vm10158_vm0, %v10159_v1 }
 0x5ee   :  { %9312 = vmatpush3.bf16.msra.mxu0 %v10297_v47  ;;  %9318 = vmatpush3.bf16.msra.mxu1 %v10258_v14 }
 0x5ef   :  { %9319 = vmatprep.subr.bf16.mxu0 %v10157_v0  ;;  %9325 = vmatprep.subr.bf16.mxu1 %v10157_v0 }
 0x5f1   :  { %8449 = vmatmul.mubr.msk.f32.vlgmr.msra.gmra.mrb[10].mxu0 %vm80_vm1, %v840_v60  ;;  %8460 = vmatmul.mubr.msk.f32.vlgmr.msra.gmra.mrb[8].mxu1 %vm80_vm1, %v840_v60 }
 0x5f2   :  { %9321 = vmatpush3.bf16.msra.mxu0 %v10341_v35  ;;  %8470 = vmatprep.mubr.msk.f32.mxu0 %vm10158_vm0, %v10159_v1 }
 0x5f3   :  { %9322 = vmatprep.subr.bf16.mxu0 %v10157_v0  ;;  %9327 = vmatpush3.bf16.msra.mxu1 %v10343_v39 }
 0x5f4   :  { %9328 = vmatprep.subr.bf16.mxu1 %v10157_v0  ;;  %8481 = vmatprep.mubr.msk.f32.mxu1 %vm10158_vm0, %v10159_v1 }
 0x5f6   :  { %9324 = vmatpush3.bf16.msra.mxu0 %v10346_v42 }
 0x5f7   :  { %9331 = vmatprep.subr.bf16.mxu0 %v10157_v0  ;;  %9330 = vmatpush3.bf16.msra.mxu1 %v10351_v43 }
 0x5f8   :  { %9337 = vmatprep.subr.bf16.mxu1 %v10157_v0 }
 0x6bc   :  { %v731_v62 = vpop.f32.mrb[8].mxu0  ;;  %v833_v63 = vpop.f32.mrb[6].mxu1 }
 0x6bd   :  { %v732_v2 = vadd.f32 %v731_v62, %v656_v57  ;;  %v8428_v3 = vpop.f32.mrb[9].mxu0  ;;  %v8439_v4 = vpop.f32.mrb[7].mxu1 }
 0x6bf   :  { %v735_v5 = vadd.f32 %v10399_v61, %v732_v2 }
 0x6c1   :  { %v7769_v6 = vmul.f32 -1.442695, %v735_v5 }
 0x6c3   :  { %9782 = vpow2.f32 %v7769_v6 }
 0x6c4   :  { %v909_v7 = vpop.f32.mrb[10].mxu0  ;;  %v1005_v8 = vpop.f32.mrb[8].mxu1 }
 0x6c5   :  { %v910_v10 = vadd.f32 %v909_v7, %v833_v63  ;;  %v1010_v11 = vrot.slane %v1005_v8, 4  ;;  %v8450_v12 = vpop.f32.mrb[11].mxu0  ;;  %v8461_v13 = vpop.f32.mrb[9].mxu1 }
 0x6c7   :  { %v913_v15 = vadd.f32 %v10326_v56, %v910_v10  ;;  %v1012_v18 = vadd.f32 %v1010_v11, %v10276_v21 }
 0x6c9   :  { %v7773_v19 = vmul.f32 -1.442695, %v913_v15  ;;  %v7776_v20 = vmul.f32 -1.442695, %v1012_v18 }
 0x6cb   :  { %9784 = vpow2.f32 %v7773_v19 }
 0x6cc   :  { %9786 = vpow2.f32 %v7776_v20 }
 0x6cd   :  { %v9783_v22 = vpop.eup %9782 }
 0x6ce   :  { %v739_v23 = vadd.f32 1.0, %v9783_v22 }
 0x6d0   :  { %9788 = vrcp.f32 %v739_v23 }
 0x6d5   :  { %v9785_v24 = vpop.eup %9784 }
 0x6d6   :  { %v9787_v25 = vpop.eup %9786  ;;  %v917_v26 = vadd.f32 1.0, %v9785_v24 }
 0x6d7   :  { %v1016_v27 = vadd.f32 1.0, %v9787_v25 }
 0x6d8   :  { %9790 = vrcp.f32 %v917_v26 }
 0x6d9   :  { %9792 = vrcp.f32 %v1016_v27 }
 0x6da   :  { %v9789_v28 = vpop.eup %9788 }
 0x6db   :  { %v742_v31 = vmul.f32 2.0, %v9789_v28  ;;  %v744_v55 = vmul.f32 0.0, %v9789_v28 }
 0x6dd   :  { %v7770_v32 = vadd.f32 -1.0, %v742_v31 }
 0x6df   :  { %746 = vrot.lane.b32.xlu0 %v7770_v32, %s10160_s12 }
 0x6e2   :  { %v9791_v34 = vpop.eup %9790 }
 0x6e3   :  { %v9793_v36 = vpop.eup %9792  ;;  %v920_v38 = vmul.f32 2.0, %v9791_v34  ;;  %v922_v60 = vmul.f32 %v9791_v34, %v10335_v29 }
 0x6e4   :  { %v1019_v33 = vmul.f32 2.0, %v9793_v36  ;;  %v1024_v62 = vmul.f32 %v9793_v36, %v1022_v59 }
 0x6e5   :  { %v7774_v40 = vadd.f32 -1.0, %v920_v38 }
 0x6e6   :  { %v7777_v41 = vadd.f32 -1.0, %v1019_v33 }
 0x6e7   :  { %924 = vrot.lane.b32.xlu1 %v7774_v40, %s10160_s12 }
 0x6e8   :  { %1026 = vrot.lane.b32.xlu0 %v7777_v41, %s10160_s12 }
 0x751   :  { %v747_v46 = vpop.permute.xlu0 %746 }
 0x752   :  { %v749_v48 = vmul.f32 %v9789_v28, %v747_v46 }
 0x754   :  { %751 = vrot.lane.b32.xlu1 %v749_v48, %s10161_s13 }
 0x759   :  { %v925_v49 = vpop.permute.xlu1 %924 }
 0x75a   :  { %v927_v50 = vmul.f32 %v9791_v34, %v925_v49  ;;  %v1027_v53 = vpop.permute.xlu0 %1026 }
 0x75b   :  { %v1029_v54 = vmul.f32 %v9793_v36, %v1027_v53 }
 0x75c   :  { %929 = vrot.lane.b32.xlu0 %v927_v50, %s10161_s13 }
 0x75d   :  { %1031 = vrot.lane.b32.xlu1 %v1029_v54, %s10161_s13 }
 0x7c6   :  { %v752_v57 = vpop.permute.xlu1 %751 }
 0x7c7   :  { %v10410_v58 = vadd.f32 %v752_v57, %v744_v55 }
 0x7c9   :  { %9794 = vtanh.f32 %v10410_v58 }
 0x7ce   :  { %v930_v63 = vpop.permute.xlu0 %929 }
 0x7cf   :  { %v1032_v2 = vpop.permute.xlu1 %1031  ;;  %v10415_v3 = vadd.f32 %v930_v63, %v922_v60 }
 0x7d0   :  { %v10417_v4 = vadd.f32 %v1032_v2, %v1024_v62 }
 0x7d1   :  { %9796 = vtanh.f32 %v10415_v3 }
 0x7d2   :  { %9798 = vtanh.f32 %v10417_v4 }
 0x7d3   :  { %v9795_v5 = vpop.eup %9794 }
 0x7d4   :  { %757 = vrot.lane.b32.xlu0 %v9795_v5, %s10160_s12 }
 0x7db   :  { %v9797_v6 = vpop.eup %9796 }
 0x7dc   :  { %v9799_v7 = vpop.eup %9798  ;;  %935 = vrot.lane.b32.xlu1 %v9797_v6, %s10160_s12 }
 0x7dd   :  { %1037 = vrot.lane.b32.xlu0 %v9799_v7, %s10160_s12 }
 0x846   :  { %v758_v29 = vpop.permute.xlu0 %757 }
 0x847   :  { %v760_v30 = vmul.f32 %v9789_v28, %v758_v29 }
 0x849   :  { %762 = vrot.lane.b32.xlu1 %v760_v30, %s10161_s13 }
 0x84e   :  { %v936_v8 = vpop.permute.xlu1 %935 }
 0x84f   :  { %v938_v10 = vmul.f32 %v9791_v34, %v936_v8  ;;  %v1038_v11 = vpop.permute.xlu0 %1037 }
 0x850   :  { %v1040_v12 = vmul.f32 %v9793_v36, %v1038_v11 }
 0x851   :  { %1114 = vrot.lane.b32.xlu0 %v938_v10, %s10161_s13 }
 0x852   :  { %v1291_v13 = vrot.slane %v1040_v12, 4 }
 0x854   :  { %1292 = vrot.lane.b32.xlu1 %v1291_v13, %s10161_s13 }
 0x8bb   :  { %v763_v15 = vpop.permute.xlu1 %762 }
 0x8bc   :  { %766 = vst.msk [vmem:[#allocation2] sm:$0x3] %vm765_vm2, %v763_v15  ;;  %8471 = vmatmul.mubr.msk.f32.vlgmr.msra.gmra.mrb[12].mxu0 %vm80_vm1, %v763_v15 }
 0x8bd   :  { %9333 = vmatpush3.bf16.msra.mxu0 %v10284_v37  ;;  %8492 = vmatprep.mubr.msk.f32.mxu0 %vm10158_vm0, %v10159_v1 }
 0x8be   :  { %9334 = vmatprep.subr.bf16.mxu0 %v10157_v0 }
 0x8c1   :  { %9336 = vmatpush3.bf16.msra.mxu0 %v10289_v44 }
 0x8c2   :  { %9343 = vmatprep.subr.bf16.mxu0 %v10157_v0 }
 0x8c3   :  { %v1115_v18 = vpop.permute.xlu0 %1114 }
 0x8c4   :  { %8482 = vmatmul.mubr.msk.f32.vlgmr.msra.gmra.mrb[10].mxu1 %vm80_vm1, %v1115_v18  ;;  %8493 = vmatmul.mubr.msk.f32.vlgmr.msra.gmra.mrb[14].mxu0 %vm80_vm1, %v1115_v18 }
 0x8c5   :  { %9339 = vmatpush3.bf16.msra.mxu1 %v10293_v45  ;;  %9345 = vmatpush3.bf16.msra.mxu0 %v10254_v9 }
 0x8c6   :  { %9340 = vmatprep.subr.bf16.mxu1 %v10157_v0  ;;  %9346 = vmatprep.subr.bf16.mxu0 %v10157_v0  ;;  %v1293_v19 = vpop.permute.xlu1 %1292 }
 0x8c7   :  { %8503 = vmatprep.mubr.msk.f32.mxu1 %vm10158_vm0, %v10159_v1  ;;  %8514 = vmatprep.mubr.msk.f32.mxu0 %vm10158_vm0, %v10159_v1 }
 0x8c9   :  { %9342 = vmatpush3.bf16.msra.mxu1 %v10297_v47  ;;  %9348 = vmatpush3.bf16.msra.mxu0 %v10258_v14 }
 0x8ca   :  { %9349 = vmatprep.subr.bf16.mxu1 %v10157_v0  ;;  %9355 = vmatprep.subr.bf16.mxu0 %v10157_v0 }
 0x8cc   :  { %8504 = vmatmul.mubr.msk.f32.vlgmr.msra.gmra.mrb[12].mxu1 %vm80_vm1, %v1293_v19  ;;  %8515 = vmatmul.mubr.msk.f32.vlgmr.msra.gmra.mrb[16].mxu0 %vm80_vm1, %v1293_v19 }
 0x8cd   :  { %9351 = vmatpush3.bf16.msra.mxu1 %v10341_v35  ;;  %8525 = vmatprep.mubr.msk.f32.mxu1 %vm10158_vm0, %v10159_v1 }
 0x8ce   :  { %9352 = vmatprep.subr.bf16.mxu1 %v10157_v0  ;;  %9357 = vmatpush3.bf16.msra.mxu0 %v10343_v39 }
 0x8cf   :  { %9358 = vmatprep.subr.bf16.mxu0 %v10157_v0  ;;  %8536 = vmatprep.mubr.msk.f32.mxu0 %vm10158_vm0, %v10159_v1 }
 0x8d1   :  { %9354 = vmatpush3.bf16.msra.mxu1 %v10346_v42 }
 0x8d2   :  { %9361 = vmatprep.subr.bf16.mxu1 %v10157_v0  ;;  %9360 = vmatpush3.bf16.msra.mxu0 %v10351_v43 }
 0x8d3   :  { %9367 = vmatprep.subr.bf16.mxu0 %v10157_v0 }
 0x98f   :  { %v1109_v20 = vpop.f32.mrb[12].mxu0 }
 0x990   :  { %v8472_v22 = vpop.f32.mrb[13].mxu0 }
 0x997   :  { %v1184_v23 = vpop.f32.mrb[10].mxu1  ;;  %v1286_v24 = vpop.f32.mrb[14].mxu0 }
 0x998   :  { %v1185_v25 = vadd.f32 %v1184_v23, %v1109_v20  ;;  %v8483_v26 = vpop.f32.mrb[11].mxu1  ;;  %v8494_v27 = vpop.f32.mrb[15].mxu0  ;;  %v1475_v20 = vrot.slane %v10417_v4, 6 }
 0x99a   :  { %v1188_v28 = vadd.f32 %v10399_v61, %v1185_v25 }
 0x99c   :  { %v7780_v31 = vmul.f32 -1.442695, %v1188_v28 }
 0x99e   :  { %9800 = vpow2.f32 %v7780_v31 }
 0x99f   :  { %v1362_v32 = vpop.f32.mrb[12].mxu1  ;;  %v1458_v34 = vpop.f32.mrb[16].mxu0 }
 0x9a0   :  { %v1363_v36 = vadd.f32 %v1362_v32, %v1286_v24  ;;  %v8505_v38 = vpop.f32.mrb[13].mxu1  ;;  %v1463_v33 = vrot.slane %v1458_v34, 2  ;;  %v8516_v40 = vpop.f32.mrb[17].mxu0 }
 0x9a2   :  { %v1366_v41 = vadd.f32 %v10326_v56, %v1363_v36  ;;  %v1465_v46 = vadd.f32 %v1463_v33, %v10276_v21 }
 0x9a4   :  { %v7784_v48 = vmul.f32 -1.442695, %v1366_v41  ;;  %v7787_v49 = vmul.f32 -1.442695, %v1465_v46 }
 0x9a6   :  { %9802 = vpow2.f32 %v7784_v48 }
 0x9a7   :  { %9804 = vpow2.f32 %v7787_v49 }
 0x9a8   :  { %v9801_v50 = vpop.eup %9800 }
 0x9a9   :  { %v1192_v53 = vadd.f32 1.0, %v9801_v50 }
 0x9ab   :  { %9806 = vrcp.f32 %v1192_v53 }
 0x9b0   :  { %v9803_v54 = vpop.eup %9802 }
 0x9b1   :  { %v9805_v55 = vpop.eup %9804  ;;  %v1370_v57 = vadd.f32 1.0, %v9803_v54 }
 0x9b2   :  { %v1469_v59 = vadd.f32 1.0, %v9805_v55 }
 0x9b3   :  { %9808 = vrcp.f32 %v1370_v57 }
 0x9b4   :  { %9810 = vrcp.f32 %v1469_v59 }
 0x9b5   :  { %v9807_v60 = vpop.eup %9806 }
 0x9b6   :  { %v1195_v62 = vmul.f32 2.0, %v9807_v60  ;;  %v1197_v15 = vmul.f32 %v9807_v60, %v10410_v58 }
 0x9b8   :  { %v7781_v63 = vadd.f32 -1.0, %v1195_v62  ;;  %v10529_v62 = vadd.f32 %v10273_v17, %v10271_v16 }
 0x9ba   :  { %1199 = vrot.lane.b32.xlu0 %v7781_v63, %s10160_s12 }
 0x9bd   :  { %v9809_v2 = vpop.eup %9808 }
 0x9be   :  { %v9811_v21 = vpop.eup %9810  ;;  %v1373_v5 = vmul.f32 2.0, %v9809_v2  ;;  %v1375_v22 = vmul.f32 %v9809_v2, %v10415_v3 }
 0x9bf   :  { %v1472_v6 = vmul.f32 2.0, %v9811_v21  ;;  %v1477_v24 = vmul.f32 %v9811_v21, %v1475_v20 }
 0x9c0   :  { %v7785_v7 = vadd.f32 -1.0, %v1373_v5 }
 0x9c1   :  { %v7788_v29 = vadd.f32 -1.0, %v1472_v6 }
 0x9c2   :  { %1377 = vrot.lane.b32.xlu1 %v7785_v7, %s10160_s12 }
 0x9c3   :  { %1479 = vrot.lane.b32.xlu0 %v7788_v29, %s10160_s12 }
 0xa2c   :  { %v1200_v30 = vpop.permute.xlu0 %1199 }
 0xa2d   :  { %v1202_v8 = vmul.f32 %v9807_v60, %v1200_v30 }
 0xa2f   :  { %1204 = vrot.lane.b32.xlu1 %v1202_v8, %s10161_s13 }
 0xa34   :  { %v1378_v10 = vpop.permute.xlu1 %1377 }
 0xa35   :  { %v1380_v11 = vmul.f32 %v9809_v2, %v1378_v10  ;;  %v1480_v12 = vpop.permute.xlu0 %1479 }
 0xa36   :  { %v1482_v13 = vmul.f32 %v9811_v21, %v1480_v12 }
 0xa37   :  { %1382 = vrot.lane.b32.xlu0 %v1380_v11, %s10161_s13 }
 0xa38   :  { %1484 = vrot.lane.b32.xlu1 %v1482_v13, %s10161_s13 }
 0xaa1   :  { %v1205_v18 = vpop.permute.xlu1 %1204 }
 0xaa2   :  { %v10473_v19 = vadd.f32 %v1205_v18, %v1197_v15 }
 0xaa4   :  { %9812 = vtanh.f32 %v10473_v19 }
 0xaa9   :  { %v1383_v23 = vpop.permute.xlu0 %1382 }
 0xaaa   :  { %v10478_v25 = vadd.f32 %v1383_v23, %v1375_v22  ;;  %v1485_v26 = vpop.permute.xlu1 %1484 }
 0xaab   :  { %v10480_v27 = vadd.f32 %v1485_v26, %v1477_v24 }
 0xaac   :  { %9814 = vtanh.f32 %v10478_v25 }
 0xaad   :  { %9816 = vtanh.f32 %v10480_v27 }
 0xaae   :  { %v9813_v58 = vpop.eup %9812 }
 0xaaf   :  { %1210 = vrot.lane.b32.xlu0 %v9813_v58, %s10160_s12 }
 0xab6   :  { %v9815_v28 = vpop.eup %9814 }
 0xab7   :  { %v9817_v31 = vpop.eup %9816  ;;  %1388 = vrot.lane.b32.xlu1 %v9815_v28, %s10160_s12 }
 0xab8   :  { %1490 = vrot.lane.b32.xlu0 %v9817_v31, %s10160_s12 }
 0xb21   :  { %v1211_v3 = vpop.permute.xlu0 %1210 }
 0xb22   :  { %v1213_v4 = vmul.f32 %v9807_v60, %v1211_v3 }
 0xb24   :  { %1215 = vrot.lane.b32.xlu1 %v1213_v4, %s10161_s13 }
 0xb29   :  { %v1389_v32 = vpop.permute.xlu1 %1388 }
 0xb2a   :  { %v1391_v34 = vmul.f32 %v9809_v2, %v1389_v32  ;;  %v1491_v36 = vpop.permute.xlu0 %1490 }
 0xb2b   :  { %v1493_v38 = vmul.f32 %v9811_v21, %v1491_v36 }
 0xb2c   :  { %1567 = vrot.lane.b32.xlu0 %v1391_v34, %s10161_s13 }
 0xb2d   :  { %v1744_v33 = vrot.slane %v1493_v38, 6 }
 0xb2f   :  { %1745 = vrot.lane.b32.xlu1 %v1744_v33, %s10161_s13 }
 0xb96   :  { %v1216_v40 = vpop.permute.xlu1 %1215 }
 0xb97   :  { %1219 = vst.msk [vmem:[#allocation2 + $0x2] sm:$0x3] %vm765_vm2, %v1216_v40  ;;  %8526 = vmatmul.mubr.msk.f32.vlgmr.msra.gmra.mrb[14].mxu1 %vm80_vm1, %v1216_v40 }
 0xb98   :  { %9363 = vmatpush3.bf16.msra.mxu1 %v10284_v37  ;;  %8547 = vmatprep.mubr.msk.f32.mxu1 %vm10158_vm0, %v10159_v1 }
 0xb99   :  { %9364 = vmatprep.subr.bf16.mxu1 %v10157_v0 }
 0xb9c   :  { %9366 = vmatpush3.bf16.msra.mxu1 %v10289_v44 }
 0xb9d   :  { %9373 = vmatprep.subr.bf16.mxu1 %v10157_v0 }
 0xb9e   :  { %v1568_v41 = vpop.permute.xlu0 %1567 }
 0xb9f   :  { %8537 = vmatmul.mubr.msk.f32.vlgmr.msra.gmra.mrb[18].mxu0 %vm80_vm1, %v1568_v41  ;;  %8548 = vmatmul.mubr.msk.f32.vlgmr.msra.gmra.mrb[16].mxu1 %vm80_vm1, %v1568_v41  ;;  %v1925_v41 = vrot.slane %v10480_v27, 6 }
 0xba0   :  { %9369 = vmatpush3.bf16.msra.mxu0 %v10293_v45  ;;  %9375 = vmatpush3.bf16.msra.mxu1 %v10254_v9 }
 0xba1   :  { %9370 = vmatprep.subr.bf16.mxu0 %v10157_v0  ;;  %9376 = vmatprep.subr.bf16.mxu1 %v10157_v0  ;;  %v1746_v46 = vpop.permute.xlu1 %1745 }
 0xba2   :  { %8558 = vmatprep.mubr.msk.f32.mxu0 %vm10158_vm0, %v10159_v1  ;;  %8569 = vmatprep.mubr.msk.f32.mxu1 %vm10158_vm0, %v10159_v1 }
 0xba4   :  { %9372 = vmatpush3.bf16.msra.mxu0 %v10297_v47  ;;  %9378 = vmatpush3.bf16.msra.mxu1 %v10258_v14 }
 0xba5   :  { %9379 = vmatprep.subr.bf16.mxu0 %v10157_v0  ;;  %9385 = vmatprep.subr.bf16.mxu1 %v10157_v0 }
 0xba7   :  { %8559 = vmatmul.mubr.msk.f32.vlgmr.msra.gmra.mrb[20].mxu0 %vm80_vm1, %v1746_v46  ;;  %8570 = vmatmul.mubr.msk.f32.vlgmr.msra.gmra.mrb[18].mxu1 %vm80_vm1, %v1746_v46 }
 0xba8   :  { %9381 = vmatpush3.bf16.msra.mxu0 %v10341_v35  ;;  %8580 = vmatprep.mubr.msk.f32.mxu0 %vm10158_vm0, %v10159_v1 }
 0xba9   :  { %9382 = vmatprep.subr.bf16.mxu0 %v10157_v0  ;;  %9387 = vmatpush3.bf16.msra.mxu1 %v10343_v39 }
 0xbaa   :  { %9388 = vmatprep.subr.bf16.mxu1 %v10157_v0  ;;  %8591 = vmatprep.mubr.msk.f32.mxu1 %vm10158_vm0, %v10159_v1 }
 0xbac   :  { %9384 = vmatpush3.bf16.msra.mxu0 %v10346_v42 }
 0xbad   :  { %9391 = vmatprep.subr.bf16.mxu0 %v10157_v0  ;;  %9390 = vmatpush3.bf16.msra.mxu1 %v10351_v43 }
 0xbae   :  { %9397 = vmatprep.subr.bf16.mxu1 %v10157_v0 }
 0xc6a   :  { %v1562_v48 = vpop.f32.mrb[14].mxu1 }
 0xc6b   :  { %v8527_v49 = vpop.f32.mrb[15].mxu1 }
 0xc72   :  { %v1637_v50 = vpop.f32.mrb[18].mxu0  ;;  %v1739_v53 = vpop.f32.mrb[16].mxu1 }
 0xc73   :  { %v1638_v54 = vadd.f32 %v1637_v50, %v1562_v48  ;;  %v8538_v55 = vpop.f32.mrb[19].mxu0  ;;  %v8549_v57 = vpop.f32.mrb[17].mxu1 }
 0xc75   :  { %v1641_v59 = vadd.f32 %v10399_v61, %v1638_v54 }
 0xc77   :  { %v7791_v60 = vmul.f32 -1.442695, %v1641_v59 }
 0xc79   :  { %9818 = vpow2.f32 %v7791_v60 }
 0xc7a   :  { %v1815_v63 = vpop.f32.mrb[20].mxu0  ;;  %v1911_v2 = vpop.f32.mrb[18].mxu1 }
 0xc7b   :  { %v1816_v21 = vadd.f32 %v1815_v63, %v1739_v53  ;;  %v8560_v5 = vpop.f32.mrb[21].mxu0  ;;  %v1915_v6 = vadd.f32 %v1911_v2, %v10529_v62  ;;  %v8571_v7 = vpop.f32.mrb[19].mxu1 }
 0xc7d   :  { %v1819_v29 = vadd.f32 %v10326_v56, %v1816_v21  ;;  %v7798_v30 = vmul.f32 -1.442695, %v1915_v6 }
 0xc7f   :  { %v7795_v8 = vmul.f32 -1.442695, %v1819_v29  ;;  %9820 = vpow2.f32 %v7798_v30 }
 0xc81   :  { %9822 = vpow2.f32 %v7795_v8 }
 0xc83   :  { %v9819_v10 = vpop.eup %9818 }
 0xc84   :  { %v1645_v11 = vadd.f32 1.0, %v9819_v10 }
 0xc86   :  { %9824 = vrcp.f32 %v1645_v11 }
 0xc89   :  { %v9821_v12 = vpop.eup %9820 }
 0xc8a   :  { %v1919_v16 = vadd.f32 1.0, %v9821_v12 }
 0xc8b   :  { %v9823_v17 = vpop.eup %9822 }
 0xc8c   :  { %v1823_v13 = vadd.f32 1.0, %v9823_v17  ;;  %9826 = vrcp.f32 %v1919_v16 }
 0xc8e   :  { %9828 = vrcp.f32 %v1823_v13 }
 0xc90   :  { %v9825_v15 = vpop.eup %9824 }
 0xc91   :  { %v1648_v18 = vmul.f32 2.0, %v9825_v15  ;;  %v1650_v38 = vmul.f32 %v9825_v15, %v10473_v19 }
 0xc93   :  { %v7792_v20 = vadd.f32 -1.0, %v1648_v18 }
 0xc95   :  { %1652 = vrot.lane.b32.xlu0 %v7792_v20, %s10160_s12 }
 0xc96   :  { %v9827_v22 = vpop.eup %9826 }
 0xc97   :  { %v1922_v23 = vmul.f32 2.0, %v9827_v22  ;;  %v1927_v46 = vmul.f32 %v9827_v22, %v1925_v41 }
 0xc98   :  { %v9829_v24 = vpop.eup %9828 }
 0xc99   :  { %v7799_v26 = vadd.f32 -1.0, %v1922_v23  ;;  %v1826_v58 = vmul.f32 2.0, %v9829_v24  ;;  %v1828_v50 = vmul.f32 %v9829_v24, %v10478_v25 }
 0xc9b   :  { %1929 = vrot.lane.b32.xlu0 %v7799_v26, %s10160_s12  ;;  %v7796_v28 = vadd.f32 -1.0, %v1826_v58 }
 0xc9d   :  { %1830 = vrot.lane.b32.xlu1 %v7796_v28, %s10160_s12 }
 0xd07   :  { %v1653_v31 = vpop.permute.xlu0 %1652 }
 0xd08   :  { %v1655_v3 = vmul.f32 %v9825_v15, %v1653_v31 }
 0xd0a   :  { %1657 = vrot.lane.b32.xlu1 %v1655_v3, %s10161_s13 }
 0xd0d   :  { %v1930_v4 = vpop.permute.xlu0 %1929 }
 0xd0e   :  { %v1932_v32 = vmul.f32 %v9827_v22, %v1930_v4 }
 0xd0f   :  { %v1831_v34 = vpop.permute.xlu1 %1830 }
 0xd10   :  { %v1833_v36 = vmul.f32 %v9829_v24, %v1831_v34  ;;  %1934 = vrot.lane.b32.xlu1 %v1932_v32, %s10161_s13 }
 0xd12   :  { %1835 = vrot.lane.b32.xlu0 %v1833_v36, %s10161_s13 }
 0xd7c   :  { %v1658_v33 = vpop.permute.xlu1 %1657 }
 0xd7d   :  { %v10540_v40 = vadd.f32 %v1658_v33, %v1650_v38 }
 0xd7f   :  { %9830 = vtanh.f32 %v10540_v40 }
 0xd82   :  { %v1935_v48 = vpop.permute.xlu1 %1934 }
 0xd83   :  { %v10544_v49 = vadd.f32 %v1935_v48, %v1927_v46 }
 0xd84   :  { %v1836_v53 = vpop.permute.xlu0 %1835 }
 0xd85   :  { %9832 = vtanh.f32 %v10544_v49  ;;  %v10548_v54 = vadd.f32 %v1836_v53, %v1828_v50 }
 0xd87   :  { %9834 = vtanh.f32 %v10548_v54 }
 0xd89   :  { %v9831_v19 = vpop.eup %9830 }
 0xd8a   :  { %1663 = vrot.lane.b32.xlu0 %v9831_v19, %s10160_s12 }
 0xd8f   :  { %v9833_v55 = vpop.eup %9832 }
 0xd90   :  { %1940 = vrot.lane.b32.xlu0 %v9833_v55, %s10160_s12 }
 0xd91   :  { %v9835_v27 = vpop.eup %9834 }
 0xd92   :  { %1841 = vrot.lane.b32.xlu1 %v9835_v27, %s10160_s12 }
 0xdfc   :  { %v1664_v57 = vpop.permute.xlu0 %1663 }
 0xdfd   :  { %v1666_v59 = vmul.f32 %v9825_v15, %v1664_v57 }
 0xdff   :  { %1668 = vrot.lane.b32.xlu1 %v1666_v59, %s10161_s13 }
 0xe02   :  { %v1941_v25 = vpop.permute.xlu0 %1940 }
 0xe03   :  { %v1943_v60 = vmul.f32 %v9827_v22, %v1941_v25 }
 0xe04   :  { %v1842_v63 = vpop.permute.xlu1 %1841 }
 0xe05   :  { %v1844_v2 = vmul.f32 %v9829_v24, %v1842_v63  ;;  %2194 = vrot.lane.b32.xlu1 %v1943_v60, %s10161_s13 }
 0xe07   :  { %2017 = vrot.lane.b32.xlu0 %v1844_v2, %s10161_s13 }
 0xe71   :  { %v1669_v21 = vpop.permute.xlu1 %1668 }
 0xe72   :  { %1672 = vst.msk [vmem:[#allocation2 + $0x4] sm:$0x3] %vm765_vm2, %v1669_v21  ;;  %8581 = vmatmul.mubr.msk.f32.vlgmr.msra.gmra.mrb[22].mxu0 %vm80_vm1, %v1669_v21 }
 0xe73   :  { %9393 = vmatpush3.bf16.msra.mxu0 %v10284_v37  ;;  %8602 = vmatprep.mubr.msk.f32.mxu0 %vm10158_vm0, %v10159_v1 }
 0xe74   :  { %9394 = vmatprep.subr.bf16.mxu0 %v10157_v0 }
 0xe77   :  { %9396 = vmatpush3.bf16.msra.mxu0 %v10289_v44  ;;  %v2195_v6 = vpop.permute.xlu1 %2194 }
 0xe78   :  { %9403 = vmatprep.subr.bf16.mxu0 %v10157_v0 }
 0xe79   :  { %v2018_v5 = vpop.permute.xlu0 %2017 }
 0xe7a   :  { %8592 = vmatmul.mubr.msk.f32.vlgmr.msra.gmra.mrb[20].mxu1 %vm80_vm1, %v2018_v5  ;;  %8603 = vmatmul.mubr.msk.f32.vlgmr.msra.gmra.mrb[24].mxu0 %vm80_vm1, %v2018_v5  ;;  %v2377_v5 = vrot.slane %v10544_v49, 6 }
 0xe7b   :  { %9399 = vmatpush3.bf16.msra.mxu1 %v10293_v45  ;;  %9405 = vmatpush3.bf16.msra.mxu0 %v10254_v9 }
 0xe7c   :  { %9400 = vmatprep.subr.bf16.mxu1 %v10157_v0  ;;  %9406 = vmatprep.subr.bf16.mxu0 %v10157_v0 }
 0xe7d   :  { %8613 = vmatprep.mubr.msk.f32.mxu1 %vm10158_vm0, %v10159_v1  ;;  %8624 = vmatprep.mubr.msk.f32.mxu0 %vm10158_vm0, %v10159_v1 }
 0xe7f   :  { %9402 = vmatpush3.bf16.msra.mxu1 %v10297_v47  ;;  %9408 = vmatpush3.bf16.msra.mxu0 %v10258_v14 }
 0xe80   :  { %9409 = vmatprep.subr.bf16.mxu1 %v10157_v0  ;;  %9415 = vmatprep.subr.bf16.mxu0 %v10157_v0 }
 0xe82   :  { %8614 = vmatmul.mubr.msk.f32.vlgmr.msra.gmra.mrb[22].mxu1 %vm80_vm1, %v2195_v6  ;;  %8625 = vmatmul.mubr.msk.f32.vlgmr.msra.gmra.mrb[26].mxu0 %vm80_vm1, %v2195_v6 }
 0xe83   :  { %9411 = vmatpush3.bf16.msra.mxu1 %v10341_v35  ;;  %8635 = vmatprep.mubr.msk.f32.mxu1 %vm10158_vm0, %v10159_v1 }
 0xe84   :  { %9412 = vmatprep.subr.bf16.mxu1 %v10157_v0  ;;  %9417 = vmatpush3.bf16.msra.mxu0 %v10343_v39 }
 0xe85   :  { %9418 = vmatprep.subr.bf16.mxu0 %v10157_v0  ;;  %8646 = vmatprep.mubr.msk.f32.mxu0 %vm10158_vm0, %v10159_v1 }
 0xe87   :  { %9414 = vmatpush3.bf16.msra.mxu1 %v10346_v42 }
 0xe88   :  { %9421 = vmatprep.subr.bf16.mxu1 %v10157_v0  ;;  %9420 = vmatpush3.bf16.msra.mxu0 %v10351_v43 }
 0xe89   :  { %9427 = vmatprep.subr.bf16.mxu0 %v10157_v0 }
 0xf45   :  { %v2012_v7 = vpop.f32.mrb[22].mxu0 }
 0xf46   :  { %v8582_v29 = vpop.f32.mrb[23].mxu0 }
 0xf4d   :  { %v2087_v30 = vpop.f32.mrb[20].mxu1  ;;  %v2189_v8 = vpop.f32.mrb[24].mxu0 }
 0xf4e   :  { %v2088_v10 = vadd.f32 %v2087_v30, %v2012_v7  ;;  %v8593_v11 = vpop.f32.mrb[21].mxu1  ;;  %v8604_v12 = vpop.f32.mrb[25].mxu0 }
 0xf50   :  { %v2091_v16 = vadd.f32 %v10399_v61, %v2088_v10 }
 0xf52   :  { %v7802_v17 = vmul.f32 -1.442695, %v2091_v16 }
 0xf54   :  { %9836 = vpow2.f32 %v7802_v17 }
 0xf55   :  { %v2264_v13 = vpop.f32.mrb[22].mxu1  ;;  %v2360_v15 = vpop.f32.mrb[26].mxu0 }
 0xf56   :  { %v2265_v18 = vadd.f32 %v2264_v13, %v2189_v8  ;;  %v8615_v20 = vpop.f32.mrb[23].mxu1  ;;  %v2365_v22 = vrot.slane %v2360_v15, 6  ;;  %v8626_v23 = vpop.f32.mrb[27].mxu0 }
 0xf58   :  { %v2268_v24 = vadd.f32 %v10326_v56, %v2265_v18  ;;  %v2367_v26 = vadd.f32 %v2365_v22, %v10529_v62 }
 0xf5a   :  { %v7806_v58 = vmul.f32 -1.442695, %v2268_v24  ;;  %v7809_v28 = vmul.f32 -1.442695, %v2367_v26 }
 0xf5c   :  { %9838 = vpow2.f32 %v7806_v58 }
 0xf5d   :  { %9840 = vpow2.f32 %v7809_v28 }
 0xf5e   :  { %v9837_v31 = vpop.eup %9836 }
 0xf5f   :  { %v2095_v3 = vadd.f32 1.0, %v9837_v31 }
 0xf61   :  { %9842 = vrcp.f32 %v2095_v3 }
 0xf66   :  { %v9839_v4 = vpop.eup %9838 }
 0xf67   :  { %v9841_v32 = vpop.eup %9840  ;;  %v2272_v34 = vadd.f32 1.0, %v9839_v4 }
 0xf68   :  { %v2371_v36 = vadd.f32 1.0, %v9841_v32 }
 0xf69   :  { %9844 = vrcp.f32 %v2272_v34 }
 0xf6a   :  { %9846 = vrcp.f32 %v2371_v36 }
 0xf6b   :  { %v9843_v38 = vpop.eup %9842 }
 0xf6c   :  { %v2098_v33 = vmul.f32 2.0, %v9843_v38  ;;  %v2100_v63 = vmul.f32 %v9843_v38, %v10540_v40 }
 0xf6e   :  { %v7803_v41 = vadd.f32 -1.0, %v2098_v33 }
 0xf70   :  { %2102 = vrot.lane.b32.xlu0 %v7803_v41, %s10160_s12 }
 0xf73   :  { %v9845_v56 = vpop.eup %9844 }
 0xf74   :  { %v9847_v46 = vpop.eup %9846  ;;  %v2275_v48 = vmul.f32 2.0, %v9845_v56  ;;  %v2277_v6 = vmul.f32 %v9845_v56, %v10548_v54 }
 0xf75   :  { %v2374_v50 = vmul.f32 2.0, %v9847_v46  ;;  %v2379_v29 = vmul.f32 %v9847_v46, %v2377_v5 }
 0xf76   :  { %v7807_v53 = vadd.f32 -1.0, %v2275_v48  ;;  %v10660_v48 = vld [vmem:[%s11398_s3 + $0x1] ss:$0 sm:$0xff] }
 0xf77   :  { %v7810_v19 = vadd.f32 -1.0, %v2374_v50 }
 0xf78   :  { %2279 = vrot.lane.b32.xlu1 %v7807_v53, %s10160_s12 }
 0xf79   :  { %2381 = vrot.lane.b32.xlu0 %v7810_v19, %s10160_s12 }
 0xfe2   :  { %v2103_v55 = vpop.permute.xlu0 %2102 }
 0xfe3   :  { %v2105_v27 = vmul.f32 %v9843_v38, %v2103_v55 }
 0xfe5   :  { %2107 = vrot.lane.b32.xlu1 %v2105_v27, %s10161_s13 }
 0xfea   :  { %v2280_v57 = vpop.permute.xlu1 %2279 }
 0xfeb   :  { %v2282_v59 = vmul.f32 %v9845_v56, %v2280_v57  ;;  %v2382_v25 = vpop.permute.xlu0 %2381 }
 0xfec   :  { %v2384_v60 = vmul.f32 %v9847_v46, %v2382_v25 }
 0xfed   :  { %2284 = vrot.lane.b32.xlu0 %v2282_v59, %s10161_s13 }
 0xfee   :  { %2386 = vrot.lane.b32.xlu1 %v2384_v60, %s10161_s13 }
0x1057   :  { %v2108_v2 = vpop.permute.xlu1 %2107 }
0x1058   :  { %v10603_v21 = vadd.f32 %v2108_v2, %v2100_v63 }
0x105a   :  { %9848 = vtanh.f32 %v10603_v21 }
0x105f   :  { %v2285_v7 = vpop.permute.xlu0 %2284 }
0x1060   :  { %v10608_v30 = vadd.f32 %v2285_v7, %v2277_v6  ;;  %v2387_v8 = vpop.permute.xlu1 %2386 }
0x1061   :  { %v10610_v10 = vadd.f32 %v2387_v8, %v2379_v29 }
0x1062   :  { %9850 = vtanh.f32 %v10608_v30 }
0x1063   :  { %9852 = vtanh.f32 %v10610_v10 }
0x1064   :  { %v9849_v40 = vpop.eup %9848 }
0x1065   :  { %2113 = vrot.lane.b32.xlu0 %v9849_v40, %s10160_s12 }
0x106c   :  { %v9851_v11 = vpop.eup %9850 }
0x106d   :  { %v9853_v12 = vpop.eup %9852  ;;  %2290 = vrot.lane.b32.xlu1 %v9851_v11, %s10160_s12 }
0x106e   :  { %2392 = vrot.lane.b32.xlu0 %v9853_v12, %s10160_s12 }
0x10d7   :  { %v2114_v49 = vpop.permute.xlu0 %2113 }
0x10d8   :  { %v2116_v54 = vmul.f32 %v9843_v38, %v2114_v49 }
0x10da   :  { %2118 = vrot.lane.b32.xlu1 %v2116_v54, %s10161_s13 }
0x10df   :  { %v2291_v16 = vpop.permute.xlu1 %2290 }
0x10e0   :  { %v2293_v17 = vmul.f32 %v9845_v56, %v2291_v16  ;;  %v2393_v13 = vpop.permute.xlu0 %2392 }
0x10e1   :  { %v2395_v15 = vmul.f32 %v9847_v46, %v2393_v13 }
0x10e2   :  { %2469 = vrot.lane.b32.xlu0 %v2293_v17, %s10161_s13 }
0x10e3   :  { %v2646_v18 = vrot.slane %v2395_v15, 2 }
0x10e5   :  { %2647 = vrot.lane.b32.xlu1 %v2646_v18, %s10161_s13 }
0x114c   :  { %v2119_v20 = vpop.permute.xlu1 %2118 }
0x114d   :  { %2122 = vst.msk [vmem:[#allocation2 + $0x6] sm:$0x3] %vm765_vm2, %v2119_v20  ;;  %8636 = vmatmul.mubr.msk.f32.vlgmr.msra.gmra.mrb[24].mxu1 %vm80_vm1, %v2119_v20 }
0x114e   :  { %9423 = vmatpush3.bf16.msra.mxu1 %v10284_v37  ;;  %8657 = vmatprep.mubr.msk.f32.mxu1 %vm10158_vm0, %v10159_v1 }
0x114f   :  { %9424 = vmatprep.subr.bf16.mxu1 %v10157_v0 }
0x1152   :  { %9426 = vmatpush3.bf16.msra.mxu1 %v10289_v44 }
0x1153   :  { %9433 = vmatprep.subr.bf16.mxu1 %v10157_v0 }
0x1154   :  { %v2470_v22 = vpop.permute.xlu0 %2469 }
0x1155   :  { %8647 = vmatmul.mubr.msk.f32.vlgmr.msra.gmra.mrb[28].mxu0 %vm80_vm1, %v2470_v22  ;;  %8658 = vmatmul.mubr.msk.f32.vlgmr.msra.gmra.mrb[26].mxu1 %vm80_vm1, %v2470_v22  ;;  %v2830_v22 = vrot.slane %v10610_v10, 6 }
0x1156   :  { %9429 = vmatpush3.bf16.msra.mxu0 %v10293_v45  ;;  %9435 = vmatpush3.bf16.msra.mxu1 %v10254_v9 }
0x1157   :  { %9430 = vmatprep.subr.bf16.mxu0 %v10157_v0  ;;  %9436 = vmatprep.subr.bf16.mxu1 %v10157_v0  ;;  %v2648_v23 = vpop.permute.xlu1 %2647 }
0x1158   :  { %8668 = vmatprep.mubr.msk.f32.mxu0 %vm10158_vm0, %v10159_v1  ;;  %8679 = vmatprep.mubr.msk.f32.mxu1 %vm10158_vm0, %v10159_v1 }
0x115a   :  { %9432 = vmatpush3.bf16.msra.mxu0 %v10297_v47  ;;  %9438 = vmatpush3.bf16.msra.mxu1 %v10258_v14 }
0x115b   :  { %9439 = vmatprep.subr.bf16.mxu0 %v10157_v0  ;;  %9445 = vmatprep.subr.bf16.mxu1 %v10157_v0 }
0x115d   :  { %8669 = vmatmul.mubr.msk.f32.vlgmr.msra.gmra.mrb[30].mxu0 %vm80_vm1, %v2648_v23  ;;  %8680 = vmatmul.mubr.msk.f32.vlgmr.msra.gmra.mrb[28].mxu1 %vm80_vm1, %v2648_v23 }
0x115e   :  { %9441 = vmatpush3.bf16.msra.mxu0 %v10341_v35  ;;  %8690 = vmatprep.mubr.msk.f32.mxu0 %vm10158_vm0, %v10159_v1 }
0x115f   :  { %9442 = vmatprep.subr.bf16.mxu0 %v10157_v0  ;;  %9447 = vmatpush3.bf16.msra.mxu1 %v10343_v39 }
0x1160   :  { %9448 = vmatprep.subr.bf16.mxu1 %v10157_v0  ;;  %8701 = vmatprep.mubr.msk.f32.mxu1 %vm10158_vm0, %v10159_v1 }
0x1162   :  { %9444 = vmatpush3.bf16.msra.mxu0 %v10346_v42 }
0x1163   :  { %9451 = vmatprep.subr.bf16.mxu0 %v10157_v0  ;;  %9450 = vmatpush3.bf16.msra.mxu1 %v10351_v43 }
0x1164   :  { %9457 = vmatprep.subr.bf16.mxu1 %v10157_v0 }
0x1220   :  { %v2464_v24 = vpop.f32.mrb[24].mxu1 }
0x1221   :  { %v8637_v26 = vpop.f32.mrb[25].mxu1 }
0x1228   :  { %v2539_v58 = vpop.f32.mrb[28].mxu0  ;;  %v2641_v28 = vpop.f32.mrb[26].mxu1 }
0x1229   :  { %v2540_v31 = vadd.f32 %v2539_v58, %v2464_v24  ;;  %v8648_v3 = vpop.f32.mrb[29].mxu0  ;;  %v8659_v4 = vpop.f32.mrb[27].mxu1 }
0x122b   :  { %v2543_v32 = vadd.f32 %v10399_v61, %v2540_v31 }
0x122d   :  { %v7813_v34 = vmul.f32 -1.442695, %v2543_v32 }
0x122f   :  { %9854 = vpow2.f32 %v7813_v34 }
0x1230   :  { %v2717_v36 = vpop.f32.mrb[30].mxu0  ;;  %v2813_v38 = vpop.f32.mrb[28].mxu1 }
0x1231   :  { %v2718_v33 = vadd.f32 %v2717_v36, %v2641_v28  ;;  %v8670_v41 = vpop.f32.mrb[31].mxu0  ;;  %v2818_v56 = vrot.slane %v2813_v38, 4  ;;  %v8681_v46 = vpop.f32.mrb[29].mxu1 }
0x1233   :  { %v2721_v50 = vadd.f32 %v10660_v48, %v2718_v33  ;;  %v2820_v53 = vadd.f32 %v2818_v56, %v10529_v62 }
0x1235   :  { %v7817_v19 = vmul.f32 -1.442695, %v2721_v50  ;;  %v7820_v55 = vmul.f32 -1.442695, %v2820_v53 }
0x1237   :  { %9856 = vpow2.f32 %v7817_v19 }
0x1238   :  { %9858 = vpow2.f32 %v7820_v55 }
0x1239   :  { %v9855_v61 = vpop.eup %9854 }
0x123a   :  { %v2547_v27 = vadd.f32 1.0, %v9855_v61 }
0x123c   :  { %9860 = vrcp.f32 %v2547_v27 }
0x1241   :  { %v9857_v57 = vpop.eup %9856 }
0x1242   :  { %v9859_v59 = vpop.eup %9858  ;;  %v2725_v25 = vadd.f32 1.0, %v9857_v57 }
0x1243   :  { %v2824_v60 = vadd.f32 1.0, %v9859_v59  ;;  %v10727_v59 = vld [vmem:[%s11398_s3 + $0x2] ss:$0 sm:$0xff] }
0x1244   :  { %9862 = vrcp.f32 %v2725_v25 }
0x1245   :  { %9864 = vrcp.f32 %v2824_v60 }
0x1246   :  { %v9861_v63 = vpop.eup %9860 }
0x1247   :  { %v2550_v2 = vmul.f32 2.0, %v9861_v63  ;;  %v2552_v15 = vmul.f32 %v9861_v63, %v10603_v21 }
0x1249   :  { %v7814_v5 = vadd.f32 -1.0, %v2550_v2 }
0x124b   :  { %2554 = vrot.lane.b32.xlu0 %v7814_v5, %s10160_s12 }
0x124e   :  { %v9863_v6 = vpop.eup %9862 }
0x124f   :  { %v9865_v7 = vpop.eup %9864  ;;  %v2728_v29 = vmul.f32 2.0, %v9863_v6  ;;  %v2730_v23 = vmul.f32 %v9863_v6, %v10608_v30 }
0x1250   :  { %v2827_v8 = vmul.f32 2.0, %v9865_v7  ;;  %v2832_v26 = vmul.f32 %v9865_v7, %v2830_v22 }
0x1251   :  { %v7818_v40 = vadd.f32 -1.0, %v2728_v29 }
0x1252   :  { %v7821_v11 = vadd.f32 -1.0, %v2827_v8 }
0x1253   :  { %2732 = vrot.lane.b32.xlu1 %v7818_v40, %s10160_s12 }
0x1254   :  { %2834 = vrot.lane.b32.xlu0 %v7821_v11, %s10160_s12 }
0x12bd   :  { %v2555_v12 = vpop.permute.xlu0 %2554 }
0x12be   :  { %v2557_v49 = vmul.f32 %v9861_v63, %v2555_v12 }
0x12c0   :  { %2559 = vrot.lane.b32.xlu1 %v2557_v49, %s10161_s13 }
0x12c5   :  { %v2733_v54 = vpop.permute.xlu1 %2732 }
0x12c6   :  { %v2735_v16 = vmul.f32 %v9863_v6, %v2733_v54  ;;  %v2835_v17 = vpop.permute.xlu0 %2834 }
0x12c7   :  { %v2837_v13 = vmul.f32 %v9865_v7, %v2835_v17 }
0x12c8   :  { %2737 = vrot.lane.b32.xlu0 %v2735_v16, %s10161_s13 }
0x12c9   :  { %2839 = vrot.lane.b32.xlu1 %v2837_v13, %s10161_s13 }
0x1332   :  { %v2560_v18 = vpop.permute.xlu1 %2559 }
0x1333   :  { %v10671_v20 = vadd.f32 %v2560_v18, %v2552_v15 }
0x1335   :  { %9866 = vtanh.f32 %v10671_v20 }
0x133a   :  { %v2738_v24 = vpop.permute.xlu0 %2737 }
0x133b   :  { %v10676_v58 = vadd.f32 %v2738_v24, %v2730_v23  ;;  %v2840_v28 = vpop.permute.xlu1 %2839 }
0x133c   :  { %v10678_v31 = vadd.f32 %v2840_v28, %v2832_v26 }
0x133d   :  { %9868 = vtanh.f32 %v10676_v58 }
0x133e   :  { %9870 = vtanh.f32 %v10678_v31 }
0x133f   :  { %v9867_v21 = vpop.eup %9866 }
0x1340   :  { %2565 = vrot.lane.b32.xlu0 %v9867_v21, %s10160_s12 }
0x1347   :  { %v9869_v3 = vpop.eup %9868 }
0x1348   :  { %v9871_v4 = vpop.eup %9870  ;;  %2743 = vrot.lane.b32.xlu1 %v9869_v3, %s10160_s12 }
0x1349   :  { %2845 = vrot.lane.b32.xlu0 %v9871_v4, %s10160_s12 }
0x13b2   :  { %v2566_v30 = vpop.permute.xlu0 %2565 }
0x13b3   :  { %v2568_v10 = vmul.f32 %v9861_v63, %v2566_v30 }
0x13b5   :  { %2570 = vrot.lane.b32.xlu1 %v2568_v10, %s10161_s13 }
0x13ba   :  { %v2744_v32 = vpop.permute.xlu1 %2743 }
0x13bb   :  { %v2746_v34 = vmul.f32 %v9863_v6, %v2744_v32  ;;  %v2846_v36 = vpop.permute.xlu0 %2845 }
0x13bc   :  { %v2848_v38 = vmul.f32 %v9865_v7, %v2846_v36 }
0x13bd   :  { %2922 = vrot.lane.b32.xlu0 %v2746_v34, %s10161_s13 }
0x13be   :  { %v3099_v33 = vrot.slane %v2848_v38, 4 }
0x13c0   :  { %3100 = vrot.lane.b32.xlu1 %v3099_v33, %s10161_s13 }
0x1427   :  { %v2571_v41 = vpop.permute.xlu1 %2570 }
0x1428   :  { %2574 = vst.msk [vmem:[#allocation2 + $0x8] sm:$0x3] %vm765_vm2, %v2571_v41  ;;  %8691 = vmatmul.mubr.msk.f32.vlgmr.msra.gmra.mrb[32].mxu0 %vm80_vm1, %v2571_v41 }
0x1429   :  { %9453 = vmatpush3.bf16.msra.mxu0 %v10284_v37  ;;  %8712 = vmatprep.mubr.msk.f32.mxu0 %vm10158_vm0, %v10159_v1 }
0x142a   :  { %9454 = vmatprep.subr.bf16.mxu0 %v10157_v0 }
0x142d   :  { %9456 = vmatpush3.bf16.msra.mxu0 %v10289_v44 }
0x142e   :  { %9463 = vmatprep.subr.bf16.mxu0 %v10157_v0 }
0x142f   :  { %v2923_v56 = vpop.permute.xlu0 %2922 }
0x1430   :  { %8702 = vmatmul.mubr.msk.f32.vlgmr.msra.gmra.mrb[30].mxu1 %vm80_vm1, %v2923_v56  ;;  %8713 = vmatmul.mubr.msk.f32.vlgmr.msra.gmra.mrb[34].mxu0 %vm80_vm1, %v2923_v56  ;;  %v3283_v56 = vrot.slane %v10678_v31, 6 }
0x1431   :  { %9459 = vmatpush3.bf16.msra.mxu1 %v10293_v45  ;;  %9465 = vmatpush3.bf16.msra.mxu0 %v10254_v9 }
0x1432   :  { %9460 = vmatprep.subr.bf16.mxu1 %v10157_v0  ;;  %9466 = vmatprep.subr.bf16.mxu0 %v10157_v0  ;;  %v3101_v46 = vpop.permute.xlu1 %3100 }
0x1433   :  { %8723 = vmatprep.mubr.msk.f32.mxu1 %vm10158_vm0, %v10159_v1  ;;  %8734 = vmatprep.mubr.msk.f32.mxu0 %vm10158_vm0, %v10159_v1 }
0x1435   :  { %9462 = vmatpush3.bf16.msra.mxu1 %v10297_v47  ;;  %9468 = vmatpush3.bf16.msra.mxu0 %v10258_v14 }
0x1436   :  { %9469 = vmatprep.subr.bf16.mxu1 %v10157_v0  ;;  %9475 = vmatprep.subr.bf16.mxu0 %v10157_v0 }
0x1438   :  { %8724 = vmatmul.mubr.msk.f32.vlgmr.msra.gmra.mrb[32].mxu1 %vm80_vm1, %v3101_v46  ;;  %8735 = vmatmul.mubr.msk.f32.vlgmr.msra.gmra.mrb[36].mxu0 %vm80_vm1, %v3101_v46 }
0x1439   :  { %9471 = vmatpush3.bf16.msra.mxu1 %v10341_v35  ;;  %8745 = vmatprep.mubr.msk.f32.mxu1 %vm10158_vm0, %v10159_v1 }
0x143a   :  { %9472 = vmatprep.subr.bf16.mxu1 %v10157_v0  ;;  %9477 = vmatpush3.bf16.msra.mxu0 %v10343_v39 }
0x143b   :  { %9478 = vmatprep.subr.bf16.mxu0 %v10157_v0  ;;  %8756 = vmatprep.mubr.msk.f32.mxu0 %vm10158_vm0, %v10159_v1 }
0x143d   :  { %9474 = vmatpush3.bf16.msra.mxu1 %v10346_v42 }
0x143e   :  { %9481 = vmatprep.subr.bf16.mxu1 %v10157_v0  ;;  %9480 = vmatpush3.bf16.msra.mxu0 %v10351_v43 }
0x143f   :  { %9487 = vmatprep.subr.bf16.mxu0 %v10157_v0 }
0x14fb   :  { %v2917_v50 = vpop.f32.mrb[32].mxu0 }
0x14fc   :  { %v8692_v53 = vpop.f32.mrb[33].mxu0 }
0x1503   :  { %v2992_v19 = vpop.f32.mrb[30].mxu1  ;;  %v3094_v55 = vpop.f32.mrb[34].mxu0 }
0x1504   :  { %v2993_v61 = vadd.f32 %v2992_v19, %v2917_v50  ;;  %v8703_v27 = vpop.f32.mrb[31].mxu1  ;;  %v8714_v57 = vpop.f32.mrb[35].mxu0 }
0x1506   :  { %v2996_v25 = vadd.f32 %v10727_v59, %v2993_v61 }
0x1508   :  { %v7824_v60 = vmul.f32 -1.442695, %v2996_v25 }
0x150a   :  { %9872 = vpow2.f32 %v7824_v60 }
0x150b   :  { %v3170_v63 = vpop.f32.mrb[32].mxu1  ;;  %v3266_v2 = vpop.f32.mrb[36].mxu0 }
0x150c   :  { %v3171_v5 = vadd.f32 %v3170_v63, %v3094_v55  ;;  %v8725_v6 = vpop.f32.mrb[33].mxu1  ;;  %v3271_v7 = vrot.slane %v3266_v2, 2  ;;  %v8736_v29 = vpop.f32.mrb[37].mxu0 }
0x150e   :  { %v3174_v8 = vadd.f32 %v10660_v48, %v3171_v5  ;;  %v3273_v40 = vadd.f32 %v3271_v7, %v10529_v62 }
0x1510   :  { %v7828_v11 = vmul.f32 -1.442695, %v3174_v8  ;;  %v7831_v12 = vmul.f32 -1.442695, %v3273_v40 }
0x1512   :  { %9874 = vpow2.f32 %v7828_v11 }
0x1513   :  { %9876 = vpow2.f32 %v7831_v12 }
0x1514   :  { %v9873_v49 = vpop.eup %9872 }
0x1515   :  { %v3000_v54 = vadd.f32 1.0, %v9873_v49 }
0x1517   :  { %9878 = vrcp.f32 %v3000_v54 }
0x151c   :  { %v9875_v16 = vpop.eup %9874 }
0x151d   :  { %v9877_v17 = vpop.eup %9876  ;;  %v3178_v13 = vadd.f32 1.0, %v9875_v16 }
0x151e   :  { %v3277_v15 = vadd.f32 1.0, %v9877_v17 }
0x151f   :  { %9880 = vrcp.f32 %v3178_v13 }
0x1520   :  { %9882 = vrcp.f32 %v3277_v15  ;;  %v10796_v15 = vld [vmem:[%s11398_s3] ss:$0 sm:$0xff] }
0x1521   :  { %v9879_v18 = vpop.eup %9878 }
0x1522   :  { %v3003_v22 = vmul.f32 2.0, %v9879_v18  ;;  %v3005_v38 = vmul.f32 %v9879_v18, %v10671_v20 }
0x1524   :  { %v7825_v23 = vadd.f32 -1.0, %v3003_v22 }
0x1526   :  { %3007 = vrot.lane.b32.xlu0 %v7825_v23, %s10160_s12 }
0x1529   :  { %v9881_v24 = vpop.eup %9880 }
0x152a   :  { %v9883_v62 = vpop.eup %9882  ;;  %v3181_v26 = vmul.f32 2.0, %v9881_v24  ;;  %v3183_v46 = vmul.f32 %v9881_v24, %v10676_v58 }
0x152b   :  { %v3280_v28 = vmul.f32 2.0, %v9883_v62  ;;  %v3285_v53 = vmul.f32 %v9883_v62, %v3283_v56 }
0x152c   :  { %v7829_v21 = vadd.f32 -1.0, %v3181_v26 }
0x152d   :  { %v7832_v3 = vadd.f32 -1.0, %v3280_v28 }
0x152e   :  { %3185 = vrot.lane.b32.xlu1 %v7829_v21, %s10160_s12 }
0x152f   :  { %3287 = vrot.lane.b32.xlu0 %v7832_v3, %s10160_s12 }
0x1598   :  { %v3008_v4 = vpop.permute.xlu0 %3007 }
0x1599   :  { %v3010_v30 = vmul.f32 %v9879_v18, %v3008_v4 }
0x159b   :  { %3012 = vrot.lane.b32.xlu1 %v3010_v30, %s10161_s13 }
0x15a0   :  { %v3186_v10 = vpop.permute.xlu1 %3185 }
0x15a1   :  { %v3188_v32 = vmul.f32 %v9881_v24, %v3186_v10  ;;  %v3288_v34 = vpop.permute.xlu0 %3287 }
0x15a2   :  { %v3290_v36 = vmul.f32 %v9883_v62, %v3288_v34 }
0x15a3   :  { %3190 = vrot.lane.b32.xlu0 %v3188_v32, %s10161_s13 }
0x15a4   :  { %3292 = vrot.lane.b32.xlu1 %v3290_v36, %s10161_s13 }
0x160d   :  { %v3013_v33 = vpop.permute.xlu1 %3012 }
0x160e   :  { %v10739_v41 = vadd.f32 %v3013_v33, %v3005_v38 }
0x1610   :  { %9884 = vtanh.f32 %v10739_v41 }
0x1615   :  { %v3191_v50 = vpop.permute.xlu0 %3190 }
0x1616   :  { %v10744_v19 = vadd.f32 %v3191_v50, %v3183_v46  ;;  %v3293_v55 = vpop.permute.xlu1 %3292 }
0x1617   :  { %v10746_v61 = vadd.f32 %v3293_v55, %v3285_v53 }
0x1618   :  { %9886 = vtanh.f32 %v10744_v19 }
0x1619   :  { %9888 = vtanh.f32 %v10746_v61 }
0x161a   :  { %v9885_v20 = vpop.eup %9884 }
0x161b   :  { %3018 = vrot.lane.b32.xlu0 %v9885_v20, %s10160_s12 }
0x1622   :  { %v9887_v27 = vpop.eup %9886 }
0x1623   :  { %v9889_v57 = vpop.eup %9888  ;;  %3196 = vrot.lane.b32.xlu1 %v9887_v27, %s10160_s12 }
0x1624   :  { %3298 = vrot.lane.b32.xlu0 %v9889_v57, %s10160_s12 }
0x168d   :  { %v3019_v58 = vpop.permute.xlu0 %3018 }
0x168e   :  { %v3021_v31 = vmul.f32 %v9879_v18, %v3019_v58  ;;  %v10800_v18 = vadd.f32 %v10796_v15, %v10315_v52 }
0x1690   :  { %3023 = vrot.lane.b32.xlu1 %v3021_v31, %s10161_s13 }
0x1695   :  { %v3197_v25 = vpop.permute.xlu1 %3196 }
0x1696   :  { %v3199_v60 = vmul.f32 %v9881_v24, %v3197_v25  ;;  %v3299_v63 = vpop.permute.xlu0 %3298 }
0x1697   :  { %v3301_v2 = vmul.f32 %v9883_v62, %v3299_v63 }
0x1698   :  { %3375 = vrot.lane.b32.xlu0 %v3199_v60, %s10161_s13 }
0x1699   :  { %v3552_v5 = vrot.slane %v3301_v2, 6 }
0x169b   :  { %3553 = vrot.lane.b32.xlu1 %v3552_v5, %s10161_s13 }
0x1702   :  { %v3024_v6 = vpop.permute.xlu1 %3023 }
0x1703   :  { %3027 = vst.msk [vmem:[#allocation2 + $0xa] sm:$0x3] %vm765_vm2, %v3024_v6  ;;  %8746 = vmatmul.mubr.msk.f32.vlgmr.msra.gmra.mrb[34].mxu1 %vm80_vm1, %v3024_v6 }
0x1704   :  { %9483 = vmatpush3.bf16.msra.mxu1 %v10284_v37  ;;  %8767 = vmatprep.mubr.msk.f32.mxu1 %vm10158_vm0, %v10159_v1 }
0x1705   :  { %9484 = vmatprep.subr.bf16.mxu1 %v10157_v0 }
0x1708   :  { %9486 = vmatpush3.bf16.msra.mxu1 %v10289_v44 }
0x1709   :  { %9493 = vmatprep.subr.bf16.mxu1 %v10157_v0 }
0x170a   :  { %v3376_v7 = vpop.permute.xlu0 %3375 }
0x170b   :  { %8757 = vmatmul.mubr.msk.f32.vlgmr.msra.gmra.mrb[38].mxu0 %vm80_vm1, %v3376_v7  ;;  %8768 = vmatmul.mubr.msk.f32.vlgmr.msra.gmra.mrb[36].mxu1 %vm80_vm1, %v3376_v7  ;;  %v3733_v7 = vrot.slane %v10746_v61, 6 }
0x170c   :  { %9489 = vmatpush3.bf16.msra.mxu0 %v10293_v45  ;;  %9495 = vmatpush3.bf16.msra.mxu1 %v10254_v9 }
0x170d   :  { %9490 = vmatprep.subr.bf16.mxu0 %v10157_v0  ;;  %9496 = vmatprep.subr.bf16.mxu1 %v10157_v0  ;;  %v3554_v29 = vpop.permute.xlu1 %3553 }
0x170e   :  { %8778 = vmatprep.mubr.msk.f32.mxu0 %vm10158_vm0, %v10159_v1  ;;  %8789 = vmatprep.mubr.msk.f32.mxu1 %vm10158_vm0, %v10159_v1 }
0x1710   :  { %9492 = vmatpush3.bf16.msra.mxu0 %v10297_v47  ;;  %9498 = vmatpush3.bf16.msra.mxu1 %v10258_v14 }
0x1711   :  { %9499 = vmatprep.subr.bf16.mxu0 %v10157_v0  ;;  %9505 = vmatprep.subr.bf16.mxu1 %v10157_v0 }
0x1713   :  { %8779 = vmatmul.mubr.msk.f32.vlgmr.msra.gmra.mrb[40].mxu0 %vm80_vm1, %v3554_v29  ;;  %8790 = vmatmul.mubr.msk.f32.vlgmr.msra.gmra.mrb[38].mxu1 %vm80_vm1, %v3554_v29 }
0x1714   :  { %9501 = vmatpush3.bf16.msra.mxu0 %v10341_v35  ;;  %8800 = vmatprep.mubr.msk.f32.mxu0 %vm10158_vm0, %v10159_v1 }
0x1715   :  { %9502 = vmatprep.subr.bf16.mxu0 %v10157_v0  ;;  %9507 = vmatpush3.bf16.msra.mxu1 %v10343_v39 }
0x1716   :  { %9508 = vmatprep.subr.bf16.mxu1 %v10157_v0  ;;  %8811 = vmatprep.mubr.msk.f32.mxu1 %vm10158_vm0, %v10159_v1 }
0x1718   :  { %9504 = vmatpush3.bf16.msra.mxu0 %v10346_v42 }
0x1719   :  { %9511 = vmatprep.subr.bf16.mxu0 %v10157_v0  ;;  %9510 = vmatpush3.bf16.msra.mxu1 %v10351_v43 }
0x171a   :  { %9517 = vmatprep.subr.bf16.mxu1 %v10157_v0 }
0x17d6   :  { %v3370_v8 = vpop.f32.mrb[34].mxu1 }
0x17d7   :  { %v8747_v40 = vpop.f32.mrb[35].mxu1 }
0x17de   :  { %v3445_v11 = vpop.f32.mrb[38].mxu0  ;;  %v3547_v12 = vpop.f32.mrb[36].mxu1 }
0x17df   :  { %v3446_v49 = vadd.f32 %v3445_v11, %v3370_v8  ;;  %v8758_v54 = vpop.f32.mrb[39].mxu0  ;;  %v8769_v16 = vpop.f32.mrb[37].mxu1 }
0x17e1   :  { %v3449_v17 = vadd.f32 %v10727_v59, %v3446_v49 }
0x17e3   :  { %v7835_v13 = vmul.f32 -1.442695, %v3449_v17 }
0x17e5   :  { %9890 = vpow2.f32 %v7835_v13 }
0x17e6   :  { %v3623_v22 = vpop.f32.mrb[40].mxu0  ;;  %v3719_v23 = vpop.f32.mrb[38].mxu1 }
0x17e7   :  { %v3624_v24 = vadd.f32 %v3623_v22, %v3547_v12  ;;  %v8780_v62 = vpop.f32.mrb[41].mxu0  ;;  %v3723_v26 = vadd.f32 %v3719_v23, %v10800_v18  ;;  %v8791_v28 = vpop.f32.mrb[39].mxu1 }
0x17e9   :  { %v3627_v21 = vadd.f32 %v10660_v48, %v3624_v24  ;;  %v7842_v3 = vmul.f32 -1.442695, %v3723_v26 }
0x17eb   :  { %v7839_v4 = vmul.f32 -1.442695, %v3627_v21  ;;  %9892 = vpow2.f32 %v7842_v3 }
0x17ed   :  { %9894 = vpow2.f32 %v7839_v4 }
0x17ef   :  { %v9891_v30 = vpop.eup %9890 }
0x17f0   :  { %v3453_v10 = vadd.f32 1.0, %v9891_v30 }
0x17f2   :  { %9896 = vrcp.f32 %v3453_v10 }
0x17f5   :  { %v9893_v32 = vpop.eup %9892 }
0x17f6   :  { %v3727_v52 = vadd.f32 1.0, %v9893_v32 }
0x17f7   :  { %v9895_v34 = vpop.eup %9894 }
0x17f8   :  { %v3631_v36 = vadd.f32 1.0, %v9895_v34  ;;  %9898 = vrcp.f32 %v3727_v52 }
0x17fa   :  { %9900 = vrcp.f32 %v3631_v36 }
0x17fc   :  { %v9897_v38 = vpop.eup %9896 }
0x17fd   :  { %v3456_v33 = vmul.f32 2.0, %v9897_v38  ;;  %v3458_v2 = vmul.f32 %v9897_v38, %v10739_v41 }
0x17ff   :  { %v7836_v56 = vadd.f32 -1.0, %v3456_v33 }
0x1801   :  { %3460 = vrot.lane.b32.xlu0 %v7836_v56, %s10160_s12 }
0x1802   :  { %v9899_v46 = vpop.eup %9898 }
0x1803   :  { %v3730_v50 = vmul.f32 2.0, %v9899_v46  ;;  %v3735_v29 = vmul.f32 %v9899_v46, %v3733_v7 }
0x1804   :  { %v9901_v53 = vpop.eup %9900 }
0x1805   :  { %v7843_v55 = vadd.f32 -1.0, %v3730_v50  ;;  %v3634_v20 = vmul.f32 2.0, %v9901_v53  ;;  %v3636_v11 = vmul.f32 %v9901_v53, %v10744_v19 }
0x1807   :  { %3737 = vrot.lane.b32.xlu0 %v7843_v55, %s10160_s12  ;;  %v7840_v27 = vadd.f32 -1.0, %v3634_v20 }
0x1809   :  { %3638 = vrot.lane.b32.xlu1 %v7840_v27, %s10160_s12 }
0x1873   :  { %v3461_v57 = vpop.permute.xlu0 %3460 }
0x1874   :  { %v3463_v58 = vmul.f32 %v9897_v38, %v3461_v57 }
0x1876   :  { %3465 = vrot.lane.b32.xlu1 %v3463_v58, %s10161_s13 }
0x1879   :  { %v3738_v31 = vpop.permute.xlu0 %3737 }
0x187a   :  { %v3740_v25 = vmul.f32 %v9899_v46, %v3738_v31 }
0x187b   :  { %v3639_v60 = vpop.permute.xlu1 %3638 }
0x187c   :  { %v3641_v63 = vmul.f32 %v9901_v53, %v3639_v60  ;;  %3742 = vrot.lane.b32.xlu1 %v3740_v25, %s10161_s13 }
0x187e   :  { %3643 = vrot.lane.b32.xlu0 %v3641_v63, %s10161_s13 }
0x18e8   :  { %v3466_v5 = vpop.permute.xlu1 %3465 }
0x18e9   :  { %v10811_v6 = vadd.f32 %v3466_v5, %v3458_v2 }
0x18eb   :  { %9902 = vtanh.f32 %v10811_v6 }
0x18ee   :  { %v3743_v8 = vpop.permute.xlu1 %3742 }
0x18ef   :  { %v10815_v40 = vadd.f32 %v3743_v8, %v3735_v29 }
0x18f0   :  { %v3644_v12 = vpop.permute.xlu0 %3643 }
0x18f1   :  { %9904 = vtanh.f32 %v10815_v40  ;;  %v10819_v49 = vadd.f32 %v3644_v12, %v3636_v11 }
0x18f3   :  { %9906 = vtanh.f32 %v10819_v49 }
0x18f5   :  { %v9903_v41 = vpop.eup %9902 }
0x18f6   :  { %3471 = vrot.lane.b32.xlu0 %v9903_v41, %s10160_s12 }
0x18fb   :  { %v9905_v54 = vpop.eup %9904 }
0x18fc   :  { %3748 = vrot.lane.b32.xlu0 %v9905_v54, %s10160_s12 }
0x18fd   :  { %v9907_v61 = vpop.eup %9906 }
0x18fe   :  { %3649 = vrot.lane.b32.xlu1 %v9907_v61, %s10160_s12 }
0x1968   :  { %v3472_v16 = vpop.permute.xlu0 %3471 }
0x1969   :  { %v3474_v17 = vmul.f32 %v9897_v38, %v3472_v16 }
0x196b   :  { %3476 = vrot.lane.b32.xlu1 %v3474_v17, %s10161_s13 }
0x196e   :  { %v3749_v19 = vpop.permute.xlu0 %3748 }
0x196f   :  { %v3751_v13 = vmul.f32 %v9899_v46, %v3749_v19 }
0x1970   :  { %v3650_v22 = vpop.permute.xlu1 %3649 }
0x1971   :  { %v3652_v23 = vmul.f32 %v9901_v53, %v3650_v22  ;;  %4002 = vrot.lane.b32.xlu1 %v3751_v13, %s10161_s13 }
0x1973   :  { %3825 = vrot.lane.b32.xlu0 %v3652_v23, %s10161_s13 }
0x19dd   :  { %v3477_v24 = vpop.permute.xlu1 %3476 }
0x19de   :  { %3480 = vst.msk [vmem:[#allocation2 + $0xc] sm:$0x3] %vm765_vm2, %v3477_v24  ;;  %8801 = vmatmul.mubr.msk.f32.vlgmr.msra.gmra.mrb[42].mxu0 %vm80_vm1, %v3477_v24 }
0x19df   :  { %9513 = vmatpush3.bf16.msra.mxu0 %v10284_v37  ;;  %8822 = vmatprep.mubr.msk.f32.mxu0 %vm10158_vm0, %v10159_v1 }
0x19e0   :  { %9514 = vmatprep.subr.bf16.mxu0 %v10157_v0 }
0x19e3   :  { %9516 = vmatpush3.bf16.msra.mxu0 %v10289_v44  ;;  %v4003_v26 = vpop.permute.xlu1 %4002 }
0x19e4   :  { %9523 = vmatprep.subr.bf16.mxu0 %v10157_v0 }
0x19e5   :  { %v3826_v62 = vpop.permute.xlu0 %3825 }
0x19e6   :  { %8812 = vmatmul.mubr.msk.f32.vlgmr.msra.gmra.mrb[40].mxu1 %vm80_vm1, %v3826_v62  ;;  %8823 = vmatmul.mubr.msk.f32.vlgmr.msra.gmra.mrb[44].mxu0 %vm80_vm1, %v3826_v62 }
0x19e7   :  { %9519 = vmatpush3.bf16.msra.mxu1 %v10293_v45  ;;  %9525 = vmatpush3.bf16.msra.mxu0 %v10254_v9 }
0x19e8   :  { %9520 = vmatprep.subr.bf16.mxu1 %v10157_v0  ;;  %9526 = vmatprep.subr.bf16.mxu0 %v10157_v0 }
0x19e9   :  { %8833 = vmatprep.mubr.msk.f32.mxu1 %vm10158_vm0, %v10159_v1  ;;  %8844 = vmatprep.mubr.msk.f32.mxu0 %vm10158_vm0, %v10159_v1 }
0x19eb   :  { %9522 = vmatpush3.bf16.msra.mxu1 %v10297_v47  ;;  %9528 = vmatpush3.bf16.msra.mxu0 %v10258_v14 }
0x19ec   :  { %9529 = vmatprep.subr.bf16.mxu1 %v10157_v0  ;;  %9535 = vmatprep.subr.bf16.mxu0 %v10157_v0 }
0x19ee   :  { %8834 = vmatmul.mubr.msk.f32.vlgmr.msra.gmra.mrb[42].mxu1 %vm80_vm1, %v4003_v26  ;;  %8845 = vmatmul.mubr.msk.f32.vlgmr.msra.gmra.mrb[46].mxu0 %vm80_vm1, %v4003_v26  ;;  %v4185_v26 = vrot.slane %v10815_v40, 6 }
0x19ef   :  { %9531 = vmatpush3.bf16.msra.mxu1 %v10341_v35  ;;  %8855 = vmatprep.mubr.msk.f32.mxu1 %vm10158_vm0, %v10159_v1 }
0x19f0   :  { %9532 = vmatprep.subr.bf16.mxu1 %v10157_v0  ;;  %9537 = vmatpush3.bf16.msra.mxu0 %v10343_v39 }
0x19f1   :  { %9538 = vmatprep.subr.bf16.mxu0 %v10157_v0  ;;  %8866 = vmatprep.mubr.msk.f32.mxu0 %vm10158_vm0, %v10159_v1 }
0x19f3   :  { %9534 = vmatpush3.bf16.msra.mxu1 %v10346_v42 }
0x19f4   :  { %9541 = vmatprep.subr.bf16.mxu1 %v10157_v0  ;;  %9540 = vmatpush3.bf16.msra.mxu0 %v10351_v43 }
0x19f5   :  { %9547 = vmatprep.subr.bf16.mxu0 %v10157_v0 }
0x1ab1   :  { %v3820_v28 = vpop.f32.mrb[42].mxu0 }
0x1ab2   :  { %v8802_v21 = vpop.f32.mrb[43].mxu0 }
0x1ab9   :  { %v3895_v3 = vpop.f32.mrb[40].mxu1  ;;  %v3997_v4 = vpop.f32.mrb[44].mxu0 }
0x1aba   :  { %v3896_v30 = vadd.f32 %v3895_v3, %v3820_v28  ;;  %v8813_v10 = vpop.f32.mrb[41].mxu1  ;;  %v8824_v32 = vpop.f32.mrb[45].mxu0 }
0x1abc   :  { %v3899_v52 = vadd.f32 %v10727_v59, %v3896_v30 }
0x1abe   :  { %v7846_v34 = vmul.f32 -1.442695, %v3899_v52 }
0x1ac0   :  { %9908 = vpow2.f32 %v7846_v34 }
0x1ac1   :  { %v4072_v36 = vpop.f32.mrb[42].mxu1  ;;  %v4168_v38 = vpop.f32.mrb[46].mxu0 }
0x1ac2   :  { %v4073_v33 = vadd.f32 %v4072_v36, %v3997_v4  ;;  %v8835_v56 = vpop.f32.mrb[43].mxu1  ;;  %v4173_v46 = vrot.slane %v4168_v38, 6  ;;  %v8846_v50 = vpop.f32.mrb[47].mxu0 }
0x1ac4   :  { %v4076_v53 = vadd.f32 %v10660_v48, %v4073_v33  ;;  %v4175_v55 = vadd.f32 %v4173_v46, %v10800_v18 }
0x1ac6   :  { %v7850_v20 = vmul.f32 -1.442695, %v4076_v53  ;;  %v7853_v27 = vmul.f32 -1.442695, %v4175_v55 }
0x1ac8   :  { %9910 = vpow2.f32 %v7850_v20 }
0x1ac9   :  { %9912 = vpow2.f32 %v7853_v27 }
0x1aca   :  { %v9909_v57 = vpop.eup %9908 }
0x1acb   :  { %v3903_v58 = vadd.f32 1.0, %v9909_v57 }
0x1acd   :  { %9914 = vrcp.f32 %v3903_v58 }
0x1ad2   :  { %v9911_v31 = vpop.eup %9910 }
0x1ad3   :  { %v9913_v25 = vpop.eup %9912  ;;  %v4080_v60 = vadd.f32 1.0, %v9911_v31 }
0x1ad4   :  { %v4179_v63 = vadd.f32 1.0, %v9913_v25 }
0x1ad5   :  { %9916 = vrcp.f32 %v4080_v60 }
0x1ad6   :  { %9918 = vrcp.f32 %v4179_v63 }
0x1ad7   :  { %v9915_v2 = vpop.eup %9914 }
0x1ad8   :  { %v3906_v5 = vmul.f32 2.0, %v9915_v2  ;;  %v3908_v23 = vmul.f32 %v9915_v2, %v10811_v6 }
0x1ada   :  { %v7847_v7 = vadd.f32 -1.0, %v3906_v5 }
0x1adc   :  { %3910 = vrot.lane.b32.xlu0 %v7847_v7, %s10160_s12 }
0x1adf   :  { %v9917_v29 = vpop.eup %9916 }
0x1ae0   :  { %v9919_v8 = vpop.eup %9918  ;;  %v4083_v11 = vmul.f32 2.0, %v9917_v29  ;;  %v4085_v28 = vmul.f32 %v9917_v29, %v10819_v49 }
0x1ae1   :  { %v4182_v12 = vmul.f32 2.0, %v9919_v8  ;;  %v4187_v3 = vmul.f32 %v9919_v8, %v4185_v26 }
0x1ae2   :  { %v7851_v41 = vadd.f32 -1.0, %v4083_v11 }
0x1ae3   :  { %v7854_v54 = vadd.f32 -1.0, %v4182_v12 }
0x1ae4   :  { %4087 = vrot.lane.b32.xlu1 %v7851_v41, %s10160_s12 }
0x1ae5   :  { %4189 = vrot.lane.b32.xlu0 %v7854_v54, %s10160_s12 }
0x1b4e   :  { %v3911_v61 = vpop.permute.xlu0 %3910 }
0x1b4f   :  { %v3913_v16 = vmul.f32 %v9915_v2, %v3911_v61 }
0x1b51   :  { %3915 = vrot.lane.b32.xlu1 %v3913_v16, %s10161_s13 }
0x1b56   :  { %v4088_v17 = vpop.permute.xlu1 %4087 }
0x1b57   :  { %v4090_v19 = vmul.f32 %v9917_v29, %v4088_v17  ;;  %v4190_v13 = vpop.permute.xlu0 %4189 }
0x1b58   :  { %v4192_v22 = vmul.f32 %v9919_v8, %v4190_v13 }
0x1b59   :  { %4092 = vrot.lane.b32.xlu0 %v4090_v19, %s10161_s13 }
0x1b5a   :  { %4194 = vrot.lane.b32.xlu1 %v4192_v22, %s10161_s13 }
0x1bc3   :  { %v3916_v24 = vpop.permute.xlu1 %3915 }
0x1bc4   :  { %v10874_v62 = vadd.f32 %v3916_v24, %v3908_v23 }
0x1bc6   :  { %9920 = vtanh.f32 %v10874_v62 }
0x1bcb   :  { %v4093_v21 = vpop.permute.xlu0 %4092 }
0x1bcc   :  { %v10879_v4 = vadd.f32 %v4093_v21, %v4085_v28  ;;  %v4195_v30 = vpop.permute.xlu1 %4194 }
0x1bcd   :  { %v10881_v10 = vadd.f32 %v4195_v30, %v4187_v3 }
0x1bce   :  { %9922 = vtanh.f32 %v10879_v4 }
0x1bcf   :  { %9924 = vtanh.f32 %v10881_v10 }
0x1bd0   :  { %v9921_v6 = vpop.eup %9920 }
0x1bd1   :  { %3921 = vrot.lane.b32.xlu0 %v9921_v6, %s10160_s12 }
0x1bd8   :  { %v9923_v32 = vpop.eup %9922 }
0x1bd9   :  { %v9925_v52 = vpop.eup %9924  ;;  %4098 = vrot.lane.b32.xlu1 %v9923_v32, %s10160_s12 }
0x1bda   :  { %4200 = vrot.lane.b32.xlu0 %v9925_v52, %s10160_s12 }
0x1c43   :  { %v3922_v40 = vpop.permute.xlu0 %3921 }
0x1c44   :  { %v3924_v49 = vmul.f32 %v9915_v2, %v3922_v40 }
0x1c46   :  { %3926 = vrot.lane.b32.xlu1 %v3924_v49, %s10161_s13 }
0x1c4b   :  { %v4099_v34 = vpop.permute.xlu1 %4098 }
0x1c4c   :  { %v4101_v36 = vmul.f32 %v9917_v29, %v4099_v34  ;;  %v4201_v38 = vpop.permute.xlu0 %4200 }
0x1c4d   :  { %v4203_v33 = vmul.f32 %v9919_v8, %v4201_v38 }
0x1c4e   :  { %4277 = vrot.lane.b32.xlu0 %v4101_v36, %s10161_s13 }
0x1c4f   :  { %v4454_v56 = vrot.slane %v4203_v33, 2 }
0x1c51   :  { %4455 = vrot.lane.b32.xlu1 %v4454_v56, %s10161_s13 }
0x1cb8   :  { %v3927_v46 = vpop.permute.xlu1 %3926 }
0x1cb9   :  { %3930 = vst.msk [vmem:[#allocation2 + $0xe] sm:$0x3] %vm765_vm2, %v3927_v46  ;;  %8856 = vmatmul.mubr.msk.f32.vlgmr.msra.gmra.mrb[44].mxu1 %vm80_vm1, %v3927_v46 }
0x1cba   :  { %9543 = vmatpush3.bf16.msra.mxu1 %v10284_v37  ;;  %8877 = vmatprep.mubr.msk.f32.mxu1 %vm10158_vm0, %v10159_v1 }
0x1cbb   :  { %9544 = vmatprep.subr.bf16.mxu1 %v10157_v0 }
0x1cbe   :  { %9546 = vmatpush3.bf16.msra.mxu1 %v10289_v44 }
0x1cbf   :  { %9553 = vmatprep.subr.bf16.mxu1 %v10157_v0 }
0x1cc0   :  { %v4278_v50 = vpop.permute.xlu0 %4277 }
0x1cc1   :  { %8867 = vmatmul.mubr.msk.f32.vlgmr.msra.gmra.mrb[48].mxu0 %vm80_vm1, %v4278_v50  ;;  %8878 = vmatmul.mubr.msk.f32.vlgmr.msra.gmra.mrb[46].mxu1 %vm80_vm1, %v4278_v50  ;;  %v4638_v50 = vrot.slane %v10881_v10, 6 }
0x1cc2   :  { %9549 = vmatpush3.bf16.msra.mxu0 %v10293_v45  ;;  %9555 = vmatpush3.bf16.msra.mxu1 %v10254_v9 }
0x1cc3   :  { %9550 = vmatprep.subr.bf16.mxu0 %v10157_v0  ;;  %9556 = vmatprep.subr.bf16.mxu1 %v10157_v0  ;;  %v4456_v53 = vpop.permute.xlu1 %4455 }
0x1cc4   :  { %8888 = vmatprep.mubr.msk.f32.mxu0 %vm10158_vm0, %v10159_v1  ;;  %8899 = vmatprep.mubr.msk.f32.mxu1 %vm10158_vm0, %v10159_v1 }
0x1cc6   :  { %9552 = vmatpush3.bf16.msra.mxu0 %v10297_v47  ;;  %9558 = vmatpush3.bf16.msra.mxu1 %v10258_v14 }
0x1cc7   :  { %9559 = vmatprep.subr.bf16.mxu0 %v10157_v0  ;;  %9565 = vmatprep.subr.bf16.mxu1 %v10157_v0 }
0x1cc9   :  { %8889 = vmatmul.mubr.msk.f32.vlgmr.msra.gmra.mrb[50].mxu0 %vm80_vm1, %v4456_v53  ;;  %8900 = vmatmul.mubr.msk.f32.vlgmr.msra.gmra.mrb[48].mxu1 %vm80_vm1, %v4456_v53 }
0x1cca   :  { %9561 = vmatpush3.bf16.msra.mxu0 %v10341_v35  ;;  %8910 = vmatprep.mubr.msk.f32.mxu0 %vm10158_vm0, %v10159_v1 }
0x1ccb   :  { %9562 = vmatprep.subr.bf16.mxu0 %v10157_v0  ;;  %9567 = vmatpush3.bf16.msra.mxu1 %v10343_v39 }
0x1ccc   :  { %9568 = vmatprep.subr.bf16.mxu1 %v10157_v0  ;;  %8921 = vmatprep.mubr.msk.f32.mxu1 %vm10158_vm0, %v10159_v1 }
0x1cce   :  { %9564 = vmatpush3.bf16.msra.mxu0 %v10346_v42 }
0x1ccf   :  { %9571 = vmatprep.subr.bf16.mxu0 %v10157_v0  ;;  %9570 = vmatpush3.bf16.msra.mxu1 %v10351_v43 }
0x1cd0   :  { %9577 = vmatprep.subr.bf16.mxu1 %v10157_v0 }
0x1d8c   :  { %v4272_v55 = vpop.f32.mrb[44].mxu1 }
0x1d8d   :  { %v8857_v20 = vpop.f32.mrb[45].mxu1 }
0x1d94   :  { %v4347_v27 = vpop.f32.mrb[48].mxu0  ;;  %v4449_v57 = vpop.f32.mrb[46].mxu1 }
0x1d95   :  { %v4348_v58 = vadd.f32 %v4347_v27, %v4272_v55  ;;  %v8868_v31 = vpop.f32.mrb[49].mxu0  ;;  %v8879_v25 = vpop.f32.mrb[47].mxu1 }
0x1d97   :  { %v4351_v60 = vadd.f32 %v10727_v59, %v4348_v58 }
0x1d99   :  { %v7857_v63 = vmul.f32 -1.442695, %v4351_v60 }
0x1d9b   :  { %9926 = vpow2.f32 %v7857_v63 }
0x1d9c   :  { %v4525_v2 = vpop.f32.mrb[50].mxu0  ;;  %v4621_v5 = vpop.f32.mrb[48].mxu1 }
0x1d9d   :  { %v4526_v7 = vadd.f32 %v4525_v2, %v4449_v57  ;;  %v8890_v29 = vpop.f32.mrb[51].mxu0  ;;  %v4626_v8 = vrot.slane %v4621_v5, 4  ;;  %v8901_v11 = vpop.f32.mrb[49].mxu1 }
0x1d9f   :  { %v4529_v12 = vadd.f32 %v10660_v48, %v4526_v7  ;;  %v4628_v41 = vadd.f32 %v4626_v8, %v10800_v18 }
0x1da1   :  { %v7861_v54 = vmul.f32 -1.442695, %v4529_v12  ;;  %v7864_v61 = vmul.f32 -1.442695, %v4628_v41 }
0x1da3   :  { %9928 = vpow2.f32 %v7861_v54 }
0x1da4   :  { %9930 = vpow2.f32 %v7864_v61 }
0x1da5   :  { %v9927_v16 = vpop.eup %9926 }
0x1da6   :  { %v4355_v17 = vadd.f32 1.0, %v9927_v16 }
0x1da8   :  { %9932 = vrcp.f32 %v4355_v17 }
0x1dad   :  { %v9929_v19 = vpop.eup %9928 }
0x1dae   :  { %v9931_v13 = vpop.eup %9930  ;;  %v4533_v22 = vadd.f32 1.0, %v9929_v19 }
0x1daf   :  { %v4632_v23 = vadd.f32 1.0, %v9931_v13 }
0x1db0   :  { %9934 = vrcp.f32 %v4533_v22 }
0x1db1   :  { %9936 = vrcp.f32 %v4632_v23 }
0x1db2   :  { %v9933_v24 = vpop.eup %9932 }
0x1db3   :  { %v4358_v26 = vmul.f32 2.0, %v9933_v24  ;;  %v4360_v33 = vmul.f32 %v9933_v24, %v10874_v62 }
0x1db5   :  { %v7858_v28 = vadd.f32 -1.0, %v4358_v26 }
0x1db7   :  { %4362 = vrot.lane.b32.xlu0 %v7858_v28, %s10160_s12 }
0x1dba   :  { %v9935_v48 = vpop.eup %9934 }
0x1dbb   :  { %v9937_v21 = vpop.eup %9936  ;;  %v4536_v3 = vmul.f32 2.0, %v9935_v48  ;;  %v4538_v53 = vmul.f32 %v9935_v48, %v10879_v4 }
0x1dbc   :  { %v4635_v30 = vmul.f32 2.0, %v9937_v21  ;;  %v4640_v20 = vmul.f32 %v9937_v21, %v4638_v50 }
0x1dbd   :  { %v7862_v6 = vadd.f32 -1.0, %v4536_v3  ;;  %v10994_v3 = vld [vmem:[%s11398_s3 + $0x1] ss:$0 sm:$0xff] }
0x1dbe   :  { %v7865_v32 = vadd.f32 -1.0, %v4635_v30 }
0x1dbf   :  { %4540 = vrot.lane.b32.xlu1 %v7862_v6, %s10160_s12 }
0x1dc0   :  { %4642 = vrot.lane.b32.xlu0 %v7865_v32, %s10160_s12 }
0x1e29   :  { %v4363_v52 = vpop.permute.xlu0 %4362 }
0x1e2a   :  { %v4365_v40 = vmul.f32 %v9933_v24, %v4363_v52 }
0x1e2c   :  { %4367 = vrot.lane.b32.xlu1 %v4365_v40, %s10161_s13 }
0x1e31   :  { %v4541_v49 = vpop.permute.xlu1 %4540 }
0x1e32   :  { %v4543_v34 = vmul.f32 %v9935_v48, %v4541_v49  ;;  %v4643_v36 = vpop.permute.xlu0 %4642 }
0x1e33   :  { %v4645_v38 = vmul.f32 %v9937_v21, %v4643_v36 }
0x1e34   :  { %4545 = vrot.lane.b32.xlu0 %v4543_v34, %s10161_s13 }
0x1e35   :  { %4647 = vrot.lane.b32.xlu1 %v4645_v38, %s10161_s13 }
0x1e9e   :  { %v4368_v56 = vpop.permute.xlu1 %4367 }
0x1e9f   :  { %v10937_v46 = vadd.f32 %v4368_v56, %v4360_v33 }
0x1ea1   :  { %9938 = vtanh.f32 %v10937_v46 }
0x1ea6   :  { %v4546_v55 = vpop.permute.xlu0 %4545 }
0x1ea7   :  { %v10942_v27 = vadd.f32 %v4546_v55, %v4538_v53  ;;  %v4648_v57 = vpop.permute.xlu1 %4647 }
0x1ea8   :  { %v10944_v58 = vadd.f32 %v4648_v57, %v4640_v20 }
0x1ea9   :  { %9940 = vtanh.f32 %v10942_v27 }
0x1eaa   :  { %9942 = vtanh.f32 %v10944_v58 }
0x1eab   :  { %v9939_v62 = vpop.eup %9938 }
0x1eac   :  { %4373 = vrot.lane.b32.xlu0 %v9939_v62, %s10160_s12 }
0x1eb3   :  { %v9941_v31 = vpop.eup %9940 }
0x1eb4   :  { %v9943_v25 = vpop.eup %9942  ;;  %4551 = vrot.lane.b32.xlu1 %v9941_v31, %s10160_s12 }
0x1eb5   :  { %4653 = vrot.lane.b32.xlu0 %v9943_v25, %s10160_s12 }
0x1f1e   :  { %v4374_v4 = vpop.permute.xlu0 %4373 }
0x1f1f   :  { %v4376_v10 = vmul.f32 %v9933_v24, %v4374_v4 }
0x1f21   :  { %4378 = vrot.lane.b32.xlu1 %v4376_v10, %s10161_s13 }
0x1f26   :  { %v4552_v60 = vpop.permute.xlu1 %4551 }
0x1f27   :  { %v4554_v63 = vmul.f32 %v9935_v48, %v4552_v60  ;;  %v4654_v2 = vpop.permute.xlu0 %4653 }
0x1f28   :  { %v4656_v5 = vmul.f32 %v9937_v21, %v4654_v2 }
0x1f29   :  { %4730 = vrot.lane.b32.xlu0 %v4554_v63, %s10161_s13 }
0x1f2a   :  { %v4907_v7 = vrot.slane %v4656_v5, 4 }
0x1f2c   :  { %4908 = vrot.lane.b32.xlu1 %v4907_v7, %s10161_s13 }
0x1f93   :  { %v4379_v29 = vpop.permute.xlu1 %4378 }
0x1f94   :  { %4382 = vst.msk [vmem:[#allocation2 + $0x10] sm:$0x3] %vm765_vm2, %v4379_v29  ;;  %8911 = vmatmul.mubr.msk.f32.vlgmr.msra.gmra.mrb[52].mxu0 %vm80_vm1, %v4379_v29  ;;  %v5091_v29 = vrot.slane %v10944_v58, 6 }
0x1f95   :  { %9573 = vmatpush3.bf16.msra.mxu0 %v10284_v37  ;;  %8932 = vmatprep.mubr.msk.f32.mxu0 %vm10158_vm0, %v10159_v1 }
0x1f96   :  { %9574 = vmatprep.subr.bf16.mxu0 %v10157_v0 }
0x1f99   :  { %9576 = vmatpush3.bf16.msra.mxu0 %v10289_v44 }
0x1f9a   :  { %9583 = vmatprep.subr.bf16.mxu0 %v10157_v0 }
0x1f9b   :  { %v4731_v8 = vpop.permute.xlu0 %4730 }
0x1f9c   :  { %8922 = vmatmul.mubr.msk.f32.vlgmr.msra.gmra.mrb[50].mxu1 %vm80_vm1, %v4731_v8  ;;  %8933 = vmatmul.mubr.msk.f32.vlgmr.msra.gmra.mrb[54].mxu0 %vm80_vm1, %v4731_v8 }
0x1f9d   :  { %9579 = vmatpush3.bf16.msra.mxu1 %v10293_v45  ;;  %9585 = vmatpush3.bf16.msra.mxu0 %v10254_v9 }
0x1f9e   :  { %9580 = vmatprep.subr.bf16.mxu1 %v10157_v0  ;;  %9586 = vmatprep.subr.bf16.mxu0 %v10157_v0  ;;  %v4909_v11 = vpop.permute.xlu1 %4908 }
0x1f9f   :  { %8943 = vmatprep.mubr.msk.f32.mxu1 %vm10158_vm0, %v10159_v1  ;;  %8954 = vmatprep.mubr.msk.f32.mxu0 %vm10158_vm0, %v10159_v1 }
0x1fa1   :  { %9582 = vmatpush3.bf16.msra.mxu1 %v10297_v47  ;;  %9588 = vmatpush3.bf16.msra.mxu0 %v10258_v14 }
0x1fa2   :  { %9589 = vmatprep.subr.bf16.mxu1 %v10157_v0  ;;  %9595 = vmatprep.subr.bf16.mxu0 %v10157_v0 }
0x1fa4   :  { %8944 = vmatmul.mubr.msk.f32.vlgmr.msra.gmra.mrb[52].mxu1 %vm80_vm1, %v4909_v11  ;;  %8955 = vmatmul.mubr.msk.f32.vlgmr.msra.gmra.mrb[56].mxu0 %vm80_vm1, %v4909_v11 }
0x1fa5   :  { %9591 = vmatpush3.bf16.msra.mxu1 %v10341_v35  ;;  %8965 = vmatprep.mubr.msk.f32.mxu1 %vm10158_vm0, %v10159_v1 }
0x1fa6   :  { %9592 = vmatprep.subr.bf16.mxu1 %v10157_v0  ;;  %9597 = vmatpush3.bf16.msra.mxu0 %v10343_v39 }
0x1fa7   :  { %9598 = vmatprep.subr.bf16.mxu0 %v10157_v0  ;;  %8976 = vmatprep.mubr.msk.f32.mxu0 %vm10158_vm0, %v10159_v1 }
0x1fa9   :  { %9594 = vmatpush3.bf16.msra.mxu1 %v10346_v42 }
0x1faa   :  { %9601 = vmatprep.subr.bf16.mxu1 %v10157_v0  ;;  %9600 = vmatpush3.bf16.msra.mxu0 %v10351_v43 }
0x1fab   :  { %9607 = vmatprep.subr.bf16.mxu0 %v10157_v0 }
0x2067   :  { %v4725_v12 = vpop.f32.mrb[52].mxu0 }
0x2068   :  { %v8912_v41 = vpop.f32.mrb[53].mxu0 }
0x206f   :  { %v4800_v54 = vpop.f32.mrb[50].mxu1  ;;  %v4902_v61 = vpop.f32.mrb[54].mxu0 }
0x2070   :  { %v4801_v16 = vadd.f32 %v4800_v54, %v4725_v12  ;;  %v8923_v17 = vpop.f32.mrb[51].mxu1  ;;  %v8934_v19 = vpop.f32.mrb[55].mxu0 }
0x2072   :  { %v4804_v13 = vadd.f32 %v10727_v59, %v4801_v16 }
0x2074   :  { %v7868_v22 = vmul.f32 -1.442695, %v4804_v13 }
0x2076   :  { %9944 = vpow2.f32 %v7868_v22 }
0x2077   :  { %v4978_v23 = vpop.f32.mrb[52].mxu1  ;;  %v5074_v24 = vpop.f32.mrb[56].mxu0 }
0x2078   :  { %v4979_v26 = vadd.f32 %v4978_v23, %v4902_v61  ;;  %v8945_v28 = vpop.f32.mrb[53].mxu1  ;;  %v5079_v48 = vrot.slane %v5074_v24, 2  ;;  %v8956_v21 = vpop.f32.mrb[57].mxu0 }
0x207a   :  { %v4982_v30 = vadd.f32 %v10994_v3, %v4979_v26  ;;  %v5081_v6 = vadd.f32 %v5079_v48, %v10800_v18 }
0x207c   :  { %v7872_v32 = vmul.f32 -1.442695, %v4982_v30  ;;  %v7875_v52 = vmul.f32 -1.442695, %v5081_v6 }
0x207e   :  { %9946 = vpow2.f32 %v7872_v32 }
0x207f   :  { %9948 = vpow2.f32 %v7875_v52 }
0x2080   :  { %v9945_v59 = vpop.eup %9944 }
0x2081   :  { %v4808_v40 = vadd.f32 1.0, %v9945_v59 }
0x2083   :  { %9950 = vrcp.f32 %v4808_v40 }
0x2088   :  { %v9947_v49 = vpop.eup %9946 }
0x2089   :  { %v9949_v34 = vpop.eup %9948  ;;  %v4986_v36 = vadd.f32 1.0, %v9947_v49  ;;  %v11061_v49 = vld [vmem:[%s11398_s3 + $0x2] ss:$0 sm:$0xff] }
0x208a   :  { %v5085_v38 = vadd.f32 1.0, %v9949_v34 }
0x208b   :  { %9952 = vrcp.f32 %v4986_v36 }
0x208c   :  { %9954 = vrcp.f32 %v5085_v38  ;;  %v11066_v38 = vadd.f32 %v10796_v15, %v10313_v51 }
0x208d   :  { %v9951_v33 = vpop.eup %9950 }
0x208e   :  { %v4811_v56 = vmul.f32 2.0, %v9951_v33  ;;  %v4813_v2 = vmul.f32 %v9951_v33, %v10937_v46 }
0x2090   :  { %v7869_v50 = vadd.f32 -1.0, %v4811_v56 }
0x2092   :  { %4815 = vrot.lane.b32.xlu0 %v7869_v50, %s10160_s12 }
0x2095   :  { %v9953_v53 = vpop.eup %9952 }
0x2096   :  { %v9955_v18 = vpop.eup %9954  ;;  %v4989_v55 = vmul.f32 2.0, %v9953_v53  ;;  %v4991_v8 = vmul.f32 %v9953_v53, %v10942_v27 }
0x2097   :  { %v5088_v20 = vmul.f32 2.0, %v9955_v18  ;;  %v5093_v12 = vmul.f32 %v9955_v18, %v5091_v29 }
0x2098   :  { %v7873_v57 = vadd.f32 -1.0, %v4989_v55 }
0x2099   :  { %v7876_v62 = vadd.f32 -1.0, %v5088_v20 }
0x209a   :  { %4993 = vrot.lane.b32.xlu1 %v7873_v57, %s10160_s12 }
0x209b   :  { %5095 = vrot.lane.b32.xlu0 %v7876_v62, %s10160_s12 }
0x2104   :  { %v4816_v31 = vpop.permute.xlu0 %4815 }
0x2105   :  { %v4818_v25 = vmul.f32 %v9951_v33, %v4816_v31 }
0x2107   :  { %4820 = vrot.lane.b32.xlu1 %v4818_v25, %s10161_s13 }
0x210c   :  { %v4994_v4 = vpop.permute.xlu1 %4993 }
0x210d   :  { %v4996_v10 = vmul.f32 %v9953_v53, %v4994_v4  ;;  %v5096_v60 = vpop.permute.xlu0 %5095 }
0x210e   :  { %v5098_v63 = vmul.f32 %v9955_v18, %v5096_v60 }
0x210f   :  { %4998 = vrot.lane.b32.xlu0 %v4996_v10, %s10161_s13 }
0x2110   :  { %5100 = vrot.lane.b32.xlu1 %v5098_v63, %s10161_s13 }
0x2179   :  { %v4821_v5 = vpop.permute.xlu1 %4820 }
0x217a   :  { %v11005_v7 = vadd.f32 %v4821_v5, %v4813_v2 }
0x217c   :  { %9956 = vtanh.f32 %v11005_v7 }
0x2181   :  { %v4999_v11 = vpop.permute.xlu0 %4998 }
0x2182   :  { %v11010_v41 = vadd.f32 %v4999_v11, %v4991_v8  ;;  %v5101_v54 = vpop.permute.xlu1 %5100 }
0x2183   :  { %v11012_v61 = vadd.f32 %v5101_v54, %v5093_v12 }
0x2184   :  { %9958 = vtanh.f32 %v11010_v41 }
0x2185   :  { %9960 = vtanh.f32 %v11012_v61 }
0x2186   :  { %v9957_v46 = vpop.eup %9956 }
0x2187   :  { %4826 = vrot.lane.b32.xlu0 %v9957_v46, %s10160_s12 }
0x218e   :  { %v9959_v16 = vpop.eup %9958 }
0x218f   :  { %v9961_v17 = vpop.eup %9960  ;;  %5004 = vrot.lane.b32.xlu1 %v9959_v16, %s10160_s12 }
0x2190   :  { %5106 = vrot.lane.b32.xlu0 %v9961_v17, %s10160_s12 }
0x21f9   :  { %v4827_v27 = vpop.permute.xlu0 %4826 }
0x21fa   :  { %v4829_v58 = vmul.f32 %v9951_v33, %v4827_v27 }
0x21fc   :  { %4831 = vrot.lane.b32.xlu1 %v4829_v58, %s10161_s13 }
0x2201   :  { %v5005_v19 = vpop.permute.xlu1 %5004 }
0x2202   :  { %v5007_v13 = vmul.f32 %v9953_v53, %v5005_v19  ;;  %v5107_v22 = vpop.permute.xlu0 %5106 }
0x2203   :  { %v5109_v23 = vmul.f32 %v9955_v18, %v5107_v22 }
0x2204   :  { %5183 = vrot.lane.b32.xlu0 %v5007_v13, %s10161_s13 }
0x2205   :  { %v5360_v24 = vrot.slane %v5109_v23, 6 }
0x2207   :  { %5361 = vrot.lane.b32.xlu1 %v5360_v24, %s10161_s13  ;;  %v5541_v24 = vrot.slane %v11012_v61, 6 }
0x226e   :  { %v4832_v26 = vpop.permute.xlu1 %4831 }
0x226f   :  { %4835 = vst.msk [vmem:[#allocation2 + $0x12] sm:$0x3] %vm765_vm2, %v4832_v26  ;;  %8966 = vmatmul.mubr.msk.f32.vlgmr.msra.gmra.mrb[54].mxu1 %vm80_vm1, %v4832_v26 }
0x2270   :  { %9603 = vmatpush3.bf16.msra.mxu1 %v10284_v37  ;;  %8987 = vmatprep.mubr.msk.f32.mxu1 %vm10158_vm0, %v10159_v1 }
0x2271   :  { %9604 = vmatprep.subr.bf16.mxu1 %v10157_v0 }
0x2274   :  { %9606 = vmatpush3.bf16.msra.mxu1 %v10289_v44 }
0x2275   :  { %9613 = vmatprep.subr.bf16.mxu1 %v10157_v0 }
0x2276   :  { %v5184_v28 = vpop.permute.xlu0 %5183 }
0x2277   :  { %8977 = vmatmul.mubr.msk.f32.vlgmr.msra.gmra.mrb[58].mxu0 %vm80_vm1, %v5184_v28  ;;  %8988 = vmatmul.mubr.msk.f32.vlgmr.msra.gmra.mrb[56].mxu1 %vm80_vm1, %v5184_v28 }
0x2278   :  { %9609 = vmatpush3.bf16.msra.mxu0 %v10293_v45  ;;  %9615 = vmatpush3.bf16.msra.mxu1 %v10254_v9 }
0x2279   :  { %9610 = vmatprep.subr.bf16.mxu0 %v10157_v0  ;;  %9616 = vmatprep.subr.bf16.mxu1 %v10157_v0  ;;  %v5362_v48 = vpop.permute.xlu1 %5361 }
0x227a   :  { %8998 = vmatprep.mubr.msk.f32.mxu0 %vm10158_vm0, %v10159_v1  ;;  %9009 = vmatprep.mubr.msk.f32.mxu1 %vm10158_vm0, %v10159_v1 }
0x227c   :  { %9612 = vmatpush3.bf16.msra.mxu0 %v10297_v47  ;;  %9618 = vmatpush3.bf16.msra.mxu1 %v10258_v14 }
0x227d   :  { %9619 = vmatprep.subr.bf16.mxu0 %v10157_v0  ;;  %9625 = vmatprep.subr.bf16.mxu1 %v10157_v0 }
0x227f   :  { %8999 = vmatmul.mubr.msk.f32.vlgmr.msra.gmra.mrb[60].mxu0 %vm80_vm1, %v5362_v48  ;;  %9010 = vmatmul.mubr.msk.f32.vlgmr.msra.gmra.mrb[58].mxu1 %vm80_vm1, %v5362_v48 }
0x2280   :  { %9621 = vmatpush3.bf16.msra.mxu0 %v10341_v35  ;;  %9020 = vmatprep.mubr.msk.f32.mxu0 %vm10158_vm0, %v10159_v1 }
0x2281   :  { %9622 = vmatprep.subr.bf16.mxu0 %v10157_v0  ;;  %9627 = vmatpush3.bf16.msra.mxu1 %v10343_v39 }
0x2282   :  { %9628 = vmatprep.subr.bf16.mxu1 %v10157_v0  ;;  %9031 = vmatprep.mubr.msk.f32.mxu1 %vm10158_vm0, %v10159_v1 }
0x2284   :  { %9624 = vmatpush3.bf16.msra.mxu0 %v10346_v42 }
0x2285   :  { %9631 = vmatprep.subr.bf16.mxu0 %v10157_v0  ;;  %9630 = vmatpush3.bf16.msra.mxu1 %v10351_v43 }
0x2286   :  { %9637 = vmatprep.subr.bf16.mxu1 %v10157_v0 }
0x2342   :  { %v5178_v21 = vpop.f32.mrb[54].mxu1 }
0x2343   :  { %v8967_v30 = vpop.f32.mrb[55].mxu1 }
0x234a   :  { %v5253_v6 = vpop.f32.mrb[58].mxu0  ;;  %v5355_v32 = vpop.f32.mrb[56].mxu1 }
0x234b   :  { %v5254_v52 = vadd.f32 %v5253_v6, %v5178_v21  ;;  %v8978_v59 = vpop.f32.mrb[59].mxu0  ;;  %v8989_v40 = vpop.f32.mrb[57].mxu1 }
0x234d   :  { %v5257_v34 = vadd.f32 %v11061_v49, %v5254_v52 }
0x234f   :  { %v7879_v36 = vmul.f32 -1.442695, %v5257_v34 }
0x2351   :  { %9962 = vpow2.f32 %v7879_v36 }
0x2352   :  { %v5431_v33 = vpop.f32.mrb[60].mxu0  ;;  %v5527_v56 = vpop.f32.mrb[58].mxu1 }
0x2353   :  { %v5432_v50 = vadd.f32 %v5431_v33, %v5355_v32  ;;  %v9000_v53 = vpop.f32.mrb[61].mxu0  ;;  %v5531_v18 = vadd.f32 %v5527_v56, %v11066_v38  ;;  %v9011_v55 = vpop.f32.mrb[59].mxu1 }
0x2355   :  { %v5435_v20 = vadd.f32 %v10994_v3, %v5432_v50  ;;  %v7886_v57 = vmul.f32 -1.442695, %v5531_v18 }
0x2357   :  { %v7883_v62 = vmul.f32 -1.442695, %v5435_v20  ;;  %9964 = vpow2.f32 %v7886_v57 }
0x2359   :  { %9966 = vpow2.f32 %v7883_v62 }
0x235b   :  { %v9963_v31 = vpop.eup %9962 }
0x235c   :  { %v5261_v25 = vadd.f32 1.0, %v9963_v31 }
0x235e   :  { %9968 = vrcp.f32 %v5261_v25 }
0x2361   :  { %v9965_v4 = vpop.eup %9964 }
0x2362   :  { %v5535_v51 = vadd.f32 1.0, %v9965_v4 }
0x2363   :  { %v9967_v15 = vpop.eup %9966 }
0x2364   :  { %v5439_v10 = vadd.f32 1.0, %v9967_v15  ;;  %9970 = vrcp.f32 %v5535_v51 }
0x2366   :  { %9972 = vrcp.f32 %v5439_v10 }
0x2368   :  { %v9969_v60 = vpop.eup %9968 }
0x2369   :  { %v5264_v63 = vmul.f32 2.0, %v9969_v60  ;;  %v5266_v13 = vmul.f32 %v9969_v60, %v11005_v7 }
0x236b   :  { %v7880_v2 = vadd.f32 -1.0, %v5264_v63 }
0x236d   :  { %5268 = vrot.lane.b32.xlu0 %v7880_v2, %s10160_s12 }
0x236e   :  { %v9971_v5 = vpop.eup %9970 }
0x236f   :  { %v5538_v29 = vmul.f32 2.0, %v9971_v5  ;;  %v5543_v26 = vmul.f32 %v9971_v5, %v5541_v24 }
0x2370   :  { %v9973_v8 = vpop.eup %9972 }
0x2371   :  { %v7887_v11 = vadd.f32 -1.0, %v5538_v29  ;;  %v5442_v12 = vmul.f32 2.0, %v9973_v8  ;;  %v5444_v21 = vmul.f32 %v9973_v8, %v11010_v41 }
0x2373   :  { %5545 = vrot.lane.b32.xlu0 %v7887_v11, %s10160_s12  ;;  %v7884_v54 = vadd.f32 -1.0, %v5442_v12 }
0x2375   :  { %5446 = vrot.lane.b32.xlu1 %v7884_v54, %s10160_s12 }
0x23df   :  { %v5269_v46 = vpop.permute.xlu0 %5268 }
0x23e0   :  { %v5271_v16 = vmul.f32 %v9969_v60, %v5269_v46 }
0x23e2   :  { %5273 = vrot.lane.b32.xlu1 %v5271_v16, %s10161_s13 }
0x23e5   :  { %v5546_v17 = vpop.permute.xlu0 %5545 }
0x23e6   :  { %v5548_v27 = vmul.f32 %v9971_v5, %v5546_v17 }
0x23e7   :  { %v5447_v58 = vpop.permute.xlu1 %5446 }
0x23e8   :  { %v5449_v19 = vmul.f32 %v9973_v8, %v5447_v58  ;;  %5550 = vrot.lane.b32.xlu1 %v5548_v27, %s10161_s13 }
0x23ea   :  { %5451 = vrot.lane.b32.xlu0 %v5449_v19, %s10161_s13 }
0x2454   :  { %v5274_v22 = vpop.permute.xlu1 %5273 }
0x2455   :  { %v11077_v23 = vadd.f32 %v5274_v22, %v5266_v13 }
0x2457   :  { %9974 = vtanh.f32 %v11077_v23 }
0x245a   :  { %v5551_v28 = vpop.permute.xlu1 %5550 }
0x245b   :  { %v11081_v48 = vadd.f32 %v5551_v28, %v5543_v26 }
0x245c   :  { %v5452_v30 = vpop.permute.xlu0 %5451 }
0x245d   :  { %9976 = vtanh.f32 %v11081_v48  ;;  %v11085_v6 = vadd.f32 %v5452_v30, %v5444_v21 }
0x245f   :  { %9978 = vtanh.f32 %v11085_v6 }
0x2461   :  { %v9975_v7 = vpop.eup %9974 }
0x2462   :  { %5279 = vrot.lane.b32.xlu0 %v9975_v7, %s10160_s12 }
0x2467   :  { %v9977_v32 = vpop.eup %9976 }
0x2468   :  { %5556 = vrot.lane.b32.xlu0 %v9977_v32, %s10160_s12 }
0x2469   :  { %v9979_v61 = vpop.eup %9978 }
0x246a   :  { %5457 = vrot.lane.b32.xlu1 %v9979_v61, %s10160_s12 }
0x24d4   :  { %v5280_v52 = vpop.permute.xlu0 %5279 }
0x24d5   :  { %v5282_v59 = vmul.f32 %v9969_v60, %v5280_v52 }
0x24d7   :  { %5284 = vrot.lane.b32.xlu1 %v5282_v59, %s10161_s13 }
0x24da   :  { %v5557_v41 = vpop.permute.xlu0 %5556 }
0x24db   :  { %v5559_v40 = vmul.f32 %v9971_v5, %v5557_v41 }
0x24dc   :  { %v5458_v34 = vpop.permute.xlu1 %5457 }
0x24dd   :  { %v5460_v36 = vmul.f32 %v9973_v8, %v5458_v34  ;;  %5810 = vrot.lane.b32.xlu1 %v5559_v40, %s10161_s13 }
0x24df   :  { %5633 = vrot.lane.b32.xlu0 %v5460_v36, %s10161_s13 }
0x2549   :  { %v5285_v33 = vpop.permute.xlu1 %5284 }
0x254a   :  { %5288 = vst.msk [vmem:[#allocation2 + $0x14] sm:$0x3] %vm765_vm2, %v5285_v33  ;;  %9021 = vmatmul.mubr.msk.f32.vlgmr.msra.gmra.mrb[62].mxu0 %vm80_vm1, %v5285_v33  ;;  %v5993_v33 = vrot.slane %v11081_v48, 6 }
0x254b   :  { %9633 = vmatpush3.bf16.msra.mxu0 %v10284_v37  ;;  %9042 = vmatprep.mubr.msk.f32.mxu0 %vm10158_vm0, %v10159_v1 }
0x254c   :  { %9634 = vmatprep.subr.bf16.mxu0 %v10157_v0 }
0x254f   :  { %9636 = vmatpush3.bf16.msra.mxu0 %v10289_v44  ;;  %v5811_v50 = vpop.permute.xlu1 %5810 }
0x2550   :  { %9643 = vmatprep.subr.bf16.mxu0 %v10157_v0 }
0x2551   :  { %v5634_v56 = vpop.permute.xlu0 %5633 }
0x2552   :  { %9032 = vmatmul.mubr.msk.f32.vlgmr.msra.gmra.mrb[60].mxu1 %vm80_vm1, %v5634_v56  ;;  %9043 = vmatmul.mubr.msk.f32.vlgmr.msra.gmra.mrb[64].mxu0 %vm80_vm1, %v5634_v56 }
0x2553   :  { %9639 = vmatpush3.bf16.msra.mxu1 %v10293_v45  ;;  %9645 = vmatpush3.bf16.msra.mxu0 %v10254_v9 }
0x2554   :  { %9640 = vmatprep.subr.bf16.mxu1 %v10157_v0  ;;  %9646 = vmatprep.subr.bf16.mxu0 %v10157_v0 }
0x2555   :  { %9053 = vmatprep.mubr.msk.f32.mxu1 %vm10158_vm0, %v10159_v1  ;;  %9064 = vmatprep.mubr.msk.f32.mxu0 %vm10158_vm0, %v10159_v1 }
0x2557   :  { %9642 = vmatpush3.bf16.msra.mxu1 %v10297_v47  ;;  %9648 = vmatpush3.bf16.msra.mxu0 %v10258_v14 }
0x2558   :  { %9649 = vmatprep.subr.bf16.mxu1 %v10157_v0  ;;  %9655 = vmatprep.subr.bf16.mxu0 %v10157_v0 }
0x255a   :  { %9054 = vmatmul.mubr.msk.f32.vlgmr.msra.gmra.mrb[62].mxu1 %vm80_vm1, %v5811_v50  ;;  %9065 = vmatmul.mubr.msk.f32.vlgmr.msra.gmra.mrb[66].mxu0 %vm80_vm1, %v5811_v50 }
0x255b   :  { %9651 = vmatpush3.bf16.msra.mxu1 %v10341_v35  ;;  %9075 = vmatprep.mubr.msk.f32.mxu1 %vm10158_vm0, %v10159_v1 }
0x255c   :  { %9652 = vmatprep.subr.bf16.mxu1 %v10157_v0  ;;  %9657 = vmatpush3.bf16.msra.mxu0 %v10343_v39 }
0x255d   :  { %9658 = vmatprep.subr.bf16.mxu0 %v10157_v0  ;;  %9086 = vmatprep.mubr.msk.f32.mxu0 %vm10158_vm0, %v10159_v1 }
0x255f   :  { %9654 = vmatpush3.bf16.msra.mxu1 %v10346_v42 }
0x2560   :  { %9661 = vmatprep.subr.bf16.mxu1 %v10157_v0  ;;  %9660 = vmatpush3.bf16.msra.mxu0 %v10351_v43 }
0x2561   :  { %9667 = vmatprep.subr.bf16.mxu0 %v10157_v0 }
0x261d   :  { %v5628_v53 = vpop.f32.mrb[62].mxu0 }
0x261e   :  { %v9022_v18 = vpop.f32.mrb[63].mxu0 }
0x2625   :  { %v5703_v55 = vpop.f32.mrb[60].mxu1  ;;  %v5805_v20 = vpop.f32.mrb[64].mxu0 }
0x2626   :  { %v5704_v57 = vadd.f32 %v5703_v55, %v5628_v53  ;;  %v9033_v62 = vpop.f32.mrb[61].mxu1  ;;  %v9044_v31 = vpop.f32.mrb[65].mxu0 }
0x2628   :  { %v5707_v25 = vadd.f32 %v11061_v49, %v5704_v57 }
0x262a   :  { %v7890_v4 = vmul.f32 -1.442695, %v5707_v25 }
0x262c   :  { %9980 = vpow2.f32 %v7890_v4 }
0x262d   :  { %v5880_v51 = vpop.f32.mrb[62].mxu1  ;;  %v5976_v15 = vpop.f32.mrb[66].mxu0 }
0x262e   :  { %v5881_v10 = vadd.f32 %v5880_v51, %v5805_v20  ;;  %v9055_v60 = vpop.f32.mrb[63].mxu1  ;;  %v5981_v63 = vrot.slane %v5976_v15, 6  ;;  %v9066_v2 = vpop.f32.mrb[67].mxu0 }
0x2630   :  { %v5884_v5 = vadd.f32 %v10994_v3, %v5881_v10  ;;  %v5983_v29 = vadd.f32 %v5981_v63, %v11066_v38 }
0x2632   :  { %v7894_v8 = vmul.f32 -1.442695, %v5884_v5  ;;  %v7897_v11 = vmul.f32 -1.442695, %v5983_v29 }
0x2634   :  { %9982 = vpow2.f32 %v7894_v8 }
0x2635   :  { %9984 = vpow2.f32 %v7897_v11 }
0x2636   :  { %v9981_v12 = vpop.eup %9980 }
0x2637   :  { %v5711_v54 = vadd.f32 1.0, %v9981_v12 }
0x2639   :  { %9986 = vrcp.f32 %v5711_v54 }
0x263e   :  { %v9983_v46 = vpop.eup %9982 }
0x263f   :  { %v9985_v16 = vpop.eup %9984  ;;  %v5888_v17 = vadd.f32 1.0, %v9983_v46 }
0x2640   :  { %v5987_v27 = vadd.f32 1.0, %v9985_v16 }
0x2641   :  { %9988 = vrcp.f32 %v5888_v17 }
0x2642   :  { %9990 = vrcp.f32 %v5987_v27 }
0x2643   :  { %v9987_v58 = vpop.eup %9986 }
0x2644   :  { %v5714_v19 = vmul.f32 2.0, %v9987_v58  ;;  %v5716_v40 = vmul.f32 %v9987_v58, %v11077_v23 }
0x2646   :  { %v7891_v13 = vadd.f32 -1.0, %v5714_v19 }
0x2648   :  { %5718 = vrot.lane.b32.xlu0 %v7891_v13, %s10160_s12 }
0x264b   :  { %v9989_v22 = vpop.eup %9988 }
0x264c   :  { %v9991_v24 = vpop.eup %9990  ;;  %v5891_v26 = vmul.f32 2.0, %v9989_v22  ;;  %v5893_v56 = vmul.f32 %v9989_v22, %v11085_v6 }
0x264d   :  { %v5990_v28 = vmul.f32 2.0, %v9991_v24  ;;  %v5995_v53 = vmul.f32 %v9991_v24, %v5993_v33 }
0x264e   :  { %v7895_v21 = vadd.f32 -1.0, %v5891_v26 }
0x264f   :  { %v7898_v30 = vadd.f32 -1.0, %v5990_v28 }
0x2650   :  { %5895 = vrot.lane.b32.xlu1 %v7895_v21, %s10160_s12 }
0x2651   :  { %5997 = vrot.lane.b32.xlu0 %v7898_v30, %s10160_s12 }
0x26ba   :  { %v5719_v7 = vpop.permute.xlu0 %5718 }
0x26bb   :  { %v5721_v32 = vmul.f32 %v9987_v58, %v5719_v7 }
0x26bd   :  { %5723 = vrot.lane.b32.xlu1 %v5721_v32, %s10161_s13 }
0x26c2   :  { %v5896_v61 = vpop.permute.xlu1 %5895 }
0x26c3   :  { %v5898_v52 = vmul.f32 %v9989_v22, %v5896_v61  ;;  %v5998_v59 = vpop.permute.xlu0 %5997 }
0x26c4   :  { %v6000_v41 = vmul.f32 %v9991_v24, %v5998_v59 }
0x26c5   :  { %5900 = vrot.lane.b32.xlu0 %v5898_v52, %s10161_s13 }
0x26c6   :  { %6002 = vrot.lane.b32.xlu1 %v6000_v41, %s10161_s13 }
0x272f   :  { %v5724_v34 = vpop.permute.xlu1 %5723 }
0x2730   :  { %v11140_v36 = vadd.f32 %v5724_v34, %v5716_v40 }
0x2732   :  { %9992 = vtanh.f32 %v11140_v36 }
0x2737   :  { %v5901_v50 = vpop.permute.xlu0 %5900 }
0x2738   :  { %v11145_v18 = vadd.f32 %v5901_v50, %v5893_v56  ;;  %v6003_v55 = vpop.permute.xlu1 %6002 }
0x2739   :  { %v11147_v20 = vadd.f32 %v6003_v55, %v5995_v53 }
0x273a   :  { %9994 = vtanh.f32 %v11145_v18 }
0x273b   :  { %9996 = vtanh.f32 %v11147_v20 }
0x273c   :  { %v9993_v23 = vpop.eup %9992 }
0x273d   :  { %5729 = vrot.lane.b32.xlu0 %v9993_v23, %s10160_s12 }
0x2744   :  { %v9995_v57 = vpop.eup %9994 }
0x2745   :  { %v9997_v62 = vpop.eup %9996  ;;  %5906 = vrot.lane.b32.xlu1 %v9995_v57, %s10160_s12 }
0x2746   :  { %6008 = vrot.lane.b32.xlu0 %v9997_v62, %s10160_s12 }
0x27af   :  { %v5730_v48 = vpop.permute.xlu0 %5729 }
0x27b0   :  { %v5732_v6 = vmul.f32 %v9987_v58, %v5730_v48 }
0x27b2   :  { %5734 = vrot.lane.b32.xlu1 %v5732_v6, %s10161_s13 }
0x27b7   :  { %v5907_v31 = vpop.permute.xlu1 %5906 }
0x27b8   :  { %v5909_v25 = vmul.f32 %v9989_v22, %v5907_v31  ;;  %v6009_v4 = vpop.permute.xlu0 %6008 }
0x27b9   :  { %v6011_v51 = vmul.f32 %v9991_v24, %v6009_v4 }
0x27ba   :  { %6085 = vrot.lane.b32.xlu0 %v5909_v25, %s10161_s13 }
0x27bb   :  { %v6262_v15 = vrot.slane %v6011_v51, 2 }
0x27bd   :  { %6263 = vrot.lane.b32.xlu1 %v6262_v15, %s10161_s13 }
0x2824   :  { %v5735_v10 = vpop.permute.xlu1 %5734 }
0x2825   :  { %5738 = vst.msk [vmem:[#allocation2 + $0x16] sm:$0x3] %vm765_vm2, %v5735_v10  ;;  %9076 = vmatmul.mubr.msk.f32.vlgmr.msra.gmra.mrb[64].mxu1 %vm80_vm1, %v5735_v10  ;;  %v6446_v10 = vrot.slane %v11147_v20, 6 }
0x2826   :  { %9663 = vmatpush3.bf16.msra.mxu1 %v10284_v37  ;;  %9097 = vmatprep.mubr.msk.f32.mxu1 %vm10158_vm0, %v10159_v1 }
0x2827   :  { %9664 = vmatprep.subr.bf16.mxu1 %v10157_v0 }
0x282a   :  { %9666 = vmatpush3.bf16.msra.mxu1 %v10289_v44 }
0x282b   :  { %9673 = vmatprep.subr.bf16.mxu1 %v10157_v0 }
0x282c   :  { %v6086_v60 = vpop.permute.xlu0 %6085 }
0x282d   :  { %9087 = vmatmul.mubr.msk.f32.vlgmr.msra.gmra.mrb[68].mxu0 %vm80_vm1, %v6086_v60  ;;  %9098 = vmatmul.mubr.msk.f32.vlgmr.msra.gmra.mrb[66].mxu1 %vm80_vm1, %v6086_v60 }
0x282e   :  { %9669 = vmatpush3.bf16.msra.mxu0 %v10293_v45  ;;  %9675 = vmatpush3.bf16.msra.mxu1 %v10254_v9 }
0x282f   :  { %9670 = vmatprep.subr.bf16.mxu0 %v10157_v0  ;;  %9676 = vmatprep.subr.bf16.mxu1 %v10157_v0  ;;  %v6264_v63 = vpop.permute.xlu1 %6263 }
0x2830   :  { %9108 = vmatprep.mubr.msk.f32.mxu0 %vm10158_vm0, %v10159_v1  ;;  %9119 = vmatprep.mubr.msk.f32.mxu1 %vm10158_vm0, %v10159_v1 }
0x2832   :  { %9672 = vmatpush3.bf16.msra.mxu0 %v10297_v47  ;;  %9678 = vmatpush3.bf16.msra.mxu1 %v10258_v14 }
0x2833   :  { %9679 = vmatprep.subr.bf16.mxu0 %v10157_v0  ;;  %9685 = vmatprep.subr.bf16.mxu1 %v10157_v0 }
0x2835   :  { %9109 = vmatmul.mubr.msk.f32.vlgmr.msra.gmra.mrb[70].mxu0 %vm80_vm1, %v6264_v63  ;;  %9120 = vmatmul.mubr.msk.f32.vlgmr.msra.gmra.mrb[68].mxu1 %vm80_vm1, %v6264_v63 }
0x2836   :  { %9681 = vmatpush3.bf16.msra.mxu0 %v10341_v35  ;;  %9130 = vmatprep.mubr.msk.f32.mxu0 %vm10158_vm0, %v10159_v1 }
0x2837   :  { %9682 = vmatprep.subr.bf16.mxu0 %v10157_v0  ;;  %9687 = vmatpush3.bf16.msra.mxu1 %v10343_v39 }
0x2838   :  { %9688 = vmatprep.subr.bf16.mxu1 %v10157_v0  ;;  %9141 = vmatprep.mubr.msk.f32.mxu1 %vm10158_vm0, %v10159_v1 }
0x283a   :  { %9684 = vmatpush3.bf16.msra.mxu0 %v10346_v42 }
0x283b   :  { %9691 = vmatprep.subr.bf16.mxu0 %v10157_v0  ;;  %9690 = vmatpush3.bf16.msra.mxu1 %v10351_v43 }
0x283c   :  { %9697 = vmatprep.subr.bf16.mxu1 %v10157_v0 }
0x28f8   :  { %v6080_v2 = vpop.f32.mrb[64].mxu1 }
0x28f9   :  { %v9077_v5 = vpop.f32.mrb[65].mxu1 }
0x2900   :  { %v6155_v29 = vpop.f32.mrb[68].mxu0  ;;  %v6257_v8 = vpop.f32.mrb[66].mxu1 }
0x2901   :  { %v6156_v11 = vadd.f32 %v6155_v29, %v6080_v2  ;;  %v9088_v12 = vpop.f32.mrb[69].mxu0  ;;  %v9099_v54 = vpop.f32.mrb[67].mxu1 }
0x2903   :  { %v6159_v46 = vadd.f32 %v11061_v49, %v6156_v11 }
0x2905   :  { %v7901_v16 = vmul.f32 -1.442695, %v6159_v46 }
0x2907   :  { %9998 = vpow2.f32 %v7901_v16 }
0x2908   :  { %v6333_v17 = vpop.f32.mrb[70].mxu0  ;;  %v6429_v27 = vpop.f32.mrb[68].mxu1 }
0x2909   :  { %v6334_v58 = vadd.f32 %v6333_v17, %v6257_v8  ;;  %v9110_v19 = vpop.f32.mrb[71].mxu0  ;;  %v6434_v13 = vrot.slane %v6429_v27, 4  ;;  %v9121_v22 = vpop.f32.mrb[69].mxu1 }
0x290b   :  { %v6337_v24 = vadd.f32 %v10994_v3, %v6334_v58  ;;  %v6436_v26 = vadd.f32 %v6434_v13, %v11066_v38 }
0x290d   :  { %v7905_v28 = vmul.f32 -1.442695, %v6337_v24  ;;  %v7908_v21 = vmul.f32 -1.442695, %v6436_v26 }
0x290f   :  { %10000 = vpow2.f32 %v7905_v28 }
0x2910   :  { %10002 = vpow2.f32 %v7908_v21 }
0x2911   :  { %v9999_v30 = vpop.eup %9998 }
0x2912   :  { %v6163_v7 = vadd.f32 1.0, %v9999_v30 }
0x2914   :  { %10004 = vrcp.f32 %v6163_v7 }
0x2919   :  { %v10001_v32 = vpop.eup %10000 }
0x291a   :  { %v10003_v61 = vpop.eup %10002  ;;  %v6341_v52 = vadd.f32 1.0, %v10001_v32 }
0x291b   :  { %v6440_v59 = vadd.f32 1.0, %v10003_v61 }
0x291c   :  { %10006 = vrcp.f32 %v6341_v52 }
0x291d   :  { %10008 = vrcp.f32 %v6440_v59 }
0x291e   :  { %v10005_v41 = vpop.eup %10004 }
0x291f   :  { %v6166_v40 = vmul.f32 2.0, %v10005_v41  ;;  %v6168_v4 = vmul.f32 %v10005_v41, %v11140_v36 }
0x2921   :  { %v7902_v34 = vadd.f32 -1.0, %v6166_v40 }
0x2923   :  { %6170 = vrot.lane.b32.xlu0 %v7902_v34, %s10160_s12 }
0x2926   :  { %v10007_v33 = vpop.eup %10006 }
0x2927   :  { %v10009_v56 = vpop.eup %10008  ;;  %v6344_v50 = vmul.f32 2.0, %v10007_v33  ;;  %v6346_v60 = vmul.f32 %v10007_v33, %v11145_v18 }
0x2928   :  { %v6443_v53 = vmul.f32 2.0, %v10009_v56  ;;  %v6448_v2 = vmul.f32 %v10009_v56, %v6446_v10 }
0x2929   :  { %v7906_v55 = vadd.f32 -1.0, %v6344_v50 }
0x292a   :  { %v7909_v23 = vadd.f32 -1.0, %v6443_v53 }
0x292b   :  { %6348 = vrot.lane.b32.xlu1 %v7906_v55, %s10160_s12 }
0x292c   :  { %6450 = vrot.lane.b32.xlu0 %v7909_v23, %s10160_s12 }
0x2995   :  { %v6171_v57 = vpop.permute.xlu0 %6170 }
0x2996   :  { %v6173_v62 = vmul.f32 %v10005_v41, %v6171_v57 }
0x2998   :  { %6175 = vrot.lane.b32.xlu1 %v6173_v62, %s10161_s13 }
0x299d   :  { %v6349_v48 = vpop.permute.xlu1 %6348 }
0x299e   :  { %v6351_v6 = vmul.f32 %v10007_v33, %v6349_v48  ;;  %v6451_v31 = vpop.permute.xlu0 %6450 }
0x299f   :  { %v6453_v25 = vmul.f32 %v10009_v56, %v6451_v31 }
0x29a0   :  { %6353 = vrot.lane.b32.xlu0 %v6351_v6, %s10161_s13 }
0x29a1   :  { %6455 = vrot.lane.b32.xlu1 %v6453_v25, %s10161_s13 }
0x2a0a   :  { %v6176_v51 = vpop.permute.xlu1 %6175 }
0x2a0b   :  { %v11203_v15 = vadd.f32 %v6176_v51, %v6168_v4 }
0x2a0d   :  { %10010 = vtanh.f32 %v11203_v15 }
0x2a12   :  { %v6354_v63 = vpop.permute.xlu0 %6353 }
0x2a13   :  { %v11208_v5 = vadd.f32 %v6354_v63, %v6346_v60  ;;  %v6456_v29 = vpop.permute.xlu1 %6455 }
0x2a14   :  { %v11210_v8 = vadd.f32 %v6456_v29, %v6448_v2 }
0x2a15   :  { %10012 = vtanh.f32 %v11208_v5 }
0x2a16   :  { %10014 = vtanh.f32 %v11210_v8 }
0x2a17   :  { %v10011_v36 = vpop.eup %10010 }
0x2a18   :  { %6181 = vrot.lane.b32.xlu0 %v10011_v36, %s10160_s12 }
0x2a1f   :  { %v10013_v11 = vpop.eup %10012 }
0x2a20   :  { %v10015_v12 = vpop.eup %10014  ;;  %6359 = vrot.lane.b32.xlu1 %v10013_v11, %s10160_s12 }
0x2a21   :  { %6461 = vrot.lane.b32.xlu0 %v10015_v12, %s10160_s12 }
0x2a8a   :  { %v6182_v18 = vpop.permute.xlu0 %6181 }
0x2a8b   :  { %v6184_v20 = vmul.f32 %v10005_v41, %v6182_v18 }
0x2a8d   :  { %6186 = vrot.lane.b32.xlu1 %v6184_v20, %s10161_s13 }
0x2a92   :  { %v6360_v54 = vpop.permute.xlu1 %6359 }
0x2a93   :  { %v6362_v46 = vmul.f32 %v10007_v33, %v6360_v54  ;;  %v6462_v16 = vpop.permute.xlu0 %6461 }
0x2a94   :  { %v6464_v17 = vmul.f32 %v10009_v56, %v6462_v16 }
0x2a95   :  { %6538 = vrot.lane.b32.xlu0 %v6362_v46, %s10161_s13  ;;  %v6899_v46 = vrot.slane %v11210_v8, 6 }
0x2a96   :  { %v6715_v27 = vrot.slane %v6464_v17, 4 }
0x2a98   :  { %6716 = vrot.lane.b32.xlu1 %v6715_v27, %s10161_s13 }
0x2aff   :  { %v6187_v58 = vpop.permute.xlu1 %6186 }
0x2b00   :  { %6190 = vst.msk [vmem:[#allocation2 + $0x18] sm:$0x3] %vm765_vm2, %v6187_v58  ;;  %9131 = vmatmul.mubr.msk.f32.vlgmr.msra.gmra.mrb[72].mxu0 %vm80_vm1, %v6187_v58 }
0x2b01   :  { %9693 = vmatpush3.bf16.msra.mxu0 %v10284_v37  ;;  %9152 = vmatprep.mubr.msk.f32.mxu0 %vm10158_vm0, %v10159_v1 }
0x2b02   :  { %9694 = vmatprep.subr.bf16.mxu0 %v10157_v0 }
0x2b05   :  { %9696 = vmatpush3.bf16.msra.mxu0 %v10289_v44 }
0x2b06   :  { %9703 = vmatprep.subr.bf16.mxu0 %v10157_v0 }
0x2b07   :  { %v6539_v19 = vpop.permute.xlu0 %6538 }
0x2b08   :  { %9142 = vmatmul.mubr.msk.f32.vlgmr.msra.gmra.mrb[70].mxu1 %vm80_vm1, %v6539_v19  ;;  %9153 = vmatmul.mubr.msk.f32.vlgmr.msra.gmra.mrb[74].mxu0 %vm80_vm1, %v6539_v19 }
0x2b09   :  { %9699 = vmatpush3.bf16.msra.mxu1 %v10293_v45  ;;  %9705 = vmatpush3.bf16.msra.mxu0 %v10254_v9 }
0x2b0a   :  { %9700 = vmatprep.subr.bf16.mxu1 %v10157_v0  ;;  %9706 = vmatprep.subr.bf16.mxu0 %v10157_v0  ;;  %v6717_v13 = vpop.permute.xlu1 %6716 }
0x2b0b   :  { %9163 = vmatprep.mubr.msk.f32.mxu1 %vm10158_vm0, %v10159_v1  ;;  %9174 = vmatprep.mubr.msk.f32.mxu0 %vm10158_vm0, %v10159_v1 }
0x2b0d   :  { %9702 = vmatpush3.bf16.msra.mxu1 %v10297_v47  ;;  %9708 = vmatpush3.bf16.msra.mxu0 %v10258_v14 }
0x2b0e   :  { %9709 = vmatprep.subr.bf16.mxu1 %v10157_v0  ;;  %9715 = vmatprep.subr.bf16.mxu0 %v10157_v0 }
0x2b10   :  { %9164 = vmatmul.mubr.msk.f32.vlgmr.msra.gmra.mrb[72].mxu1 %vm80_vm1, %v6717_v13  ;;  %9175 = vmatmul.mubr.msk.f32.vlgmr.msra.gmra.mrb[76].mxu0 %vm80_vm1, %v6717_v13 }
0x2b11   :  { %9711 = vmatpush3.bf16.msra.mxu1 %v10341_v35  ;;  %9185 = vmatprep.mubr.msk.f32.mxu1 %vm10158_vm0, %v10159_v1 }
0x2b12   :  { %9712 = vmatprep.subr.bf16.mxu1 %v10157_v0  ;;  %9717 = vmatpush3.bf16.msra.mxu0 %v10343_v39 }
0x2b13   :  { %9718 = vmatprep.subr.bf16.mxu0 %v10157_v0  ;;  %9196 = vmatprep.mubr.msk.f32.mxu0 %vm10158_vm0, %v10159_v1 }
0x2b15   :  { %9714 = vmatpush3.bf16.msra.mxu1 %v10346_v42 }
0x2b16   :  { %9721 = vmatprep.subr.bf16.mxu1 %v10157_v0  ;;  %9720 = vmatpush3.bf16.msra.mxu0 %v10351_v43 }
0x2b17   :  { %9727 = vmatprep.subr.bf16.mxu0 %v10157_v0 }
0x2bd3   :  { %v6533_v9 = vpop.f32.mrb[72].mxu0 }
0x2bd4   :  { %v9132_v14 = vpop.f32.mrb[73].mxu0 }
0x2bdb   :  { %v6608_v22 = vpop.f32.mrb[70].mxu1  ;;  %v6710_v24 = vpop.f32.mrb[74].mxu0 }
0x2bdc   :  { %v6609_v26 = vadd.f32 %v6608_v22, %v6533_v9  ;;  %v9143_v28 = vpop.f32.mrb[71].mxu1  ;;  %v9154_v21 = vpop.f32.mrb[75].mxu0 }
0x2bde   :  { %v6612_v30 = vadd.f32 %v11061_v49, %v6609_v26 }
0x2be0   :  { %v7912_v7 = vmul.f32 -1.442695, %v6612_v30 }
0x2be2   :  { %10016 = vpow2.f32 %v7912_v7 }
0x2be3   :  { %v6786_v32 = vpop.f32.mrb[72].mxu1  ;;  %v6882_v61 = vpop.f32.mrb[76].mxu0 }
0x2be4   :  { %v6787_v52 = vadd.f32 %v6786_v32, %v6710_v24  ;;  %v9165_v59 = vpop.f32.mrb[73].mxu1  ;;  %v6887_v41 = vrot.slane %v6882_v61, 2  ;;  %v9176_v40 = vpop.f32.mrb[77].mxu0 }
0x2be6   :  { %v6790_v34 = vadd.f32 %v10994_v3, %v6787_v52  ;;  %v6889_v33 = vadd.f32 %v6887_v41, %v11066_v38 }
0x2be8   :  { %v7916_v56 = vmul.f32 -1.442695, %v6790_v34  ;;  %v7919_v50 = vmul.f32 -1.442695, %v6889_v33  ;;  %v10057_v34 = vld [vmem:[%s11398_s3 + $0x1] ss:$0 sm:$0xff] }
0x2bea   :  { %10018 = vpow2.f32 %v7916_v56 }
0x2beb   :  { %10020 = vpow2.f32 %v7919_v50 }
0x2bec   :  { %v10017_v53 = vpop.eup %10016 }
0x2bed   :  { %v6616_v55 = vadd.f32 1.0, %v10017_v53 }
0x2bef   :  { %10022 = vrcp.f32 %v6616_v55 }
0x2bf4   :  { %v10019_v23 = vpop.eup %10018 }
0x2bf5   :  { %v10021_v57 = vpop.eup %10020  ;;  %v6794_v62 = vadd.f32 1.0, %v10019_v23 }
0x2bf6   :  { %v6893_v48 = vadd.f32 1.0, %v10021_v57 }
0x2bf7   :  { %10024 = vrcp.f32 %v6794_v62 }
0x2bf8   :  { %10026 = vrcp.f32 %v6893_v48 }
0x2bf9   :  { %v10023_v6 = vpop.eup %10022 }
0x2bfa   :  { %v6619_v31 = vmul.f32 2.0, %v10023_v6  ;;  %v6621_v18 = vmul.f32 %v10023_v6, %v11203_v15 }
0x2bfc   :  { %v7913_v25 = vadd.f32 -1.0, %v6619_v31 }
0x2bfe   :  { %6623 = vrot.lane.b32.xlu0 %v7913_v25, %s10160_s12 }
0x2c01   :  { %v10025_v3 = vpop.eup %10024 }
0x2c02   :  { %v10027_v38 = vpop.eup %10026  ;;  %v6797_v4 = vmul.f32 2.0, %v10025_v3  ;;  %v6799_v16 = vmul.f32 %v10025_v3, %v11208_v5 }
0x2c03   :  { %v6896_v51 = vmul.f32 2.0, %v10027_v38  ;;  %v6901_v27 = vmul.f32 %v10027_v38, %v6899_v46 }
0x2c04   :  { %v7917_v10 = vadd.f32 -1.0, %v6797_v4 }
0x2c05   :  { %v7920_v60 = vadd.f32 -1.0, %v6896_v51 }
0x2c06   :  { %6801 = vrot.lane.b32.xlu1 %v7917_v10, %s10160_s12 }
0x2c07   :  { %6903 = vrot.lane.b32.xlu0 %v7920_v60, %s10160_s12 }
0x2c70   :  { %v6624_v63 = vpop.permute.xlu0 %6623 }
0x2c71   :  { %v6626_v2 = vmul.f32 %v10023_v6, %v6624_v63 }
0x2c73   :  { %6628 = vrot.lane.b32.xlu1 %v6626_v2, %s10161_s13 }
0x2c78   :  { %v6802_v29 = vpop.permute.xlu1 %6801 }
0x2c79   :  { %v6804_v36 = vmul.f32 %v10025_v3, %v6802_v29  ;;  %v6904_v11 = vpop.permute.xlu0 %6903 }
0x2c7a   :  { %v6906_v12 = vmul.f32 %v10027_v38, %v6904_v11 }
0x2c7b   :  { %6806 = vrot.lane.b32.xlu0 %v6804_v36, %s10161_s13 }
0x2c7c   :  { %6908 = vrot.lane.b32.xlu1 %v6906_v12, %s10161_s13 }
0x2ce5   :  { %v6629_v20 = vpop.permute.xlu1 %6628 }
0x2ce6   :  { %v11266_v54 = vadd.f32 %v6629_v20, %v6621_v18 }
0x2ce8   :  { %10028 = vtanh.f32 %v11266_v54 }
0x2ced   :  { %v6807_v17 = vpop.permute.xlu0 %6806 }
0x2cee   :  { %v11271_v58 = vadd.f32 %v6807_v17, %v6799_v16  ;;  %v6909_v19 = vpop.permute.xlu1 %6908 }
0x2cef   :  { %v6911_v13 = vadd.f32 %v6909_v19, %v6901_v27 }
0x2cf0   :  { %10030 = vtanh.f32 %v11271_v58 }
0x2cf1   :  { %10032 = vtanh.f32 %v6911_v13 }
0x2cf2   :  { %v10029_v9 = vpop.eup %10028 }
0x2cf3   :  { %6634 = vrot.lane.b32.xlu0 %v10029_v9, %s10160_s12 }
0x2cfa   :  { %v10031_v15 = vpop.eup %10030 }
0x2cfb   :  { %v10033_v14 = vpop.eup %10032  ;;  %6812 = vrot.lane.b32.xlu1 %v10031_v15, %s10160_s12 }
0x2cfc   :  { %6914 = vrot.lane.b32.xlu0 %v10033_v14, %s10160_s12 }
0x2d65   :  { %v6635_v8 = vpop.permute.xlu0 %6634 }
0x2d66   :  { %v6637_v5 = vmul.f32 %v10023_v6, %v6635_v8 }
0x2d68   :  { %6639 = vrot.lane.b32.xlu1 %v6637_v5, %s10161_s13 }
0x2d6d   :  { %v6813_v22 = vpop.permute.xlu1 %6812 }
0x2d6e   :  { %v6815_v24 = vmul.f32 %v10025_v3, %v6813_v22  ;;  %v6915_v26 = vpop.permute.xlu0 %6914 }
0x2d6f   :  { %v6917_v28 = vmul.f32 %v10027_v38, %v6915_v26 }
0x2d70   :  { %6991 = vrot.lane.b32.xlu0 %v6815_v24, %s10161_s13 }
0x2d71   :  { %v7168_v21 = vrot.slane %v6917_v28, 6 }
0x2d73   :  { %7169 = vrot.lane.b32.xlu1 %v7168_v21, %s10161_s13 }
0x2dda   :  { %v6640_v30 = vpop.permute.xlu1 %6639 }
0x2ddb   :  { %6643 = vst.msk [vmem:[#allocation2 + $0x1a] sm:$0x3] %vm765_vm2, %v6640_v30  ;;  %9186 = vmatmul.mubr.msk.f32.vlgmr.msra.gmra.mrb[74].mxu1 %vm80_vm1, %v6640_v30 }
0x2ddc   :  { %9723 = vmatpush3.bf16.msra.mxu1 %v10284_v37  ;;  %9207 = vmatprep.mubr.msk.f32.mxu1 %vm10158_vm0, %v10159_v1 }
0x2ddd   :  { %9724 = vmatprep.subr.bf16.mxu1 %v10157_v0 }
0x2de0   :  { %9726 = vmatpush3.bf16.msra.mxu1 %v10289_v44 }
0x2de1   :  { %9733 = vmatprep.subr.bf16.mxu1 %v10157_v0 }
0x2de2   :  { %v6992_v7 = vpop.permute.xlu0 %6991 }
0x2de3   :  { %9197 = vmatmul.mubr.msk.f32.vlgmr.msra.gmra.mrb[78].mxu0 %vm80_vm1, %v6992_v7  ;;  %9208 = vmatmul.mubr.msk.f32.vlgmr.msra.gmra.mrb[76].mxu1 %vm80_vm1, %v6992_v7 }
0x2de4   :  { %9729 = vmatpush3.bf16.msra.mxu0 %v10293_v45  ;;  %9218 = vmatprep.mubr.msk.f32.mxu0 %vm10158_vm0, %v10159_v1 }
0x2de5   :  { %9730 = vmatprep.subr.bf16.mxu0 %v10157_v0  ;;  %9735 = vmatpush3.bf16.msra.mxu1 %v10341_v35  ;;  %v7170_v37 = vpop.permute.xlu1 %7169 }
0x2de6   :  { %9736 = vmatprep.subr.bf16.mxu1 %v10157_v0  ;;  %9229 = vmatprep.mubr.msk.f32.mxu1 %vm10158_vm0, %v10159_v1 }
0x2de8   :  { %9732 = vmatpush3.bf16.msra.mxu0 %v10297_v47 }
0x2de9   :  { %9738 = vmatpush3.bf16.msra.mxu1 %v10346_v42  ;;  %9739 = vmatprep.subr.bf16.mxu0 %v10157_v0 }
0x2dea   :  { %9745 = vmatprep.subr.bf16.mxu1 %v10157_v0 }
0x2deb   :  { %9219 = vmatmul.mubr.msk.f32.vlgmr.msra.gmra.mrb[80].mxu0 %vm80_vm1, %v7170_v37 }
0x2dec   :  { %9741 = vmatpush3.bf16.msra.mxu0 %v10343_v39  ;;  %9240 = vmatprep.mubr.msk.f32.mxu0 %vm10158_vm0, %v10159_v1 }
0x2ded   :  { %9742 = vmatprep.subr.bf16.mxu0 %v10157_v0 }
0x2df0   :  { %9744 = vmatpush3.bf16.msra.mxu0 %v10351_v43 }
0x2eae   :  { %v6986_v44 = vpop.f32.mrb[74].mxu1 }
0x2eaf   :  { %v9187_v45 = vpop.f32.mrb[75].mxu1 }
0x2eb0   :  { %v7449_v45 = vld [vmem:[%s11400_s5] sm:$0xff] }
0x2eb6   :  { %v7061_v47 = vpop.f32.mrb[78].mxu0  ;;  %v7163_v35 = vpop.f32.mrb[76].mxu1 }
0x2eb7   :  { %v7062_v42 = vadd.f32 %v7061_v47, %v6986_v44  ;;  %v9198_v32 = vpop.f32.mrb[79].mxu0  ;;  %v9209_v61 = vpop.f32.mrb[77].mxu1  ;;  %v10162_v47 = vmov 0  }
0x2eb8   :  { %9763 = vset.pattern.permute.xlu0 %v10162_v47  ;;  %v7452_v32 = vld [vmem:[#allocation2 + $0x4] sm:$0x1]  ;;  %v7453_v61 = vld [vmem:[#allocation2 + $0x6] sm:$0x1] }
0x2eb9   :  { %v7065_v52 = vadd.f32 %v11061_v49, %v7062_v42  ;;  %v7600_v42 = vld [vmem:[#allocation2 + $0x3] sm:$0x1] }
0x2ebb   :  { %v7923_v59 = vmul.f32 -1.442695, %v7065_v52  ;;  %v7601_v52 = vld [vmem:[#allocation2 + $0x5] sm:$0x1] }
0x2ebd   :  { %10034 = vpow2.f32 %v7923_v59  ;;  %v7602_v59 = vld [vmem:[#allocation2 + $0x7] sm:$0x1] }
0x2ebe   :  { %v7239_v41 = vpop.f32.mrb[80].mxu0 }
0x2ebf   :  { %v7240_v39 = vadd.f32 %v7239_v41, %v7163_v35  ;;  %v9220_v40 = vpop.f32.mrb[81].mxu0  ;;  %v7451_v35 = vld [vmem:[#allocation2 + $0x2] sm:$0x1]  ;;  %v7454_v41 = vld [vmem:[#allocation2 + $0x8] sm:$0x1] }
0x2ec0   :  { %v7631_v40 = vrot.slane %v7600_v42, 7  ;;  %v7606_v42 = vld [vmem:[#allocation2 + $0xf] sm:$0x1] }
0x2ec1   :  { %v7243_v33 = vadd.f32 %v10057_v34, %v7240_v39  ;;  %v7487_v39 = vrot.slane %v7451_v35, 7  ;;  %v7450_v34 = vld [vmem:[#allocation2] sm:$0x1]  ;;  %v7605_v35 = vld [vmem:[#allocation2 + $0xd] sm:$0x1] }
0x2ec3   :  { %v7927_v43 = vmul.f32 -1.442695, %v7243_v33  ;;  %v7455_v33 = vld [vmem:[#allocation2 + $0xa] sm:$0x1] }
0x2ec5   :  { %10036 = vpow2.f32 %v7927_v43  ;;  %v7490_v43 = vrot.slane %v7452_v32, 6 }
0x2ec7   :  { %v10035_v56 = vpop.eup %10034 }
0x2ec8   :  { %v7069_v50 = vadd.f32 1.0, %v10035_v56  ;;  %v11335_v56 = vld [vmem:[#allocation2 + $0x9] sm:$0x1] }
0x2eca   :  { %10038 = vrcp.f32 %v7069_v50  ;;  %v7459_v50 = vld [vmem:[#allocation2 + $0x12] sm:$0x1] }
0x2ecf   :  { %v10037_v53 = vpop.eup %10036 }
0x2ed0   :  { %v7247_v55 = vadd.f32 1.0, %v10037_v53  ;;  %v7493_v53 = vrot.slane %v7453_v61, 5 }
0x2ed2   :  { %10040 = vrcp.f32 %v7247_v55  ;;  %v7633_v55 = vrot.slane %v7601_v52, 6 }
0x2ed4   :  { %v10039_v23 = vpop.eup %10038 }
0x2ed5   :  { %v7072_v57 = vmul.f32 2.0, %v10039_v23  ;;  %v7074_v51 = vmul.f32 %v10039_v23, %v11266_v54 }
0x2ed7   :  { %v7924_v62 = vadd.f32 -1.0, %v7072_v57  ;;  %v7460_v57 = vld [vmem:[#allocation2 + $0x14] sm:$0x1] }
0x2ed9   :  { %7076 = vrot.lane.b32.xlu0 %v7924_v62, %s10160_s12  ;;  %v7496_v62 = vrot.slane %v7454_v41, 4 }
0x2edc   :  { %v10041_v48 = vpop.eup %10040 }
0x2edd   :  { %v7250_v6 = vmul.f32 2.0, %v10041_v48  ;;  %v7252_v63 = vmul.f32 %v10041_v48, %v11271_v58 }
0x2edf   :  { %v7928_v31 = vadd.f32 -1.0, %v7250_v6  ;;  %v11337_v6 = vld [vmem:[#allocation2 + $0xb] sm:$0x1] }
0x2ee1   :  { %7254 = vrot.lane.b32.xlu1 %v7928_v31, %s10160_s12 }
0x2f4b   :  { %v7077_v25 = vpop.permute.xlu0 %7076 }
0x2f4c   :  { %v7079_v3 = vmul.f32 %v10039_v23, %v7077_v25  ;;  %v7461_v25 = vld [vmem:[#allocation2 + $0x16] sm:$0x1] }
0x2f4e   :  { %7081 = vrot.lane.b32.xlu0 %v7079_v3, %s10161_s13  ;;  %v7489_v3 = vsel %vm7488_vm3, %v7487_v39, %v7450_v34 }
0x2f53   :  { %v7255_v38 = vpop.permute.xlu1 %7254 }
0x2f54   :  { %v7257_v4 = vmul.f32 %v10041_v48, %v7255_v38  ;;  %v7499_v38 = vrot.slane %v7455_v33, 3 }
0x2f56   :  { %7259 = vrot.lane.b32.xlu1 %v7257_v4, %s10161_s13  ;;  %v7608_v4 = vld [vmem:[#allocation2 + $0x13] sm:$0x1] }
0x2fc0   :  { %v7082_v10 = vpop.permute.xlu0 %7081 }
0x2fc1   :  { %v7084_v60 = vadd.f32 %v7082_v10, %v7074_v51  ;;  %v7637_v51 = vrot.slane %v11335_v56, 4  ;;  %v7456_v10 = vld [vmem:[#allocation2 + $0xc] sm:$0x1] }
0x2fc3   :  { %10042 = vtanh.f32 %v7084_v60 }
0x2fc8   :  { %v7260_v2 = vpop.permute.xlu1 %7259 }
0x2fc9   :  { %v7262_v29 = vadd.f32 %v7260_v2, %v7252_v63  ;;  %v7492_v63 = vsel %vm7491_vm4, %v7490_v43, %v7489_v3  ;;  %v7508_v2 = vrot.slane %v7459_v50, 7 }
0x2fcb   :  { %10044 = vtanh.f32 %v7262_v29  ;;  %v7609_v29 = vld [vmem:[#allocation2 + $0x15] sm:$0x1] }
0x2fcd   :  { %v10043_v36 = vpop.eup %10042 }
0x2fce   :  { %7087 = vrot.lane.b32.xlu0 %v10043_v36, %s10160_s12  ;;  %v7457_v36 = vld [vmem:[#allocation2 + $0xe] sm:$0x1] }
0x2fd5   :  { %v10045_v11 = vpop.eup %10044 }
0x2fd6   :  { %7265 = vrot.lane.b32.xlu1 %v10045_v11, %s10160_s12  ;;  %v7463_v11 = vld [vmem:[#allocation2 + $0x1a] sm:$0x1] }
0x3040   :  { %v7088_v12 = vpop.permute.xlu0 %7087 }
0x3041   :  { %v7090_v18 = vmul.f32 %v10039_v23, %v7088_v12  ;;  %v7635_v23 = vrot.slane %v7602_v59, 5  ;;  %v7495_v12 = vsel %vm7494_vm5, %v7493_v53, %v7492_v63 }
0x3043   :  { %7092 = vrot.lane.b32.xlu0 %v7090_v18, %s10161_s13  ;;  %v7510_v18 = vrot.slane %v7460_v57, 6 }
0x3048   :  { %v7266_v20 = vpop.permute.xlu1 %7265 }
0x3049   :  { %v7268_v54 = vmul.f32 %v10041_v48, %v7266_v20  ;;  %v7599_v48 = vld [vmem:[#allocation2 + $0x1] sm:$0x1]  ;;  %v7610_v20 = vld [vmem:[#allocation2 + $0x17] sm:$0x1] }
0x304b   :  { %7342 = vrot.lane.b32.xlu1 %v7268_v54, %s10161_s13  ;;  %v7632_v54 = vsel %vm7488_vm3, %v7631_v40, %v7599_v48 }
0x30b5   :  { %v7093_v46 = vpop.permute.xlu0 %7092 }
0x30b6   :  { %7096 = vst.msk [vmem:[#allocation2 + $0x1c] sm:$0x3] %vm765_vm2, %v7093_v46  ;;  %9230 = vmatmul.mubr.msk.f32.vlgmr.msra.gmra.mrb[78].mxu1 %vm80_vm1, %v7093_v46  ;;  %v7639_v46 = vrot.slane %v11337_v6, 3  ;;  %v7643_v6 = vrot.slane %v7606_v42, 1 }
0x30b7   :  { %9247 = vmatprep.mubr.msk.f32.mxu1 %vm10158_vm0, %v10159_v1 }
0x30bd   :  { %v7343_v16 = vpop.permute.xlu1 %7342 }
0x30be   :  { %9241 = vmatmul.mubr.msk.f32.vlgmr.msra.gmra.mrb[82].mxu0 %vm80_vm1, %v7343_v16  ;;  %v7464_v16 = vld [vmem:[#allocation2 + $0x1c] sm:$0x1] }
0x3189   :  { %v7337_v17 = vpop.f32.mrb[78].mxu1 }
0x318a   :  { %v9231_v27 = vpop.f32.mrb[79].mxu1 }
0x318b   :  { %v7512_v27 = vrot.slane %v7461_v25, 5 }
0x3191   :  { %v7412_v58 = vpop.f32.mrb[82].mxu0 }
0x3192   :  { %v7413_v19 = vadd.f32 %v7412_v58, %v7337_v17  ;;  %v9242_v13 = vpop.f32.mrb[83].mxu0  ;;  %v7498_v17 = vsel %vm7497_vm6, %v7496_v62, %v7495_v12  ;;  %v7611_v58 = vld [vmem:[#allocation2 + $0x19] sm:$0x1] }
0x3193   :  { %v7645_v13 = vrot.slane %v7608_v4, 7 }
0x3194   :  { %v7416_v9 = vadd.f32 %v11061_v49, %v7413_v19  ;;  %v7634_v19 = vsel %vm7491_vm4, %v7633_v55, %v7632_v54 }
0x3196   :  { %v7931_v15 = vmul.f32 -1.442695, %v7416_v9  ;;  %v7458_v9 = vld [vmem:[#allocation2 + $0x10] sm:$0x1] }
0x3198   :  { %10046 = vpow2.f32 %v7931_v15  ;;  %v7501_v15 = vsel %vm7500_vm7, %v7499_v38, %v7498_v17 }
0x31a2   :  { %v10047_v14 = vpop.eup %10046 }
0x31a3   :  { %v7420_v8 = vadd.f32 1.0, %v10047_v14 }
0x31a5   :  { %10048 = vrcp.f32 %v7420_v8  ;;  %v7612_v8 = vld [vmem:[#allocation2 + $0x1b] sm:$0x1] }
0x31a6   :  { %v7653_v61 = vrot.slane %v7612_v8, 3 }
0x31af   :  { %v10049_v5 = vpop.eup %10048 }
0x31b0   :  { %v7423_v22 = vmul.f32 2.0, %v10049_v5  ;;  %v7425_v21 = vmul.f32 %v10049_v5, %v7084_v60  ;;  %v7462_v60 = vld [vmem:[#allocation2 + $0x18] sm:$0x1] }
0x31b1   :  { %v7514_v14 = vrot.slane %v7462_v60, 4  ;;  %v7448_v60 = vld [vmem:[%s11399_s4] sm:$0xff]  ;;  %s7738_s4 = sshll.u32 %s10163_s8, 4  ;;  %s7739_s4 = int_to_ptr.vmem [resolvable:$true] %s7738_s4 }
0x31b2   :  { %v7932_v24 = vadd.f32 -1.0, %v7423_v22  ;;  %v7647_v22 = vrot.slane %v7609_v29, 6  ;;  %s10124_s0 = scalar_lea.vmem %s7739_s4, 256  ;;  %p10129_p11 = scmp.lt.s32.totalorder %s7739_s4, %s7739_s4 }
0x31b3   :  { %p10125_p10 = scmp.ne.s32.totalorder %s7739_s4, %s10124_s0  ;;  %p10130_p12 = scmp.lt.s32.totalorder %s10124_s0, %s10124_s0 }
0x31b4   :  { %7427 = vrot.lane.b32.xlu0 %v7932_v24, %s10160_s12  ;;  %v7509_v24 = vsel %vm7488_vm3, %v7508_v2, %v7458_v9 }
0x31b5   :  { %p10131_p13 = por %p10130_p12, %p10129_p11 }
0x31b7   :  { %p10132_p0 = pnand %p10131_p13, %p10125_p10 }
0x3226   :  { %v7428_v26 = vpop.permute.xlu0 %7427 }
0x3227   :  { %v7430_v28 = vmul.f32 %v10049_v5, %v7428_v26  ;;  %v7516_v26 = vrot.slane %v7463_v11, 3 }
0x3229   :  { %7432 = vrot.lane.b32.xlu1 %v7430_v28, %s10161_s13  ;;  %v7613_v28 = vld [vmem:[#allocation2 + $0x1d] sm:$0x1] }
0x322a   :  { %v7655_v40 = vrot.slane %v7613_v28, 2 }
0x329b   :  { %v7433_v30 = vpop.permute.xlu1 %7432 }
0x329c   :  { %v7435_v7 = vadd.f32 %v7433_v30, %v7425_v21  ;;  %v7649_v21 = vrot.slane %v7610_v20, 5  ;;  %v7502_v30 = vrot.slane %v7456_v10, 2 }
0x329e   :  { %10050 = vtanh.f32 %v7435_v7  ;;  %v7511_v7 = vsel %vm7491_vm4, %v7510_v18, %v7509_v24  ;;  %v7504_v53 = vsel %vm7503_vm8, %v7502_v30, %v7501_v15 }
0x329f   :  { %v7513_v47 = vsel %vm7494_vm5, %v7512_v27, %v7511_v7 }
0x32a0   :  { %v7515_v59 = vsel %vm7497_vm6, %v7514_v14, %v7513_v47 }
0x32a1   :  { %v7517_v34 = vsel %vm7500_vm7, %v7516_v26, %v7515_v59 }
0x32a8   :  { %v10051_v37 = vpop.eup %10050 }
0x32a9   :  { %7438 = vrot.lane.b32.xlu0 %v10051_v37, %s10160_s12  ;;  %v7518_v37 = vrot.slane %v7464_v16, 2 }
0x32ab   :  { %v7519_v55 = vsel %vm7503_vm8, %v7518_v37, %v7517_v34 }
0x32ad   :  { %7468 = vperm.xlu0 %9763, %v7449_v45   ;;  %v7505_v45 = vrot.slane %v7457_v36, 1 }
0x32af   :  { %v7507_v62 = vsel %vm7506_vm9, %v7505_v45, %v7504_v53 }
0x331b   :  { %v7439_v49 = vpop.permute.xlu0 %7438 }
0x331c   :  { %v7441_v44 = vmul.f32 %v10049_v5, %v7439_v49  ;;  %v7636_v5 = vsel %vm7494_vm5, %v7635_v23, %v7634_v19  ;;  %v7607_v49 = vld [vmem:[#allocation2 + $0x11] sm:$0x1]  ;;  %v7641_v23 = vrot.slane %v7605_v35, 2 }
0x331d   :  { %v7646_v32 = vsel %vm7488_vm3, %v7645_v13, %v7607_v49  ;;  %v7638_v3 = vsel %vm7497_vm6, %v7637_v51, %v7636_v5 }
0x331e   :  { %7443 = vrot.lane.b32.xlu1 %v7441_v44, %s10161_s13  ;;  %v7651_v44 = vrot.slane %v7611_v58, 4  ;;  %v7648_v39 = vsel %vm7491_vm4, %v7647_v22, %v7646_v32  ;;  %v7640_v4 = vsel %vm7500_vm7, %v7639_v46, %v7638_v3 }
0x331f   :  { %v7650_v43 = vsel %vm7494_vm5, %v7649_v21, %v7648_v39  ;;  %v7642_v63 = vsel %vm7503_vm8, %v7641_v23, %v7640_v4 }
0x3320   :  { %v7652_v57 = vsel %vm7497_vm6, %v7651_v44, %v7650_v43  ;;  %v7644_v56 = vsel %vm7506_vm9, %v7643_v6, %v7642_v63 }
0x332c   :  { %v7469_v51 = vpop.permute.xlu0 %7468 }
0x3390   :  { %v7444_v31 = vpop.permute.xlu1 %7443 }
0x3391   :  { %7447 = vst.msk [vmem:[#allocation2 + $0x1e] sm:$0x3] %vm765_vm2, %v7444_v31  ;;  %v7654_v31 = vsel %vm7500_vm7, %v7653_v61, %v7652_v57 }
0x3392   :  { %v7656_v38 = vsel %vm7503_vm8, %v7655_v40, %v7654_v31 }
0x3398   :  { %v7465_v52 = vld [vmem:[#allocation2 + $0x1e] sm:$0x1]  ;;  %v7614_v41 = vld [vmem:[#allocation2 + $0x1f] sm:$0x1] }
0x3399   :  { %v7520_v33 = vrot.slane %v7465_v52, 1  ;;  %v7657_v50 = vrot.slane %v7614_v41, 1 }
0x339b   :  { %v7521_v48 = vsel %vm7506_vm9, %v7520_v33, %v7519_v55  ;;  %v7658_v10 = vsel %vm7506_vm9, %v7657_v50, %v7656_v38 }
0x339c   :  { %v9746_v25 = vpack.c.bf16 %v7521_v48, %v7507_v62  ;;  %v9749_v2 = vpack.c.bf16 %v7658_v10, %v7644_v56 }
0x339e   :  { %9747 = vmatpush3.bf16.msra.mxu1 %v9746_v25 }
0x339f   :  { %9748 = vmatprep.subr.bf16.mxu1 %v10157_v0 }
0x33a1   :  { %9248 = vmatmul.mubr.msk.f32.vlgmr.msra.gmra.mrb[80].mxu1 %vm7524_vm10, %v7448_v60 }
0x33a2   :  { %9750 = vmatpush3.bf16.msra.mxu1 %v9749_v2  ;;  %9254 = vmatprep.mubr.msk.f32.mxu1 %vm10158_vm0, %v10159_v1 }
0x33a5   :  { %9255 = vmatmul.mubr.msk.f32.vlgmr.msra.gmra.mrb[82].mxu1 %vm7524_vm10, %v7448_v60 }
0x3474   :  { %v7594_v29 = vpop.f32.mrb[80].mxu1 }
0x3475   :  { %v7595_v36 = vadd.f32 %v7594_v29, %v7469_v51  ;;  %v9249_v11 = vpop.f32.mrb[81].mxu1 }
0x3477   :  { %7598 = vst.msk [vmem:[#allocation9] sm:$0xff] %vm80_vm1, %v7595_v36 }
0x3478   :  { %v7727_v12 = vpop.f32.mrb[82].mxu1 }
0x3479   :  { %v7728_v18 = vadd.f32 %v7727_v12, %v7469_v51  ;;  %v9256_v0 = vpop.f32.mrb[83].mxu1 }
0x347b   :  { %7732 = vst.msk [vmem:[#allocation9 + $0x8] sm:$0xff] %vm80_vm1, %v7728_v18 }
0x347c   :  { %10135 = shalt.err (!%p10132_p0)
}
0x347d   :  { %s10136_s11 = scalar_lea.hbm %s11401_s6, 256 }
0x347e   :  { %p10137_p1 = scmp.ne.s32.totalorder %s11401_s6, %s10136_s11  ;;  %p10140_p2 = scmp.lt.u32.totalorder %s10136_s11, %s11401_s6 }
0x3480   :  { %p10142_p3 = pnand %p10140_p2, %p10137_p1 }
0x3482   :  { %10145 = shalt.err (!%p10142_p3)
}
0x3483   :  { %7744 = dma.vmem_to_hbm [thread:$0]  %s7739_s4, 256, %s11401_s6, [#allocation5], %s10154_s9, %s10154_s9, %s10155_s10  }
0x3484   :  { %10150 = dma.done.wait [#allocation5], 256  }
0x3485   :  { %10151 = vsyncadd [#allocation5], 4294967040 }
0x3486   :  { %7748 = vsyncpa [#allocation4], 1 }
0x3487   :  { %7749 = vsyncpa [#allocation7], 1 }
0x3488   :  { %7750 = vsyncpa [#allocation5], 1 }

</bundles_post_ra>
